<compile_context>
chip_gen: v7x
topology: tpu7x:2x2x1
jax: 0.10.0
libtpu: 0.0.40
codegen_flags: <defaults>
</compile_context>

<pallas_src>
import jax
import jax.numpy as jnp
from jax.experimental import pallas as pl
from jax.experimental.pallas import tpu as pltpu


def _round_up(x, m):
    return ((x + m - 1) // m) * m


def _pick_tile(dim_p, max_tile):
    """Largest multiple-of-128 divisor of dim_p (itself a multiple of 128)
    that is <= max_tile. Guarantees exact grid division (no K/N tail blocks)."""
    if dim_p <= max_tile:
        return dim_p
    q = dim_p // 128
    for d in range(q, 0, -1):
        t = 128 * d
        if t <= max_tile and q % d == 0:
            return t
    return 128


def _linear_kernel(x_ref, w_ref, b_ref, out_ref, acc_ref):
    # x_ref: (tm, tk), w_ref: (tn, tk)  (PyTorch [H, I] layout — contraction on
    # the lane-dense last dim of both operands, i.e. x @ W^T on the MXU),
    # b_ref: (1, tn), out_ref: (tm, tn), acc_ref: (tm, tn) f32 scratch.
    k = pl.program_id(2)

    @pl.when(k == 0)
    def _():
        acc_ref[...] = jnp.zeros_like(acc_ref)

    acc_ref[...] += jax.lax.dot_general(
        x_ref[...], w_ref[...],
        dimension_numbers=(((1,), (1,)), ((), ())),
        preferred_element_type=jnp.float32)

    @pl.when(k == pl.num_programs(2) - 1)
    def _():
        out_ref[...] = (acc_ref[...] + b_ref[...].astype(jnp.float32)
                        ).astype(out_ref.dtype)


def prototype_forward(x, fc1_weight, fc1_bias, fc2_weight, *,
                      block_m=512, block_n=512, block_k=1024,
                      compute_dtype=None):
    """JAX/Pallas equivalent of Prototype.forward.

    x:          [M, inputNum]
    fc1_weight: [hiddenNum, inputNum]   (PyTorch nn.Linear layout, NOT transposed)
    fc1_bias:   [hiddenNum]
    fc2_weight: [outputNum, hiddenNum]  (unused in compute; returned as a param)
    compute_dtype: optionally cast x / fc1_weight (e.g. jnp.bfloat16) before the
                   kernel for the native MXU rate on v6e/v7x; accumulation and
                   bias add stay in f32, output keeps x.dtype.
    Returns (out, (fc1_weight, fc1_bias), (fc2_weight,)) with out = x @ W1^T + b1.
    """
    M, I = x.shape
    H, I_w = fc1_weight.shape
    assert I_w == I and fc1_bias.shape == (H,)

    fc_w1 = (fc1_weight, fc1_bias)   # pure pass-through — no kernel work needed
    fc_w2 = (fc2_weight,)

    # Small/skinny-problem bypass: kernel launch + DMA descriptor overhead and
    # >99% lane/MXU waste make the Pallas path strictly slower than a fused dot.
    if min(I, H) < 128 or (M * I * H) < (1 << 20):
        out = (x @ fc1_weight.T + fc1_bias).astype(x.dtype)
        return out, fc_w1, fc_w2

    out_dtype = x.dtype
    xk, wk = x, fc1_weight
    if compute_dtype is not None:
        xk = xk.astype(compute_dtype)
        wk = wk.astype(compute_dtype)
    bk = fc1_bias.reshape(1, H)

    # Pad contraction / output dims to multiples of 128: unmasked lane-dense
    # stores and MXU-shaped tiles. Zero padding is exact (contributes 0 to the
    # contraction; extra H columns are sliced off below).
    I_p = _round_up(I, 128)
    H_p = _round_up(H, 128)
    if I_p != I:
        xk = jnp.pad(xk, ((0, 0), (0, I_p - I)))
        wk = jnp.pad(wk, ((0, 0), (0, I_p - I)))
    if H_p != H:
        wk = jnp.pad(wk, ((0, H_p - H), (0, 0)))
        bk = jnp.pad(bk, ((0, 0), (0, H_p - H)))

    # ---- tiling (sized for v7x's 64 MiB VMEM; also fine on v5e/v6e) ----
    tn = _pick_tile(H_p, block_n)          # divides H_p exactly
    tk = _pick_tile(I_p, block_k)          # divides I_p exactly (no garbage K tail)
    if M <= 256:
        tm = M                              # single step; block == full dim is legal
    else:
        # >= 2 M-steps so dimension_semantics can shard across v7x's two TCs.
        tm = min(block_m, max(256, _round_up(pl.cdiv(M, 2), 256)))

    grid = (pl.cdiv(M, tm), H_p // tn, I_p // tk)

    # ---- explicit VMEM budget: double-buffered pipelined blocks + scratch ----
    x_bytes = tm * tk * jnp.dtype(xk.dtype).itemsize
    w_bytes = tn * tk * jnp.dtype(wk.dtype).itemsize
    b_bytes = tn * jnp.dtype(bk.dtype).itemsize
    o_bytes = tm * tn * jnp.dtype(out_dtype).itemsize
    acc_bytes = tm * tn * 4
    needed = 2 * (x_bytes + w_bytes + b_bytes + o_bytes) + acc_bytes
    vmem_limit = int(min(max(needed * 5 // 4 + (1 << 20), 8 << 20), 64 << 20))

    cost = pl.CostEstimate(
        flops=2 * M * I * H,
        transcendentals=0,
        bytes_accessed=(xk.size * jnp.dtype(xk.dtype).itemsize
                        + wk.size * jnp.dtype(wk.dtype).itemsize
                        + bk.size * jnp.dtype(bk.dtype).itemsize
                        + M * H_p * jnp.dtype(out_dtype).itemsize),
    )

    out_p = pl.pallas_call(
        _linear_kernel,
        out_shape=jax.ShapeDtypeStruct((M, H_p), out_dtype),
        grid=grid,
        in_specs=[
            pl.BlockSpec((tm, tk), lambda i, j, k: (i, k)),   # activations
            pl.BlockSpec((tn, tk), lambda i, j, k: (j, k)),   # weight, [H, I] layout
            pl.BlockSpec((1, tn), lambda i, j, k: (0, j)),    # bias
        ],
        out_specs=pl.BlockSpec((tm, tn), lambda i, j, k: (i, j)),
        scratch_shapes=[pltpu.VMEM((tm, tn), jnp.float32)],
        compiler_params=pltpu.CompilerParams(
            dimension_semantics=("parallel", "parallel", "arbitrary"),
            vmem_limit_bytes=vmem_limit,
        ),
        cost_estimate=cost,
    )(xk, wk, bk)

    out = out_p[:, :H] if H_p != H else out_p
    return out, fc_w1, fc_w2


if __name__ == "__main__":
    key = jax.random.PRNGKey(0)

    def run_case(name, M, I, H, O, case_key):
        k1, k2, k3, k4 = jax.random.split(case_key, 4)
        x = jax.random.normal(k1, (M, I), dtype=jnp.float32)
        w1 = 0.05 * jax.random.normal(k2, (H, I), dtype=jnp.float32)
        b1 = 0.1 * jax.random.normal(k3, (H,), dtype=jnp.float32)
        w2 = 0.05 * jax.random.normal(k4, (O, H), dtype=jnp.float32)

        out, fc_w1, fc_w2 = prototype_forward(x, w1, b1, w2)
        out = jax.block_until_ready(out)

        ref = jnp.dot(x, w1.T, precision=jax.lax.Precision.HIGHEST) + b1
        assert out.shape == (M, H), (name, out.shape)
        err = float(jnp.max(jnp.abs(out - ref)))
        assert jnp.allclose(out, ref, atol=1e-3, rtol=1e-3), (name, err)
        assert fc_w1[0] is w1 and fc_w1[1] is b1 and fc_w2[0] is w2, name

    keys = jax.random.split(key, 3)
    # Small shapes from the module spec (batch=2, inputNum=16, hiddenNum=32,
    # outputNum=8): exercises the tiny-problem bypass path.
    run_case("small_bypass", 2, 16, 32, 8, keys[0])
    # Aligned, multi-K, multi-M-step Pallas path (accumulator over K grid).
    run_case("pallas_aligned", 512, 2048, 512, 128, keys[1])
    # Unaligned dims + partial boundary M block: exercises pad/slice path.
    run_case("pallas_unaligned", 300, 200, 320, 64, keys[2])

    print("KERNEL_OK")
</pallas_src>

<mosaic_0001>
module attributes {stable_mosaic.version = 11 : i64} {
  func.func @_linear_kernel(%arg0: i32, %arg1: i32, %arg2: i32, %arg3: memref<256x1024xf32, #tpu.memory_space<vmem>>, %arg4: memref<512x1024xf32, #tpu.memory_space<vmem>>, %arg5: memref<1x512xf32, #tpu.memory_space<vmem>>, %arg6: memref<256x512xf32, #tpu.memory_space<vmem>>, %arg7: memref<256x512xf32, #tpu.memory_space<vmem>>) attributes {dimension_semantics = [#tpu.dimension_semantics<parallel>, #tpu.dimension_semantics<parallel>, #tpu.dimension_semantics<arbitrary>], iteration_bounds = array<i64: 2, 1, 2>, scalar_prefetch = 0 : i64, scratch_operands = 1 : i64, tpu.core_type = #tpu.core_type<tc>, window_params = [{transform_indices = @transform_0, window_bounds = array<i64: 256, 1024>}, {transform_indices = @transform_1, window_bounds = array<i64: 512, 1024>}, {transform_indices = @transform_2, window_bounds = array<i64: 1, 512>}, {transform_indices = @transform_3, window_bounds = array<i64: 256, 512>}]} {
    %c0_i32 = arith.constant 0 : i32
    %0 = arith.cmpi eq, %arg2, %c0_i32 : i32
    %1 = arith.extui %0 : i1 to i32
    %c0_i32_0 = arith.constant 0 : i32
    %2 = arith.cmpi ne, %1, %c0_i32_0 : i32
    scf.if %2 {
      %cst_9 = arith.constant 0.000000e+00 : f32
      %12 = vector.broadcast %cst_9 : f32 to vector<256x512xf32>
      %c0_10 = arith.constant 0 : index
      %c0_11 = arith.constant 0 : index
      %13 = vector.load %arg7[%c0_10, %c0_11] : memref<256x512xf32, #tpu.memory_space<vmem>>, vector<256x512xf32>
      tpu.vector_store %arg7[%c0_10, %c0_11], %12 {strides = array<i32>} : memref<256x512xf32, #tpu.memory_space<vmem>>, vector<256x512xf32>,
    } else {
    }
    %c0 = arith.constant 0 : index
    %c0_1 = arith.constant 0 : index
    %3 = vector.load %arg7[%c0, %c0_1] : memref<256x512xf32, #tpu.memory_space<vmem>>, vector<256x512xf32>
    %c0_2 = arith.constant 0 : index
    %c0_3 = arith.constant 0 : index
    %4 = vector.load %arg3[%c0_2, %c0_3] : memref<256x1024xf32, #tpu.memory_space<vmem>>, vector<256x1024xf32>
    %c0_4 = arith.constant 0 : index
    %c0_5 = arith.constant 0 : index
    %5 = vector.load %arg4[%c0_4, %c0_5] : memref<512x1024xf32, #tpu.memory_space<vmem>>, vector<512x1024xf32>
    %cst = arith.constant dense<0.000000e+00> : vector<256x512xf32>
    %6 = tpu.matmul %4, %5, %cst {dimension_numbers = #tpu.dot_dimension_numbers<[1], [1], [0], [0], [0, 0, 1, 0], [], []>} : vector<256x1024xf32>, vector<512x1024xf32>, vector<256x512xf32> -> vector<256x512xf32>
    %7 = arith.addf %3, %6 : vector<256x512xf32>
    %c0_6 = arith.constant 0 : index
    %c0_7 = arith.constant 0 : index
    %8 = vector.load %arg7[%c0_6, %c0_7] : memref<256x512xf32, #tpu.memory_space<vmem>>, vector<256x512xf32>
    tpu.vector_store %arg7[%c0_6, %c0_7], %7 {strides = array<i32>} : memref<256x512xf32, #tpu.memory_space<vmem>>, vector<256x512xf32>,
    %c1_i32 = arith.constant 1 : i32
    %9 = arith.cmpi eq, %arg2, %c1_i32 : i32
    %10 = arith.extui %9 : i1 to i32
    %c0_i32_8 = arith.constant 0 : i32
    %11 = arith.cmpi ne, %10, %c0_i32_8 : i32
    scf.if %11 {
      %c0_9 = arith.constant 0 : index
      %c0_10 = arith.constant 0 : index
      %12 = vector.load %arg7[%c0_9, %c0_10] : memref<256x512xf32, #tpu.memory_space<vmem>>, vector<256x512xf32>
      %c0_11 = arith.constant 0 : index
      %c0_12 = arith.constant 0 : index
      %13 = vector.load %arg5[%c0_11, %c0_12] : memref<1x512xf32, #tpu.memory_space<vmem>>, vector<1x512xf32>
      %14 = vector.broadcast %13 : vector<1x512xf32> to vector<256x512xf32>
      %15 = arith.addf %12, %14 : vector<256x512xf32>
      %c0_13 = arith.constant 0 : index
      %c0_14 = arith.constant 0 : index
      %16 = vector.load %arg6[%c0_13, %c0_14] : memref<256x512xf32, #tpu.memory_space<vmem>>, vector<256x512xf32>
      tpu.vector_store %arg6[%c0_13, %c0_14], %15 {strides = array<i32>} : memref<256x512xf32, #tpu.memory_space<vmem>>, vector<256x512xf32>,
    } else {
    }
    return
  }
  func.func @transform_0(%arg0: i32, %arg1: i32, %arg2: i32) -> (i32, i32) {
    %c0_i32 = arith.constant 0 : i32
    return %arg0, %arg2 : i32, i32
  }
  func.func @transform_1(%arg0: i32, %arg1: i32, %arg2: i32) -> (i32, i32) {
    %c0_i32 = arith.constant 0 : i32
    return %arg1, %arg2 : i32, i32
  }
  func.func @transform_2(%arg0: i32, %arg1: i32, %arg2: i32) -> (i32, i32) {
    %c0_i32 = arith.constant 0 : i32
    %c0_i32_0 = arith.constant 0 : i32
    return %c0_i32, %arg1 : i32, i32
  }
  func.func @transform_3(%arg0: i32, %arg1: i32, %arg2: i32) -> (i32, i32) {
    %c0_i32 = arith.constant 0 : i32
    return %arg0, %arg1 : i32, i32
  }
}

</mosaic_0001>

<bundles_post_ra>
// kernel: tpu_custom_call.1
= control target key start
LH: loop header
LB: loop body
LE: loop exit
PB: predicated region body
PF: predicated region fallthrough
CT: control target
= control target key end

     0   :  { %s7074_s0 = inlined_call_operand.hbm [shape: f32[512,2048], index: 0, kind: input, shape index: {}]   ;;  %s7075_s1 = inlined_call_operand.hbm [shape: f32[512,2048], index: 1, kind: input, shape index: {}]   ;;  %s7076_s2 = inlined_call_operand.hbm [shape: f32[1,512], index: 2, kind: input, shape index: {}]   ;;  %s7077_s3 = inlined_call_operand.hbm [shape: f32[512,512], index: 3, kind: output, shape index: {}]  }
   0x1   :  { %7100 = sst [smem:[#allocation25_spill]] %s7076_s2 }
   0x2   :  { %7101 = sst [smem:[#allocation26_spill]] %s7077_s3 }
   0x3   :  { %8 = vsyncpa [#allocation4], 0 }
   0x4   :  { %10 = vsyncpa [#allocation4 + $0x1], 0 }
   0x5   :  { %11 = vsyncpa [#allocation7], 0 }
   0x6   :  { %13 = vsyncpa [#allocation7 + $0x1], 0 }
   0x7   :  { %14 = vsyncpa [#allocation5], 0 }
   0x8   :  { %16 = vsyncpa [#allocation5 + $0x1], 0  ;;  %s5532_s12 = smov 0   ;;  %s5534_s13 = smov 0  }
   0x9   :  { %s5536_s14 = smov 0   ;;  %s5538_s15 = smov 0  }
   0xa   :  { %s5540_s16 = smov 0   ;;  %s5542_s17 = smov 0  }
   0xb   :  { %s5544_s18 = smov 0   ;;  %s5546_s19 = smov 0  }
   0xc   :  { %s5548_s20 = smov 0   ;;  %s5550_s21 = smov 0  }
   0xd   :  { %s5552_s22 = smov 0   ;;  %s5554_s23 = smov 0  }
   0xe   :  { %s5556_s24 = smov 0   ;;  %s5558_s25 = smov 0  }
   0xf LB: > { %7102 = sst [smem:[#allocation14_spill]] %s5448_s12  ;;  %s5599_s26 = sadd.s32 4294967295, %s5500_s25   ;;  %s5500_s25 = sphi %s5558_s25, %s22_s25   ;;  %s5496_s24 = sphi %s5556_s24, %s7164_s24   ;;  %s5492_s23 = sphi %s5554_s23, %s7163_s23   ;;  %s5488_s22 = sphi %s5552_s22, %s7162_s22   ;;  %s5484_s21 = sphi %s5550_s21, %s7161_s21   ;;  %s5480_s20 = sphi %s5548_s20, %s7160_s20   ;;  %s5476_s19 = sphi %s5546_s19, %s7159_s19   ;;  %s5472_s18 = sphi %s5544_s18, %s7158_s18   ;;  %s5468_s17 = sphi %s5542_s17, %s7157_s17   ;;  %s5464_s16 = sphi %s5540_s16, %s7156_s16   ;;  %s5460_s15 = sphi %s5538_s15, %s7152_s15   ;;  %s5456_s14 = sphi %s5536_s14, %s7155_s14   ;;  %s5452_s13 = sphi %s5534_s13, %s7154_s13   ;;  %s5448_s12 = sphi %s5532_s12, %s7151_s12  }
  0x10   : > { %7103 = sst [smem:[#allocation15_spill]] %s5452_s13  ;;  %s4185_s27 = sadd.s32 4294967294, %s5500_s25  }
  0x11   : > { %7104 = sst [smem:[#allocation16_spill]] %s5464_s16  ;;  %p57_p0 = scmp.ne.s32.totalorder %s5480_s20, %s5476_s19 }
  0x12   : > { %7105 = sst [smem:[#allocation17_spill]] %s5484_s21  ;;  %p58_p1 = scmp.eq.s32.totalorder %s5500_s25, 0 }
  0x13   : > { %7106 = sst [smem:[#allocation18_spill]] %s5488_s22  ;;  %p63_p2 = scmp.ne.s32.totalorder %s5476_s19, %s5472_s18 }
  0x14   : > { %7107 = sst [smem:[#allocation19_spill]] %s5599_s26  ;;  %p7078_p3 = scmp.eq.s32.totalorder %s5599_s26, 0 }
  0x15   : > { %p5609_p4 = por %p58_p1, %p57_p0  ;;  %p85_p5 = scmp.ne.s32.totalorder %s5468_s17, %s5464_s16 }
  0x16   : > { %p5617_p6 = por %p7078_p3, %p63_p2  ;;  %p91_p7 = scmp.ne.s32.totalorder %s5464_s16, %s5460_s15 }
  0x17   : > { %p5622_p8 = por %p85_p5, %p58_p1  ;;  %p142_p10 = scmp.ne.s32.totalorder %s5456_s14, %s5452_s13 }
  0x18   : > { %s7109_s4 = scalar_select %p5617_p6, 1, 0 }
  0x19   : > { %p5629_p9 = por %p91_p7, %p7078_p3  ;;  %p143_p11 = scmp.eq.s32.totalorder %s5599_s26, 3 }
  0x1a   : > { %7110 = sst [smem:[#allocation20_spill]] %s7109_s4  ;;  %p148_p12 = scmp.ne.s32.totalorder %s5452_s13, %s5448_s12 }
  0x1b   : > { %s7112_s7 = scalar_select %p5629_p9, 1, 0 }
  0x1c   : > { %p149_p13 = scmp.eq.s32.totalorder %s4185_s27, 3  ;;  %p4186_p0 = scmp.ge.s32.totalorder %s5500_s25, 1 }
  0x1d   : > { %7113 = sst [smem:[#allocation21_spill]] %s7112_s7  ;;  %p5639_p2 = por %p143_p11, %p142_p10 }
  0x1e   : > { %p156_p1 = scmp.lt.s32.totalorder %s5500_s25, 5  ;;  %p5644_p5 = por %p149_p13, %p148_p12 }
  0x1f   : > { %s7114_s8 = scalar_select %p5639_p2, 1, 0 }
  0x20   : > { %s7116_s9 = scalar_select %p5644_p5, 1, 0 }
  0x21   : > { %7115 = sst [smem:[#allocation22_spill]] %s7114_s8  ;;  %p5648_p7 = pnand %p4186_p0, %p156_p1 }
  0x22   : > { %7117 = sst [smem:[#allocation23_spill]] %s7116_s9  ;;  %s5502_s11 = smov [#allocation8]  }
  0x23   : > { %s7118_s10 = scalar_select %p5648_p7, 1, 0 }
  0x24   : > { %s172_s15 = sshll.u32 %s5502_s11, 4  ;;  %p5120_p3 = pneg %p5648_p7  ;;  %s173_s15 = int_to_ptr.vmem [resolvable:$true] %s172_s15 }
  0x25   : > { %p5136_p9 = scmp.lt.s32.totalorder %s5500_s25, 4  ;;  %p7119_p10 = scmp.eq.s32.totalorder %s5599_s26, 0 }
  0x26   : > { %s7123_s2 = sld [smem:[#allocation25_spill]] }
  0x27   : > { %p5657_p11 = pnand %p5120_p3, %p7119_p10  ;;  %p5663_p12 = pnand %p5136_p9, %p5609_p4 }
  0x28   : > { %p5669_p13 = pnand %p5136_p9, %p5622_p8 }
  0x29   : > { %s7121_s27 = scalar_select %p5663_p12, 1, 0 }
  0x2a   : > { %s7122_s28 = scalar_select %p5669_p13, 1, 0 }
  0x2b   : > { %p5260_p0 = pneg %p5657_p11 }
  0x2c   : > { %s5258_s29 = scalar_lea.hbm %s7123_s2, 64 }
  0x2d   : > { %p5259_p3 = scmp.ne.s32.totalorder %s7123_s2, %s5258_s29  ;;  %p5265_p10 = scmp.lt.u32.totalorder %s5258_s29, %s7123_s2 }
  0x2f   : > { %p5261_p1 = pnand %p5260_p0, %p5259_p3 }
  0x31   : > { %p5262_p4 = pneg %p5261_p1 }
  0x33   : > { %p5267_p8 = pnand %p5265_p10, %p5262_p4 }
  0x35   : > { %5270 = shalt.err (!%p5267_p8)
}
  0x36   : > { %s5271_s5 = scalar_lea.vmem %s173_s15, 64  ;;  %p5279_p6 = scmp.lt.s32.totalorder %s173_s15, %s173_s15 }
  0x37   : > { %p5272_p9 = scmp.ne.s32.totalorder %s173_s15, %s5271_s5  ;;  %p5280_p7 = scmp.lt.s32.totalorder %s5271_s5, %s5271_s5 }
  0x39   : > { %p5274_p5 = pnand %p5272_p9, %p5260_p0  ;;  %p5281_p13 = por %p5280_p7, %p5279_p6 }
  0x3b   : > { %p5275_p2 = pneg %p5274_p5 }
  0x3d   : > { %p5282_p12 = pnand %p5281_p13, %p5275_p2 }
  0x3f   : > { %5285 = shalt.err (!%p5282_p12)
}
  0x40   : > { %5123 = dma.hbm_to_vmem [thread:$0]  (!%p5657_p11), %s7123_s2, 64, %s173_s15, [#allocation7]  }
  0x41   : > { %s41_s3 = sadd.s32 1, %s5496_s24  ;;  %s34_s29 = sadd.s32 1, %s5492_s23 }
  0x42   : > { %s183_s9 = sand.u32 1, %s5480_s20   ;;  %p35_p6 = scmp.ge.s32.totalorder %s34_s29, 2 }
  0x43   : > { %s4189_s11 = sshll.u32 %s183_s9, 11  ;;  %s4191_s18 = sshll.u32 %s5492_s23, 3 }
  0x44   : > { %s7166_s29 = smov (%p35_p6, %s34_s29), 0  ;;  %s7168_s3 = smov (!%p35_p6, %s41_s3), %s5496_s24 }
  0x45   : > { %7124 = sst [smem:[#allocation24_spill]] %s7166_s29  ;;  %s46_s30 = ssub.s32 %s5492_s23, %s7166_s29 }
  0x46   : > { %p43_p2 = scmp.ge.s32.totalorder %s7168_s3, 2  ;;  %p76_p5 = scmp.eq.s32.totalorder %s46_s30, 0 }
  0x47   : > { %s4210_s15 = sshll.u32 %s5496_s24, 9  ;;  %s187_s5 = scalar_lea.vmem [#allocation3], %s4189_s11 }
  0x48   : > { %s197_s12 = sshll.u32 %s187_s5, 4  ;;  %s7170_s3 = smov (%p43_p2, %s7168_s3), 0  ;;  %s5723_s12 = int_to_ptr.vmem [resolvable:$true] %s197_s12 }
  0x49   : > { %s7125_s6 = sadd.s32 1, %s5468_s17  ;;  %s45_s8 = ssub.s32 %s5496_s24, %s7170_s3 }
  0x4a   : > { %s5704_s2 = scalar_select %p76_p5, %s5468_s17, %s7125_s6  }
  0x4b   : > { %s194_s22 = sadd.s32 %s4210_s15, %s4191_s18  ;;  %s47_s21 = sor.u32 %s46_s30, %s45_s8 }
  0x4c   : > { %p130_p7 = scmp.eq.s32.totalorder %s45_s8, 0  ;;  %p48_p11 = scmp.eq.s32.totalorder %s47_s21, 0 }
  0x4d   : > { %s4193_s29 = sshll.u32 %s194_s22, 7  ;;  %s7126_s13 = sadd.s32 1, %s5456_s14 }
  0x4e   : > { %s5711_s7 = scalar_select %p130_p7, %s5456_s14, %s7126_s13  }
  0x4f   : > { %s7127_s16 = sadd.s32 1, %s5480_s20  ;;  %s5721_s4 = scalar_lea.hbm %s7074_s0, %s4193_s29 }
  0x50   : > { %s5716_s11 = scalar_select %p48_p11, %s5480_s20, %s7127_s16  }
  0x51   : > { %s207_s8 = sand.u32 1, %s5500_s25   ;;  %s5726_s21 = scalar_lea.sflag [#allocation4], %s183_s9 }
  0x52   : > { %s5286_s22 = scalar_lea.hbm %s5721_s4, 32768  ;;  %p7128_p13 = scmp.ne.s32.totalorder %s7121_s27, 0 }
  0x53   : > { %p5287_p12 = scmp.ne.s32.totalorder %s5721_s4, %s5286_s22  ;;  %s5291_s26 = scalar_lea.hbm %s7074_s0, 131072 }
  0x54   : > { %p5288_p3 = pneg %p7128_p13  ;;  %p5292_p4 = scmp.lt.u32.totalorder %s5721_s4, %s7074_s0 }
  0x55   : > { %p5293_p10 = scmp.lt.u32.totalorder %s5291_s26, %s5286_s22  ;;  %p5295_p9 = scmp.lt.u32.totalorder %s5286_s22, %s5721_s4 }
  0x56   : > { %p5289_p0 = pnand %p5288_p3, %p5287_p12 }
  0x57   : > { %p5294_p8 = por %p5293_p10, %p5292_p4 }
  0x58   : > { %p5290_p1 = pneg %p5289_p0 }
  0x59   : > { %p5296_p6 = por %p5295_p9, %p5294_p8 }
  0x5b   : > { %p5297_p2 = pnand %p5296_p6, %p5290_p1 }
  0x5d   : > { %5300 = shalt.err (!%p5297_p2)
}
  0x5e   : > { %s5301_s9 = scalar_lea.vmem %s5723_s12, 32768  ;;  %s5503_s30 = smov [#allocation3]  }
  0x5f   : > { %p5302_p5 = scmp.ne.s32.totalorder %s5723_s12, %s5301_s9  ;;  %s5306_s15 = sshll.u32 %s5503_s30, 4  ;;  %s5307_s15 = int_to_ptr.vmem [resolvable:$false] %s5306_s15 }
  0x60   : > { %s5308_s6 = scalar_lea.vmem %s5307_s15, 65536  ;;  %p5309_p12 = scmp.lt.s32.totalorder %s5723_s12, %s5307_s15 }
  0x61   : > { %p5304_p7 = pnand %p5302_p5, %p5288_p3  ;;  %p5310_p0 = scmp.lt.s32.totalorder %s5308_s6, %s5301_s9 }
  0x63   : > { %p5305_p11 = pneg %p5304_p7  ;;  %p5311_p4 = por %p5310_p0, %p5309_p12 }
  0x65   : > { %p5312_p10 = pnand %p5311_p4, %p5305_p11 }
  0x67   : > { %5315 = shalt.err (!%p5312_p10)
}
  0x68   : > { %s5504_s5 = smov 2048   ;;  %s5505_s22 = smov 1024  }
  0x69   : > { %s5506_s13 = smov 64   ;;  %s209_s16 = sand.u32 1, %s5468_s17  }
  0x6a   : > { %5127 = dma.hbm_to_vmem [thread:$0]  (!%p7128_p13), %s5721_s4, 32768, %s5723_s12, %s5726_s21, %s5504_s5, %s5505_s22, %s5506_s13  }
  0x6b   : > { %s4194_s26 = sshll.u32 %s209_s16, 12  ;;  %s4211_s29 = sshll.u32 %s5492_s23, 10 }
  0x6c   : > { %s5762_s30 = scalar_lea.hbm %s7075_s1, %s4211_s29  ;;  %s211_s15 = scalar_lea.vmem [#allocation6], %s4194_s26 }
  0x6d   : > { %s221_s6 = sshll.u32 %s211_s15, 4  ;;  %s5768_s27 = scalar_lea.sflag [#allocation7], %s207_s8  ;;  %s5764_s6 = int_to_ptr.vmem [resolvable:$true] %s221_s6 }
  0x6e   : > { %s5316_s4 = scalar_lea.hbm %s5762_s30, 65536  ;;  %p7129_p3 = scmp.ne.s32.totalorder %s7122_s28, 0 }
  0x6f   : > { %p5317_p13 = scmp.ne.s32.totalorder %s5762_s30, %s5316_s4  ;;  %s5321_s16 = scalar_lea.hbm %s7075_s1, 131072 }
  0x70   : > { %p5318_p1 = pneg %p7129_p3  ;;  %p5322_p6 = scmp.lt.u32.totalorder %s5762_s30, %s7075_s1 }
  0x71   : > { %p5323_p2 = scmp.lt.u32.totalorder %s5321_s16, %s5316_s4  ;;  %p5325_p7 = scmp.lt.u32.totalorder %s5316_s4, %s5762_s30 }
  0x72   : > { %p5319_p8 = pnand %p5318_p1, %p5317_p13 }
  0x73   : > { %p5324_p5 = por %p5323_p2, %p5322_p6 }
  0x74   : > { %p5320_p9 = pneg %p5319_p8 }
  0x75   : > { %p5326_p11 = por %p5325_p7, %p5324_p5 }
  0x77   : > { %p5327_p12 = pnand %p5326_p11, %p5320_p9 }
  0x79   : > { %5330 = shalt.err (!%p5327_p12)
}
  0x7a   : > { %s5331_s8 = scalar_lea.vmem %s5764_s6, 65536  ;;  %s5507_s18 = smov [#allocation6]  }
  0x7b   : > { %p5332_p0 = scmp.ne.s32.totalorder %s5764_s6, %s5331_s8  ;;  %s5336_s9 = sshll.u32 %s5507_s18, 4  ;;  %s5337_s9 = int_to_ptr.vmem [resolvable:$false] %s5336_s9 }
  0x7c   : > { %s5338_s15 = scalar_lea.vmem %s5337_s9, 131072  ;;  %p5339_p13 = scmp.lt.s32.totalorder %s5764_s6, %s5337_s9 }
  0x7d   : > { %p5334_p4 = pnand %p5332_p0, %p5318_p1  ;;  %p5340_p8 = scmp.lt.s32.totalorder %s5338_s15, %s5331_s8 }
  0x7f   : > { %p5335_p10 = pneg %p5334_p4  ;;  %p5341_p6 = por %p5340_p8, %p5339_p13 }
  0x81   : > { %p5342_p2 = pnand %p5341_p6, %p5335_p10 }
  0x83   : > { %5345 = shalt.err (!%p5342_p2)
}
  0x84   : > { %5130 = dma.hbm_to_vmem [thread:$0]  (!%p7129_p3), %s5762_s30, 65536, %s5764_s6, %s5768_s27, %s5504_s5, %s5505_s22, %s5506_s13  }
  0x85   : > { %p7130_p1 = scmp.ne.s32.totalorder %s7118_s10, 0 }
  0x86   : > { %s7131_s4 = sld [smem:[#allocation20_spill]] (!%p7130_p1)  ;;  %s235_s12 = sand.u32 (!%p7130_p1), 1, %s5476_s19  }
  0x87   : > { %233 = sbr.rel (%p7130_p1) target bundleno = 1174 (0x496), region = 32  ;;  %s4198_s21 = sshll.u32 (!%p7130_p1), %s235_s12, 11 }
  0x88   : > { %s236_s16 = scalar_lea.sflag (!%p7130_p1), [#allocation4], %s235_s12  ;;  %s5802_s29 = scalar_lea.vmem (!%p7130_p1), [#allocation3], %s4198_s21 }
  0x8c   : > { %p7132_p9 = scmp.ne.s32.totalorder (!%p7130_p1), %s7131_s4, 0 }
  0x8e   : > { %5431 = dma.done.wait (%p7132_p9), %s236_s16, 32768  }
  0x8f   : > { %5433 = vsyncadd (%p7132_p9), %s236_s16, 4294934528  ;;  %s7133_s28 = sld [smem:[#allocation19_spill]]  ;;  %s7134_s26 = sld [smem:[#allocation16_spill]] }
  0x90   : > { %s7135_s8 = sld [smem:[#allocation21_spill]] }
  0x95   : > { %s244_s18 = sand.u32 1, %s7133_s28   ;;  %s246_s5 = sand.u32 1, %s7134_s26  }
  0x96   : > { %s4199_s22 = sshll.u32 %s246_s5, 12  ;;  %s245_s10 = scalar_lea.sflag [#allocation7], %s244_s18 }
  0x97   : > { %s5810_s13 = scalar_lea.vmem [#allocation6], %s4199_s22  ;;  %p7136_p3 = scmp.ne.s32.totalorder %s7135_s8, 0 }
  0x99   : > { %5435 = dma.done.wait (%p7136_p3), %s245_s10, 65536  }
  0x9a   : > { %5437 = vsyncadd (%p7136_p3), %s245_s10, 4294901760  ;;  %p7137_p5 = scmp.eq.s32.totalorder %s7133_s28, 0 }
  0x9c   : > { %5439 = dma.done.wait (%p7137_p5), [#allocation7], 64   ;;  %p7138_p7 = pmov %p7137_p5 }
  0x9d   : > { %s7139_s30 = sld [smem:[#allocation15_spill]]  ;;  %s7140_s15 = sld [smem:[#allocation17_spill]] }
  0x9e   : > { %5441 = vsyncadd (%p7138_p7), [#allocation7], 4294967232 }
  0xa3   : > { %s277_s6 = sand.u32 1, %s7139_s30   ;;  %p4202_p11 = scmp.ne.s32.totalorder %s7140_s15, 0 }
  0xa4   : > { %s4201_s27 = sshll.u32 %s277_s6, 10  ;;  %v5508_v0 = vmov (!%p4202_p11), 0.0  }
  0xa5   : > { %s5823_s9 = scalar_lea.vmem [#allocation9], %s4201_s27  ;;  %290 = sbr.rel (%p4202_p11) target bundleno = 229 (0xe5), region = 48  ;;  %291 = vst [vmem:[#allocation2] sm:$0xff] (!%p4202_p11), %v5508_v0  ;;  %292 = vst [vmem:[#allocation2 + $0x8] sm:$0xff] (!%p4202_p11), %v5508_v0 }
  0xa6   : > { %293 = vst [vmem:[#allocation2 + $0x10] sm:$0xff] (!%p4202_p11), %v5508_v0  ;;  %294 = vst [vmem:[#allocation2 + $0x18] sm:$0xff] (!%p4202_p11), %v5508_v0 }
  0xa7   : > { %295 = vst [vmem:[#allocation2 + $0x20] sm:$0xff] (!%p4202_p11), %v5508_v0  ;;  %296 = vst [vmem:[#allocation2 + $0x28] sm:$0xff] (!%p4202_p11), %v5508_v0 }
  0xa8   : > { %297 = vst [vmem:[#allocation2 + $0x30] sm:$0xff] (!%p4202_p11), %v5508_v0  ;;  %298 = vst [vmem:[#allocation2 + $0x38] sm:$0xff] (!%p4202_p11), %v5508_v0 }
  0xa9   : > { %299 = vst [vmem:[#allocation2 + $0x40] sm:$0xff] (!%p4202_p11), %v5508_v0  ;;  %300 = vst [vmem:[#allocation2 + $0x48] sm:$0xff] (!%p4202_p11), %v5508_v0 }
  0xaa   : > { %301 = vst [vmem:[#allocation2 + $0x50] sm:$0xff] (!%p4202_p11), %v5508_v0  ;;  %302 = vst [vmem:[#allocation2 + $0x58] sm:$0xff] (!%p4202_p11), %v5508_v0 }
  0xab   : > { %303 = vst [vmem:[#allocation2 + $0x60] sm:$0xff] (!%p4202_p11), %v5508_v0  ;;  %304 = vst [vmem:[#allocation2 + $0x68] sm:$0xff] (!%p4202_p11), %v5508_v0 }
  0xac   : > { %305 = vst [vmem:[#allocation2 + $0x70] sm:$0xff] %v5508_v0  ;;  %306 = vst [vmem:[#allocation2 + $0x78] sm:$0xff] %v5508_v0 }
  0xad   : > { %307 = vst [vmem:[#allocation2 + $0x80] sm:$0xff] %v5508_v0  ;;  %308 = vst [vmem:[#allocation2 + $0x88] sm:$0xff] %v5508_v0 }
  0xae   : > { %309 = vst [vmem:[#allocation2 + $0x90] sm:$0xff] %v5508_v0  ;;  %310 = vst [vmem:[#allocation2 + $0x98] sm:$0xff] %v5508_v0 }
  0xaf   : > { %311 = vst [vmem:[#allocation2 + $0xa0] sm:$0xff] %v5508_v0  ;;  %312 = vst [vmem:[#allocation2 + $0xa8] sm:$0xff] %v5508_v0 }
  0xb0   : > { %313 = vst [vmem:[#allocation2 + $0xb0] sm:$0xff] %v5508_v0  ;;  %314 = vst [vmem:[#allocation2 + $0xb8] sm:$0xff] %v5508_v0 }
  0xb1   : > { %315 = vst [vmem:[#allocation2 + $0xc0] sm:$0xff] %v5508_v0  ;;  %316 = vst [vmem:[#allocation2 + $0xc8] sm:$0xff] %v5508_v0 }
  0xb2   : > { %317 = vst [vmem:[#allocation2 + $0xd0] sm:$0xff] %v5508_v0  ;;  %318 = vst [vmem:[#allocation2 + $0xd8] sm:$0xff] %v5508_v0 }
  0xb3   : > { %319 = vst [vmem:[#allocation2 + $0xe0] sm:$0xff] %v5508_v0  ;;  %320 = vst [vmem:[#allocation2 + $0xe8] sm:$0xff] %v5508_v0 }
  0xb4   : > { %321 = vst [vmem:[#allocation2 + $0xf0] sm:$0xff] %v5508_v0  ;;  %322 = vst [vmem:[#allocation2 + $0xf8] sm:$0xff] %v5508_v0 }
  0xb5   : > { %323 = vst [vmem:[#allocation2 + $0x100] sm:$0xff] %v5508_v0  ;;  %324 = vst [vmem:[#allocation2 + $0x108] sm:$0xff] %v5508_v0 }
  0xb6   : > { %325 = vst [vmem:[#allocation2 + $0x110] sm:$0xff] %v5508_v0  ;;  %326 = vst [vmem:[#allocation2 + $0x118] sm:$0xff] %v5508_v0 }
  0xb7   : > { %327 = vst [vmem:[#allocation2 + $0x120] sm:$0xff] %v5508_v0  ;;  %328 = vst [vmem:[#allocation2 + $0x128] sm:$0xff] %v5508_v0 }
  0xb8   : > { %329 = vst [vmem:[#allocation2 + $0x130] sm:$0xff] %v5508_v0  ;;  %330 = vst [vmem:[#allocation2 + $0x138] sm:$0xff] %v5508_v0 }
  0xb9   : > { %331 = vst [vmem:[#allocation2 + $0x140] sm:$0xff] %v5508_v0  ;;  %332 = vst [vmem:[#allocation2 + $0x148] sm:$0xff] %v5508_v0 }
  0xba   : > { %333 = vst [vmem:[#allocation2 + $0x150] sm:$0xff] %v5508_v0  ;;  %334 = vst [vmem:[#allocation2 + $0x158] sm:$0xff] %v5508_v0 }
  0xbb   : > { %335 = vst [vmem:[#allocation2 + $0x160] sm:$0xff] %v5508_v0  ;;  %336 = vst [vmem:[#allocation2 + $0x168] sm:$0xff] %v5508_v0 }
  0xbc   : > { %337 = vst [vmem:[#allocation2 + $0x170] sm:$0xff] %v5508_v0  ;;  %338 = vst [vmem:[#allocation2 + $0x178] sm:$0xff] %v5508_v0 }
  0xbd   : > { %339 = vst [vmem:[#allocation2 + $0x180] sm:$0xff] %v5508_v0  ;;  %340 = vst [vmem:[#allocation2 + $0x188] sm:$0xff] %v5508_v0 }
  0xbe   : > { %341 = vst [vmem:[#allocation2 + $0x190] sm:$0xff] %v5508_v0  ;;  %342 = vst [vmem:[#allocation2 + $0x198] sm:$0xff] %v5508_v0 }
  0xbf   : > { %343 = vst [vmem:[#allocation2 + $0x1a0] sm:$0xff] %v5508_v0  ;;  %344 = vst [vmem:[#allocation2 + $0x1a8] sm:$0xff] %v5508_v0 }
  0xc0   : > { %345 = vst [vmem:[#allocation2 + $0x1b0] sm:$0xff] %v5508_v0  ;;  %346 = vst [vmem:[#allocation2 + $0x1b8] sm:$0xff] %v5508_v0 }
  0xc1   : > { %347 = vst [vmem:[#allocation2 + $0x1c0] sm:$0xff] %v5508_v0  ;;  %348 = vst [vmem:[#allocation2 + $0x1c8] sm:$0xff] %v5508_v0 }
  0xc2   : > { %349 = vst [vmem:[#allocation2 + $0x1d0] sm:$0xff] %v5508_v0  ;;  %350 = vst [vmem:[#allocation2 + $0x1d8] sm:$0xff] %v5508_v0 }
  0xc3   : > { %351 = vst [vmem:[#allocation2 + $0x1e0] sm:$0xff] %v5508_v0  ;;  %352 = vst [vmem:[#allocation2 + $0x1e8] sm:$0xff] %v5508_v0 }
  0xc4   : > { %353 = vst [vmem:[#allocation2 + $0x1f0] sm:$0xff] %v5508_v0  ;;  %354 = vst [vmem:[#allocation2 + $0x1f8] sm:$0xff] %v5508_v0 }
  0xc5   : > { %355 = vst [vmem:[#allocation2 + $0x200] sm:$0xff] %v5508_v0  ;;  %356 = vst [vmem:[#allocation2 + $0x208] sm:$0xff] %v5508_v0 }
  0xc6   : > { %357 = vst [vmem:[#allocation2 + $0x210] sm:$0xff] %v5508_v0  ;;  %358 = vst [vmem:[#allocation2 + $0x218] sm:$0xff] %v5508_v0 }
  0xc7   : > { %359 = vst [vmem:[#allocation2 + $0x220] sm:$0xff] %v5508_v0  ;;  %360 = vst [vmem:[#allocation2 + $0x228] sm:$0xff] %v5508_v0 }
  0xc8   : > { %361 = vst [vmem:[#allocation2 + $0x230] sm:$0xff] %v5508_v0  ;;  %362 = vst [vmem:[#allocation2 + $0x238] sm:$0xff] %v5508_v0 }
  0xc9   : > { %363 = vst [vmem:[#allocation2 + $0x240] sm:$0xff] %v5508_v0  ;;  %364 = vst [vmem:[#allocation2 + $0x248] sm:$0xff] %v5508_v0 }
  0xca   : > { %365 = vst [vmem:[#allocation2 + $0x250] sm:$0xff] %v5508_v0  ;;  %366 = vst [vmem:[#allocation2 + $0x258] sm:$0xff] %v5508_v0 }
  0xcb   : > { %367 = vst [vmem:[#allocation2 + $0x260] sm:$0xff] %v5508_v0  ;;  %368 = vst [vmem:[#allocation2 + $0x268] sm:$0xff] %v5508_v0 }
  0xcc   : > { %369 = vst [vmem:[#allocation2 + $0x270] sm:$0xff] %v5508_v0  ;;  %370 = vst [vmem:[#allocation2 + $0x278] sm:$0xff] %v5508_v0 }
  0xcd   : > { %371 = vst [vmem:[#allocation2 + $0x280] sm:$0xff] %v5508_v0  ;;  %372 = vst [vmem:[#allocation2 + $0x288] sm:$0xff] %v5508_v0 }
  0xce   : > { %373 = vst [vmem:[#allocation2 + $0x290] sm:$0xff] %v5508_v0  ;;  %374 = vst [vmem:[#allocation2 + $0x298] sm:$0xff] %v5508_v0 }
  0xcf   : > { %375 = vst [vmem:[#allocation2 + $0x2a0] sm:$0xff] %v5508_v0  ;;  %376 = vst [vmem:[#allocation2 + $0x2a8] sm:$0xff] %v5508_v0 }
  0xd0   : > { %377 = vst [vmem:[#allocation2 + $0x2b0] sm:$0xff] %v5508_v0  ;;  %378 = vst [vmem:[#allocation2 + $0x2b8] sm:$0xff] %v5508_v0 }
  0xd1   : > { %379 = vst [vmem:[#allocation2 + $0x2c0] sm:$0xff] %v5508_v0  ;;  %380 = vst [vmem:[#allocation2 + $0x2c8] sm:$0xff] %v5508_v0 }
  0xd2   : > { %381 = vst [vmem:[#allocation2 + $0x2d0] sm:$0xff] %v5508_v0  ;;  %382 = vst [vmem:[#allocation2 + $0x2d8] sm:$0xff] %v5508_v0 }
  0xd3   : > { %383 = vst [vmem:[#allocation2 + $0x2e0] sm:$0xff] %v5508_v0  ;;  %384 = vst [vmem:[#allocation2 + $0x2e8] sm:$0xff] %v5508_v0 }
  0xd4   : > { %385 = vst [vmem:[#allocation2 + $0x2f0] sm:$0xff] %v5508_v0  ;;  %386 = vst [vmem:[#allocation2 + $0x2f8] sm:$0xff] %v5508_v0 }
  0xd5   : > { %387 = vst [vmem:[#allocation2 + $0x300] sm:$0xff] %v5508_v0  ;;  %388 = vst [vmem:[#allocation2 + $0x308] sm:$0xff] %v5508_v0 }
  0xd6   : > { %389 = vst [vmem:[#allocation2 + $0x310] sm:$0xff] %v5508_v0  ;;  %390 = vst [vmem:[#allocation2 + $0x318] sm:$0xff] %v5508_v0 }
  0xd7   : > { %391 = vst [vmem:[#allocation2 + $0x320] sm:$0xff] %v5508_v0  ;;  %392 = vst [vmem:[#allocation2 + $0x328] sm:$0xff] %v5508_v0 }
  0xd8   : > { %393 = vst [vmem:[#allocation2 + $0x330] sm:$0xff] %v5508_v0  ;;  %394 = vst [vmem:[#allocation2 + $0x338] sm:$0xff] %v5508_v0 }
  0xd9   : > { %395 = vst [vmem:[#allocation2 + $0x340] sm:$0xff] %v5508_v0  ;;  %396 = vst [vmem:[#allocation2 + $0x348] sm:$0xff] %v5508_v0 }
  0xda   : > { %397 = vst [vmem:[#allocation2 + $0x350] sm:$0xff] %v5508_v0  ;;  %398 = vst [vmem:[#allocation2 + $0x358] sm:$0xff] %v5508_v0 }
  0xdb   : > { %399 = vst [vmem:[#allocation2 + $0x360] sm:$0xff] %v5508_v0  ;;  %400 = vst [vmem:[#allocation2 + $0x368] sm:$0xff] %v5508_v0 }
  0xdc   : > { %401 = vst [vmem:[#allocation2 + $0x370] sm:$0xff] %v5508_v0  ;;  %402 = vst [vmem:[#allocation2 + $0x378] sm:$0xff] %v5508_v0 }
  0xdd   : > { %403 = vst [vmem:[#allocation2 + $0x380] sm:$0xff] %v5508_v0  ;;  %404 = vst [vmem:[#allocation2 + $0x388] sm:$0xff] %v5508_v0 }
  0xde   : > { %405 = vst [vmem:[#allocation2 + $0x390] sm:$0xff] %v5508_v0  ;;  %406 = vst [vmem:[#allocation2 + $0x398] sm:$0xff] %v5508_v0 }
  0xdf   : > { %407 = vst [vmem:[#allocation2 + $0x3a0] sm:$0xff] %v5508_v0  ;;  %408 = vst [vmem:[#allocation2 + $0x3a8] sm:$0xff] %v5508_v0 }
  0xe0   : > { %409 = vst [vmem:[#allocation2 + $0x3b0] sm:$0xff] %v5508_v0  ;;  %410 = vst [vmem:[#allocation2 + $0x3b8] sm:$0xff] %v5508_v0 }
  0xe1   : > { %411 = vst [vmem:[#allocation2 + $0x3c0] sm:$0xff] %v5508_v0  ;;  %412 = vst [vmem:[#allocation2 + $0x3c8] sm:$0xff] %v5508_v0 }
  0xe2   : > { %413 = vst [vmem:[#allocation2 + $0x3d0] sm:$0xff] %v5508_v0  ;;  %414 = vst [vmem:[#allocation2 + $0x3d8] sm:$0xff] %v5508_v0 }
  0xe3   : > { %415 = vst [vmem:[#allocation2 + $0x3e0] sm:$0xff] %v5508_v0  ;;  %416 = vst [vmem:[#allocation2 + $0x3e8] sm:$0xff] %v5508_v0 }
  0xe4   : > { %417 = vst [vmem:[#allocation2 + $0x3f0] sm:$0xff] %v5508_v0  ;;  %418 = vst [vmem:[#allocation2 + $0x3f8] sm:$0xff] %v5508_v0 }
  0xe5 PF: > { %v804_v1 = vld [vmem:[%s5810_s13 + $0x8] sm:$0xff]  ;;  %v803_v6 = vld [vmem:[%s5810_s13] sm:$0xff]  ;;  %s7141_s4 = sld [smem:[#allocation17_spill]] }
  0xe6   : > { %v812_v2 = vld [vmem:[%s5810_s13 + $0x48] sm:$0xff]  ;;  %v811_v7 = vld [vmem:[%s5810_s13 + $0x40] sm:$0xff] }
  0xe7   : > { %v1060_v3 = vld [vmem:[%s5810_s13 + $0x808] sm:$0xff]  ;;  %v4214_v4 = vpack.c.bf16 %v812_v2, %v804_v1  ;;  %v4216_v9 = vpack.c.bf16 %v811_v7, %v803_v6  ;;  %v1059_v10 = vld [vmem:[%s5810_s13 + $0x800] sm:$0xff] }
  0xe8   : > { %v1068_v5 = vld [vmem:[%s5810_s13 + $0x848] sm:$0xff]  ;;  %v1067_v11 = vld [vmem:[%s5810_s13 + $0x840] sm:$0xff] }
  0xe9   : > { %v4470_v8 = vpack.c.bf16 %v1068_v5, %v1060_v3  ;;  %v820_v12 = vld [vmem:[%s5810_s13 + $0x88] sm:$0xff]  ;;  %4215 = vmatprep.subr.bf16.mxu0 %v4214_v4  ;;  %v4472_v13 = vpack.c.bf16 %v1067_v11, %v1059_v10  ;;  %v819_v19 = vld [vmem:[%s5810_s13 + $0x80] sm:$0xff] }
  0xea   : > { %v828_v14 = vld [vmem:[%s5810_s13 + $0xc8] sm:$0xff]  ;;  %4217 = vmatpush1.bf16.xpose.msra.mxu0 %v4216_v9  ;;  %v827_v20 = vld [vmem:[%s5810_s13 + $0xc0] sm:$0xff] }
  0xeb   : > { %v1076_v15 = vld [vmem:[%s5810_s13 + $0x888] sm:$0xff]  ;;  %4471 = vmatprep.subr.bf16.mxu1 %v4470_v8  ;;  %v4218_v17 = vpack.c.bf16 %v828_v14, %v820_v12  ;;  %v1075_v21 = vld [vmem:[%s5810_s13 + $0x880] sm:$0xff]  ;;  %v4220_v27 = vpack.c.bf16 %v827_v20, %v819_v19  ;;  %p4203_p12 = scmp.ne.s32.totalorder %s7141_s4, 1 }
  0xec   : > { %v1084_v16 = vld [vmem:[%s5810_s13 + $0x8c8] sm:$0xff]  ;;  %4473 = vmatpush1.bf16.xpose.msra.mxu1 %v4472_v13  ;;  %v1083_v22 = vld [vmem:[%s5810_s13 + $0x8c0] sm:$0xff] }
  0xed   : > { %v4474_v18 = vpack.c.bf16 %v1084_v16, %v1076_v15  ;;  %4219 = vmatprep.subr.bf16.mxu0 %v4218_v17  ;;  %v836_v23 = vld [vmem:[%s5810_s13 + $0x108] sm:$0xff]  ;;  %v4476_v28 = vpack.c.bf16 %v1083_v22, %v1075_v21  ;;  %v835_v31 = vld [vmem:[%s5810_s13 + $0x100] sm:$0xff] }
  0xee   : > { %v844_v24 = vld [vmem:[%s5810_s13 + $0x148] sm:$0xff]  ;;  %v843_v32 = vld [vmem:[%s5810_s13 + $0x140] sm:$0xff] }
  0xef   : > { %4475 = vmatprep.subr.bf16.mxu1 %v4474_v18  ;;  %v1092_v25 = vld [vmem:[%s5810_s13 + $0x908] sm:$0xff]  ;;  %v4222_v29 = vpack.c.bf16 %v844_v24, %v836_v23  ;;  %v1091_v33 = vld [vmem:[%s5810_s13 + $0x900] sm:$0xff]  ;;  %v4224_v39 = vpack.c.bf16 %v843_v32, %v835_v31 }
  0xf0   : > { %v1100_v26 = vld [vmem:[%s5810_s13 + $0x948] sm:$0xff]  ;;  %v1099_v34 = vld [vmem:[%s5810_s13 + $0x940] sm:$0xff] }
  0xf1   : > { %v4478_v30 = vpack.c.bf16 %v1100_v26, %v1092_v25  ;;  %v852_v35 = vld [vmem:[%s5810_s13 + $0x188] sm:$0xff]  ;;  %v4480_v40 = vpack.c.bf16 %v1099_v34, %v1091_v33  ;;  %v851_v43 = vld [vmem:[%s5810_s13 + $0x180] sm:$0xff] }
  0xf2   : > { %4221 = vmatpush1.bf16.xpose.msra.mxu0 %v4220_v27  ;;  %v860_v36 = vld [vmem:[%s5810_s13 + $0x1c8] sm:$0xff]  ;;  %v859_v44 = vld [vmem:[%s5810_s13 + $0x1c0] sm:$0xff] }
  0xf3   : > { %4223 = vmatprep.subr.bf16.mxu0 %v4222_v29  ;;  %v1108_v37 = vld [vmem:[%s5810_s13 + $0x988] sm:$0xff]  ;;  %v4226_v41 = vpack.c.bf16 %v860_v36, %v852_v35  ;;  %v1107_v45 = vld [vmem:[%s5810_s13 + $0x980] sm:$0xff]  ;;  %v4228_v51 = vpack.c.bf16 %v859_v44, %v851_v43 }
  0xf4   : > { %4477 = vmatpush1.bf16.xpose.msra.mxu1 %v4476_v28  ;;  %v1116_v38 = vld [vmem:[%s5810_s13 + $0x9c8] sm:$0xff]  ;;  %v1115_v46 = vld [vmem:[%s5810_s13 + $0x9c0] sm:$0xff] }
  0xf5   : > { %4479 = vmatprep.subr.bf16.mxu1 %v4478_v30  ;;  %v4482_v42 = vpack.c.bf16 %v1116_v38, %v1108_v37  ;;  %v868_v47 = vld [vmem:[%s5810_s13 + $0x208] sm:$0xff]  ;;  %v4484_v52 = vpack.c.bf16 %v1115_v46, %v1107_v45  ;;  %v867_v55 = vld [vmem:[%s5810_s13 + $0x200] sm:$0xff] }
  0xf6   : > { %v876_v48 = vld [vmem:[%s5810_s13 + $0x248] sm:$0xff]  ;;  %v875_v56 = vld [vmem:[%s5810_s13 + $0x240] sm:$0xff] }
  0xf7   : > { %v1124_v49 = vld [vmem:[%s5810_s13 + $0xa08] sm:$0xff]  ;;  %v4230_v53 = vpack.c.bf16 %v876_v48, %v868_v47  ;;  %v1123_v57 = vld [vmem:[%s5810_s13 + $0xa00] sm:$0xff]  ;;  %v4232_v63 = vpack.c.bf16 %v875_v56, %v867_v55 }
  0xf8   : > { %v1132_v50 = vld [vmem:[%s5810_s13 + $0xa48] sm:$0xff]  ;;  %v1131_v58 = vld [vmem:[%s5810_s13 + $0xa40] sm:$0xff] }
  0xf9   : > { %v4486_v54 = vpack.c.bf16 %v1132_v50, %v1124_v49  ;;  %v884_v59 = vld [vmem:[%s5810_s13 + $0x288] sm:$0xff]  ;;  %v4488_v0 = vpack.c.bf16 %v1131_v58, %v1123_v57  ;;  %v883_v3 = vld [vmem:[%s5810_s13 + $0x280] sm:$0xff] }
  0xfa   : > { %4225 = vmatpush1.bf16.xpose.msra.mxu0 %v4224_v39  ;;  %v892_v60 = vld [vmem:[%s5810_s13 + $0x2c8] sm:$0xff]  ;;  %v891_v4 = vld [vmem:[%s5810_s13 + $0x2c0] sm:$0xff] }
  0xfb   : > { %4227 = vmatprep.subr.bf16.mxu0 %v4226_v41  ;;  %v1140_v61 = vld [vmem:[%s5810_s13 + $0xa88] sm:$0xff]  ;;  %v4234_v1 = vpack.c.bf16 %v892_v60, %v884_v59  ;;  %v1139_v5 = vld [vmem:[%s5810_s13 + $0xa80] sm:$0xff]  ;;  %v4236_v11 = vpack.c.bf16 %v891_v4, %v883_v3 }
  0xfc   : > { %4481 = vmatpush1.bf16.xpose.msra.mxu1 %v4480_v40  ;;  %v1148_v62 = vld [vmem:[%s5810_s13 + $0xac8] sm:$0xff]  ;;  %v1147_v6 = vld [vmem:[%s5810_s13 + $0xac0] sm:$0xff] }
  0xfd   : > { %4483 = vmatprep.subr.bf16.mxu1 %v4482_v42  ;;  %v4490_v2 = vpack.c.bf16 %v1148_v62, %v1140_v61  ;;  %v900_v7 = vld [vmem:[%s5810_s13 + $0x308] sm:$0xff]  ;;  %v4492_v12 = vpack.c.bf16 %v1147_v6, %v1139_v5  ;;  %v899_v16 = vld [vmem:[%s5810_s13 + $0x300] sm:$0xff] }
  0xfe   : > { %v908_v8 = vld [vmem:[%s5810_s13 + $0x348] sm:$0xff]  ;;  %v907_v17 = vld [vmem:[%s5810_s13 + $0x340] sm:$0xff] }
  0xff   : > { %v1156_v9 = vld [vmem:[%s5810_s13 + $0xb08] sm:$0xff]  ;;  %v4238_v13 = vpack.c.bf16 %v908_v8, %v900_v7  ;;  %v1155_v18 = vld [vmem:[%s5810_s13 + $0xb00] sm:$0xff]  ;;  %v4240_v24 = vpack.c.bf16 %v907_v17, %v899_v16 }
 0x100   : > { %v1164_v10 = vld [vmem:[%s5810_s13 + $0xb48] sm:$0xff]  ;;  %v1163_v19 = vld [vmem:[%s5810_s13 + $0xb40] sm:$0xff] }
 0x101   : > { %v4494_v14 = vpack.c.bf16 %v1164_v10, %v1156_v9  ;;  %v548_v15 = vld [vmem:[%s5802_s29 + $0x8] sm:$0xff]  ;;  %v4496_v25 = vpack.c.bf16 %v1163_v19, %v1155_v18  ;;  %v915_v28 = vld [vmem:[%s5810_s13 + $0x380] sm:$0xff] }
 0x102   : > { %4229 = vmatpush1.bf16.xpose.msra.mxu0 %v4228_v51  ;;  %1379 = vmatprep.mubr.f32.mxu0 %v548_v15  ;;  %v916_v20 = vld [vmem:[%s5810_s13 + $0x388] sm:$0xff]  ;;  %v923_v29 = vld [vmem:[%s5810_s13 + $0x3c0] sm:$0xff] }
 0x103   : > { %4231 = vmatprep.subr.bf16.mxu0 %v4230_v53  ;;  %2407 = vmatprep.mubr.f32.mxu1 %v548_v15  ;;  %v924_v21 = vld [vmem:[%s5810_s13 + $0x3c8] sm:$0xff]  ;;  %v1171_v30 = vld [vmem:[%s5810_s13 + $0xb80] sm:$0xff]  ;;  %v4244_v36 = vpack.c.bf16 %v923_v29, %v915_v28 }
 0x104   : > { %4485 = vmatpush1.bf16.xpose.msra.mxu1 %v4484_v52  ;;  %v1172_v22 = vld [vmem:[%s5810_s13 + $0xb88] sm:$0xff]  ;;  %v4242_v26 = vpack.c.bf16 %v924_v21, %v916_v20  ;;  %v1179_v31 = vld [vmem:[%s5810_s13 + $0xbc0] sm:$0xff] }
 0x105   : > { %4487 = vmatprep.subr.bf16.mxu1 %v4486_v54  ;;  %v1180_v23 = vld [vmem:[%s5810_s13 + $0xbc8] sm:$0xff]  ;;  %v4500_v37 = vpack.c.bf16 %v1179_v31, %v1171_v30  ;;  %v931_v40 = vld [vmem:[%s5810_s13 + $0x400] sm:$0xff] }
 0x106   : > { %v4498_v27 = vpack.c.bf16 %v1180_v23, %v1172_v22  ;;  %v932_v32 = vld [vmem:[%s5810_s13 + $0x408] sm:$0xff]  ;;  %v939_v41 = vld [vmem:[%s5810_s13 + $0x440] sm:$0xff] }
 0x107   : > { %v940_v33 = vld [vmem:[%s5810_s13 + $0x448] sm:$0xff]  ;;  %v1187_v42 = vld [vmem:[%s5810_s13 + $0xc00] sm:$0xff]  ;;  %v4248_v48 = vpack.c.bf16 %v939_v41, %v931_v40 }
 0x108   : > { %v1188_v34 = vld [vmem:[%s5810_s13 + $0xc08] sm:$0xff]  ;;  %v4246_v38 = vpack.c.bf16 %v940_v33, %v932_v32  ;;  %v1195_v43 = vld [vmem:[%s5810_s13 + $0xc40] sm:$0xff] }
 0x109   : > { %v1196_v35 = vld [vmem:[%s5810_s13 + $0xc48] sm:$0xff]  ;;  %v4504_v49 = vpack.c.bf16 %v1195_v43, %v1187_v42  ;;  %v947_v52 = vld [vmem:[%s5810_s13 + $0x480] sm:$0xff] }
 0x10a   : > { %4233 = vmatpush1.bf16.xpose.msra.mxu0 %v4232_v63  ;;  %v4502_v39 = vpack.c.bf16 %v1196_v35, %v1188_v34  ;;  %v948_v44 = vld [vmem:[%s5810_s13 + $0x488] sm:$0xff]  ;;  %v955_v53 = vld [vmem:[%s5810_s13 + $0x4c0] sm:$0xff] }
 0x10b   : > { %4235 = vmatprep.subr.bf16.mxu0 %v4234_v1  ;;  %v956_v45 = vld [vmem:[%s5810_s13 + $0x4c8] sm:$0xff]  ;;  %v1203_v54 = vld [vmem:[%s5810_s13 + $0xc80] sm:$0xff]  ;;  %v4252_v60 = vpack.c.bf16 %v955_v53, %v947_v52 }
 0x10c   : > { %4489 = vmatpush1.bf16.xpose.msra.mxu1 %v4488_v0  ;;  %v1204_v46 = vld [vmem:[%s5810_s13 + $0xc88] sm:$0xff]  ;;  %v4250_v50 = vpack.c.bf16 %v956_v45, %v948_v44  ;;  %v1211_v55 = vld [vmem:[%s5810_s13 + $0xcc0] sm:$0xff] }
 0x10d   : > { %4491 = vmatprep.subr.bf16.mxu1 %v4490_v2  ;;  %v1212_v47 = vld [vmem:[%s5810_s13 + $0xcc8] sm:$0xff]  ;;  %v4508_v61 = vpack.c.bf16 %v1211_v55, %v1203_v54  ;;  %v963_v0 = vld [vmem:[%s5810_s13 + $0x500] sm:$0xff] }
 0x10e   : > { %v4506_v51 = vpack.c.bf16 %v1212_v47, %v1204_v46  ;;  %v964_v56 = vld [vmem:[%s5810_s13 + $0x508] sm:$0xff]  ;;  %v971_v1 = vld [vmem:[%s5810_s13 + $0x540] sm:$0xff] }
 0x10f   : > { %v972_v57 = vld [vmem:[%s5810_s13 + $0x548] sm:$0xff]  ;;  %v1219_v2 = vld [vmem:[%s5810_s13 + $0xd00] sm:$0xff]  ;;  %v4256_v8 = vpack.c.bf16 %v971_v1, %v963_v0  ;;  %v806_v0 = vld [vmem:[%s5810_s13 + $0x18] sm:$0xff] }
 0x110   : > { %v1220_v58 = vld [vmem:[%s5810_s13 + $0xd08] sm:$0xff]  ;;  %v4254_v62 = vpack.c.bf16 %v972_v57, %v964_v56  ;;  %v1227_v3 = vld [vmem:[%s5810_s13 + $0xd40] sm:$0xff]  ;;  %v814_v1 = vld [vmem:[%s5810_s13 + $0x58] sm:$0xff] }
 0x111   : > { %v1228_v59 = vld [vmem:[%s5810_s13 + $0xd48] sm:$0xff]  ;;  %v4512_v9 = vpack.c.bf16 %v1227_v3, %v1219_v2  ;;  %v1243_v15 = vld [vmem:[%s5810_s13 + $0xdc0] sm:$0xff]  ;;  %v1062_v2 = vld [vmem:[%s5810_s13 + $0x818] sm:$0xff] }
 0x112   : > { %4237 = vmatpush1.bf16.xpose.msra.mxu0 %v4236_v11  ;;  %v4510_v63 = vpack.c.bf16 %v1228_v59, %v1220_v58  ;;  %v980_v4 = vld [vmem:[%s5810_s13 + $0x588] sm:$0xff]  ;;  %v1070_v3 = vld [vmem:[%s5810_s13 + $0x858] sm:$0xff] }
 0x113   : > { %4239 = vmatprep.subr.bf16.mxu0 %v4238_v13  ;;  %v988_v5 = vld [vmem:[%s5810_s13 + $0x5c8] sm:$0xff]  ;;  %v987_v13 = vld [vmem:[%s5810_s13 + $0x5c0] sm:$0xff] }
 0x114   : > { %4493 = vmatpush1.bf16.xpose.msra.mxu1 %v4492_v12  ;;  %v1236_v6 = vld [vmem:[%s5810_s13 + $0xd88] sm:$0xff]  ;;  %v4258_v10 = vpack.c.bf16 %v988_v5, %v980_v4  ;;  %v979_v12 = vld [vmem:[%s5810_s13 + $0x580] sm:$0xff] }
 0x115   : > { %4495 = vmatprep.subr.bf16.mxu1 %v4494_v14  ;;  %v1244_v7 = vld [vmem:[%s5810_s13 + $0xdc8] sm:$0xff]  ;;  %v1235_v14 = vld [vmem:[%s5810_s13 + $0xd80] sm:$0xff]  ;;  %v4260_v20 = vpack.c.bf16 %v987_v13, %v979_v12  ;;  %v822_v12 = vld [vmem:[%s5810_s13 + $0x98] sm:$0xff] }
 0x116   : > { %v4514_v11 = vpack.c.bf16 %v1244_v7, %v1236_v6  ;;  %v996_v16 = vld [vmem:[%s5810_s13 + $0x608] sm:$0xff]  ;;  %v4516_v21 = vpack.c.bf16 %v1243_v15, %v1235_v14  ;;  %v4278_v6 = vpack.c.bf16 %v814_v1, %v806_v0  ;;  %v4534_v7 = vpack.c.bf16 %v1070_v3, %v1062_v2  ;;  %v830_v13 = vld [vmem:[%s5810_s13 + $0xd8] sm:$0xff]  ;;  %v547_v14 = vld [vmem:[%s5802_s29] sm:$0xff] }
 0x117   : > { %v1004_v17 = vld [vmem:[%s5810_s13 + $0x648] sm:$0xff]  ;;  %v1126_v0 = vld [vmem:[%s5810_s13 + $0xa18] sm:$0xff] }
 0x118   : > { %v1252_v18 = vld [vmem:[%s5810_s13 + $0xe08] sm:$0xff]  ;;  %v4262_v22 = vpack.c.bf16 %v1004_v17, %v996_v16  ;;  %v1078_v16 = vld [vmem:[%s5810_s13 + $0x898] sm:$0xff] }
 0x119   : > { %v1260_v19 = vld [vmem:[%s5810_s13 + $0xe48] sm:$0xff]  ;;  %v1086_v17 = vld [vmem:[%s5810_s13 + $0x8d8] sm:$0xff] }
 0x11a   : > { %4241 = vmatpush1.bf16.xpose.msra.mxu0 %v4240_v24  ;;  %v4518_v23 = vpack.c.bf16 %v1260_v19, %v1252_v18  ;;  %v995_v24 = vld [vmem:[%s5810_s13 + $0x600] sm:$0xff]  ;;  %v1012_v28 = vld [vmem:[%s5810_s13 + $0x688] sm:$0xff]  ;;  %v1134_v1 = vld [vmem:[%s5810_s13 + $0xa58] sm:$0xff] }
 0x11b   : > { %4243 = vmatprep.subr.bf16.mxu0 %v4242_v26  ;;  %v1251_v26 = vld [vmem:[%s5810_s13 + $0xe00] sm:$0xff]  ;;  %v1020_v29 = vld [vmem:[%s5810_s13 + $0x6c8] sm:$0xff] }
 0x11c   : > { %4497 = vmatpush1.bf16.xpose.msra.mxu1 %v4496_v25  ;;  %v1003_v25 = vld [vmem:[%s5810_s13 + $0x640] sm:$0xff]  ;;  %v1268_v30 = vld [vmem:[%s5810_s13 + $0xe88] sm:$0xff]  ;;  %v4266_v34 = vpack.c.bf16 %v1020_v29, %v1012_v28  ;;  %v838_v28 = vld [vmem:[%s5810_s13 + $0x118] sm:$0xff] }
 0x11d   : > { %4499 = vmatprep.subr.bf16.mxu1 %v4498_v27  ;;  %v1259_v27 = vld [vmem:[%s5810_s13 + $0xe40] sm:$0xff]  ;;  %v1276_v31 = vld [vmem:[%s5810_s13 + $0xec8] sm:$0xff]  ;;  %v4264_v32 = vpack.c.bf16 %v1003_v25, %v995_v24  ;;  %v821_v24 = vld [vmem:[%s5810_s13 + $0x90] sm:$0xff] }
 0x11e   : > { %v4520_v33 = vpack.c.bf16 %v1259_v27, %v1251_v26  ;;  %v4522_v35 = vpack.c.bf16 %v1276_v31, %v1268_v30  ;;  %v1028_v40 = vld [vmem:[%s5810_s13 + $0x708] sm:$0xff]  ;;  %v829_v25 = vld [vmem:[%s5810_s13 + $0xd0] sm:$0xff]  ;;  %v846_v29 = vld [vmem:[%s5810_s13 + $0x158] sm:$0xff] }
 0x11f   : > { %v1036_v41 = vld [vmem:[%s5810_s13 + $0x748] sm:$0xff]  ;;  %v1077_v26 = vld [vmem:[%s5810_s13 + $0x890] sm:$0xff]  ;;  %v563_v30 = vld [vmem:[%s5802_s29 + $0x80] sm:$0xff]  ;;  %v4284_v31 = vpack.c.bf16 %v829_v25, %v821_v24 }
 0x120   : > { %v1284_v42 = vld [vmem:[%s5810_s13 + $0xf08] sm:$0xff]  ;;  %v4270_v46 = vpack.c.bf16 %v1036_v41, %v1028_v40  ;;  %v1085_v27 = vld [vmem:[%s5810_s13 + $0x8d0] sm:$0xff] }
 0x121   : > { %v1292_v43 = vld [vmem:[%s5810_s13 + $0xf48] sm:$0xff]  ;;  %v837_v40 = vld [vmem:[%s5810_s13 + $0x110] sm:$0xff] }
 0x122   : > { %4245 = vmatpush1.bf16.xpose.msra.mxu0 %v4244_v36  ;;  %v1011_v36 = vld [vmem:[%s5810_s13 + $0x680] sm:$0xff]  ;;  %v4526_v47 = vpack.c.bf16 %v1292_v43, %v1284_v42  ;;  %v1044_v52 = vld [vmem:[%s5810_s13 + $0x788] sm:$0xff]  ;;  %v845_v41 = vld [vmem:[%s5810_s13 + $0x150] sm:$0xff] }
 0x123   : > { %4247 = vmatprep.subr.bf16.mxu0 %v4246_v38  ;;  %v1267_v38 = vld [vmem:[%s5810_s13 + $0xe80] sm:$0xff]  ;;  %v1052_v53 = vld [vmem:[%s5810_s13 + $0x7c8] sm:$0xff]  ;;  %v1093_v42 = vld [vmem:[%s5810_s13 + $0x910] sm:$0xff] }
 0x124   : > { %4501 = vmatpush1.bf16.xpose.msra.mxu1 %v4500_v37  ;;  %v1019_v37 = vld [vmem:[%s5810_s13 + $0x6c0] sm:$0xff]  ;;  %v1300_v54 = vld [vmem:[%s5810_s13 + $0xf88] sm:$0xff]  ;;  %v4274_v58 = vpack.c.bf16 %v1052_v53, %v1044_v52  ;;  %v1101_v43 = vld [vmem:[%s5810_s13 + $0x950] sm:$0xff] }
 0x125   : > { %4503 = vmatprep.subr.bf16.mxu1 %v4502_v39  ;;  %v1275_v39 = vld [vmem:[%s5810_s13 + $0xec0] sm:$0xff]  ;;  %v4268_v44 = vpack.c.bf16 %v1019_v37, %v1011_v36  ;;  %v1308_v55 = vld [vmem:[%s5810_s13 + $0xfc8] sm:$0xff]  ;;  %v4286_v36 = vpack.c.bf16 %v846_v29, %v838_v28  ;;  %v885_v24 = vld [vmem:[%s5810_s13 + $0x290] sm:$0xff] }
 0x126   : > { %v4524_v45 = vpack.c.bf16 %v1275_v39, %v1267_v38  ;;  %v4530_v59 = vpack.c.bf16 %v1308_v55, %v1300_v54  ;;  %v556_v19 = vld [vmem:[%s5802_s29 + $0x48] sm:$0xff]  ;;  %v571_v38 = vld [vmem:[%s5802_s29 + $0xc0] sm:$0xff]  ;;  %v893_v25 = vld [vmem:[%s5810_s13 + $0x2d0] sm:$0xff] }
 0x127   : > { %v580_v39 = vld [vmem:[%s5802_s29 + $0x108] sm:$0xff]  ;;  %v587_v54 = vld [vmem:[%s5802_s29 + $0x140] sm:$0xff]  ;;  %v902_v28 = vld [vmem:[%s5810_s13 + $0x318] sm:$0xff] }
 0x128   : > { %v596_v55 = vld [vmem:[%s5802_s29 + $0x188] sm:$0xff]  ;;  %v910_v29 = vld [vmem:[%s5810_s13 + $0x358] sm:$0xff] }
 0x129   : > { %v604_v3 = vld [vmem:[%s5802_s29 + $0x1c8] sm:$0xff] }
 0x12a   : > { %4249 = vmatpush1.bf16.xpose.msra.mxu0 %v4248_v48  ;;  %v1027_v48 = vld [vmem:[%s5810_s13 + $0x700] sm:$0xff] }
 0x12b   : > { %4251 = vmatprep.subr.bf16.mxu0 %v4250_v50  ;;  %v1283_v50 = vld [vmem:[%s5810_s13 + $0xf00] sm:$0xff] }
 0x12c   : > { %4505 = vmatpush1.bf16.xpose.msra.mxu1 %v4504_v49  ;;  %v1035_v49 = vld [vmem:[%s5810_s13 + $0x740] sm:$0xff] }
 0x12d   : > { %4507 = vmatprep.subr.bf16.mxu1 %v4506_v51  ;;  %v1291_v51 = vld [vmem:[%s5810_s13 + $0xf40] sm:$0xff]  ;;  %v4272_v56 = vpack.c.bf16 %v1035_v49, %v1027_v48  ;;  %v1110_v48 = vld [vmem:[%s5810_s13 + $0x998] sm:$0xff] }
 0x12e   : > { %v4528_v57 = vpack.c.bf16 %v1291_v51, %v1283_v50  ;;  %v1118_v49 = vld [vmem:[%s5810_s13 + $0x9d8] sm:$0xff]  ;;  %v4544_v50 = vpack.c.bf16 %v1101_v43, %v1093_v42  ;;  %v588_v51 = vld [vmem:[%s5802_s29 + $0x148] sm:$0xff]  ;;  %v1157_v42 = vld [vmem:[%s5810_s13 + $0xb10] sm:$0xff] }
 0x12f   : > { %v4546_v53 = vpack.c.bf16 %v1118_v49, %v1110_v48  ;;  %v1165_v43 = vld [vmem:[%s5810_s13 + $0xb50] sm:$0xff]  ;;  %v1174_v48 = vld [vmem:[%s5810_s13 + $0xb98] sm:$0xff] }
 0x130   : > { %v1182_v49 = vld [vmem:[%s5810_s13 + $0xbd8] sm:$0xff] }
 0x132   : > { %4253 = vmatpush1.bf16.xpose.msra.mxu0 %v4252_v60  ;;  %v1043_v60 = vld [vmem:[%s5810_s13 + $0x780] sm:$0xff] }
 0x133   : > { %4255 = vmatprep.subr.bf16.mxu0 %v4254_v62  ;;  %v1299_v62 = vld [vmem:[%s5810_s13 + $0xf80] sm:$0xff] }
 0x134   : > { %4509 = vmatpush1.bf16.xpose.msra.mxu1 %v4508_v61  ;;  %v1051_v61 = vld [vmem:[%s5810_s13 + $0x7c0] sm:$0xff] }
 0x135   : > { %4511 = vmatprep.subr.bf16.mxu1 %v4510_v63  ;;  %v1307_v63 = vld [vmem:[%s5810_s13 + $0xfc0] sm:$0xff]  ;;  %v4276_v4 = vpack.c.bf16 %v1051_v61, %v1043_v60  ;;  %v870_v60 = vld [vmem:[%s5810_s13 + $0x218] sm:$0xff] }
 0x136   : > { %v4532_v5 = vpack.c.bf16 %v1307_v63, %v1299_v62  ;;  %v878_v61 = vld [vmem:[%s5810_s13 + $0x258] sm:$0xff]  ;;  %v595_v62 = vld [vmem:[%s5802_s29 + $0x180] sm:$0xff] }
 0x13a   : > { %4257 = vmatpush1.bf16.xpose.msra.mxu0 %v4256_v8  ;;  %v805_v8 = vld [vmem:[%s5810_s13 + $0x10] sm:$0xff] }
 0x13b   : > { %4259 = vmatprep.subr.bf16.mxu0 %v4258_v10  ;;  %v1061_v10 = vld [vmem:[%s5810_s13 + $0x810] sm:$0xff] }
 0x13c   : > { %4513 = vmatpush1.bf16.xpose.msra.mxu1 %v4512_v9  ;;  %v813_v9 = vld [vmem:[%s5810_s13 + $0x50] sm:$0xff] }
 0x13d   : > { %4515 = vmatprep.subr.bf16.mxu1 %v4514_v11  ;;  %v1069_v11 = vld [vmem:[%s5810_s13 + $0x850] sm:$0xff]  ;;  %v4280_v15 = vpack.c.bf16 %v813_v9, %v805_v8 }
 0x13e   : > { %v4536_v18 = vpack.c.bf16 %v1069_v11, %v1061_v10  ;;  %v869_v8 = vld [vmem:[%s5810_s13 + $0x210] sm:$0xff] }
 0x13f   : > { %v877_v9 = vld [vmem:[%s5810_s13 + $0x250] sm:$0xff] }
 0x140   : > { %v1125_v10 = vld [vmem:[%s5810_s13 + $0xa10] sm:$0xff] }
 0x141   : > { %v1133_v11 = vld [vmem:[%s5810_s13 + $0xa50] sm:$0xff] }
 0x142   : > { %4261 = vmatpush1.bf16.xpose.msra.mxu0 %v4260_v20  ;;  %v4282_v20 = vpack.c.bf16 %v830_v13, %v822_v12  ;;  %v886_v12 = vld [vmem:[%s5810_s13 + $0x298] sm:$0xff] }
 0x143   : > { %4263 = vmatprep.subr.bf16.mxu0 %v4262_v22  ;;  %v555_v22 = vld [vmem:[%s5802_s29 + $0x40] sm:$0xff]  ;;  %v894_v13 = vld [vmem:[%s5810_s13 + $0x2d8] sm:$0xff] }
 0x144   : > { %4517 = vmatpush1.bf16.xpose.msra.mxu1 %v4516_v21  ;;  %v4538_v21 = vpack.c.bf16 %v1086_v17, %v1078_v16  ;;  %v1142_v16 = vld [vmem:[%s5810_s13 + $0xa98] sm:$0xff] }
 0x145   : > { %4519 = vmatprep.subr.bf16.mxu1 %v4518_v23  ;;  %v564_v23 = vld [vmem:[%s5802_s29 + $0x88] sm:$0xff]  ;;  %v1150_v17 = vld [vmem:[%s5810_s13 + $0xad8] sm:$0xff] }
 0x14a   : > { %4265 = vmatpush1.bf16.xpose.msra.mxu0 %v4264_v32  ;;  %v1094_v32 = vld [vmem:[%s5810_s13 + $0x918] sm:$0xff] }
 0x14b   : > { %4267 = vmatprep.subr.bf16.mxu0 %v4266_v34  ;;  %v4540_v34 = vpack.c.bf16 %v1085_v27, %v1077_v26  ;;  %v1141_v26 = vld [vmem:[%s5810_s13 + $0xa90] sm:$0xff] }
 0x14c   : > { %4521 = vmatpush1.bf16.xpose.msra.mxu1 %v4520_v33  ;;  %v1102_v33 = vld [vmem:[%s5810_s13 + $0x958] sm:$0xff]  ;;  %v1149_v27 = vld [vmem:[%s5810_s13 + $0xad0] sm:$0xff] }
 0x14d   : > { %4523 = vmatprep.subr.bf16.mxu1 %v4522_v35  ;;  %v572_v35 = vld [vmem:[%s5802_s29 + $0xc8] sm:$0xff]  ;;  %v4542_v37 = vpack.c.bf16 %v1102_v33, %v1094_v32  ;;  %v1158_v32 = vld [vmem:[%s5810_s13 + $0xb18] sm:$0xff] }
 0x14e   : > { %v1166_v33 = vld [vmem:[%s5810_s13 + $0xb58] sm:$0xff] }
 0x152   : > { %4269 = vmatpush1.bf16.xpose.msra.mxu0 %v4268_v44  ;;  %v854_v44 = vld [vmem:[%s5810_s13 + $0x198] sm:$0xff] }
 0x153   : > { %4271 = vmatprep.subr.bf16.mxu0 %v4270_v46  ;;  %v579_v46 = vld [vmem:[%s5802_s29 + $0x100] sm:$0xff] }
 0x154   : > { %4525 = vmatpush1.bf16.xpose.msra.mxu1 %v4524_v45  ;;  %v862_v45 = vld [vmem:[%s5810_s13 + $0x1d8] sm:$0xff] }
 0x155   : > { %4527 = vmatprep.subr.bf16.mxu1 %v4526_v47  ;;  %v4288_v47 = vpack.c.bf16 %v845_v41, %v837_v40  ;;  %v4290_v52 = vpack.c.bf16 %v862_v45, %v854_v44  ;;  %v901_v40 = vld [vmem:[%s5810_s13 + $0x310] sm:$0xff]  ;;  %v918_v44 = vld [vmem:[%s5810_s13 + $0x398] sm:$0xff] }
 0x156   : > { %v909_v41 = vld [vmem:[%s5810_s13 + $0x350] sm:$0xff]  ;;  %v926_v45 = vld [vmem:[%s5810_s13 + $0x3d8] sm:$0xff] }
 0x15a   : > { %4273 = vmatpush1.bf16.xpose.msra.mxu0 %v4272_v56  ;;  %v853_v56 = vld [vmem:[%s5810_s13 + $0x190] sm:$0xff] }
 0x15b   : > { %4275 = vmatprep.subr.bf16.mxu0 %v4274_v58  ;;  %v1109_v58 = vld [vmem:[%s5810_s13 + $0x990] sm:$0xff] }
 0x15c   : > { %4529 = vmatpush1.bf16.xpose.msra.mxu1 %v4528_v57  ;;  %v861_v57 = vld [vmem:[%s5810_s13 + $0x1d0] sm:$0xff] }
 0x15d   : > { %4531 = vmatprep.subr.bf16.mxu1 %v4530_v59  ;;  %v1117_v59 = vld [vmem:[%s5810_s13 + $0x9d0] sm:$0xff]  ;;  %v4292_v63 = vpack.c.bf16 %v861_v57, %v853_v56 }
 0x15e   : > { %v4548_v2 = vpack.c.bf16 %v1117_v59, %v1109_v58  ;;  %v917_v56 = vld [vmem:[%s5810_s13 + $0x390] sm:$0xff] }
 0x15f   : > { %v925_v57 = vld [vmem:[%s5810_s13 + $0x3d0] sm:$0xff] }
 0x160   : > { %v1173_v58 = vld [vmem:[%s5810_s13 + $0xb90] sm:$0xff] }
 0x161   : > { %v1181_v59 = vld [vmem:[%s5810_s13 + $0xbd0] sm:$0xff] }
 0x162   : > { %4277 = vmatpush1.bf16.xpose.msra.mxu0 %v4276_v4  ;;  %v4294_v4 = vpack.c.bf16 %v878_v61, %v870_v60  ;;  %v934_v60 = vld [vmem:[%s5810_s13 + $0x418] sm:$0xff] }
 0x163   : > { %4279 = vmatprep.subr.bf16.mxu0 %v4278_v6  ;;  %v603_v6 = vld [vmem:[%s5802_s29 + $0x1c0] sm:$0xff]  ;;  %v942_v61 = vld [vmem:[%s5810_s13 + $0x458] sm:$0xff] }
 0x164   : > { %4533 = vmatpush1.bf16.xpose.msra.mxu1 %v4532_v5  ;;  %v4550_v5 = vpack.c.bf16 %v1134_v1, %v1126_v0  ;;  %v1190_v0 = vld [vmem:[%s5810_s13 + $0xc18] sm:$0xff] }
 0x165   : > { %4535 = vmatprep.subr.bf16.mxu1 %v4534_v7  ;;  %v612_v7 = vld [vmem:[%s5802_s29 + $0x208] sm:$0xff]  ;;  %v1198_v1 = vld [vmem:[%s5810_s13 + $0xc58] sm:$0xff] }
 0x169   : > { %1380 = vmatmul.mubr.f32.vlgmr.msra.gmra.mrb[0].mxu0 %v547_v14 }
 0x16a   : > { %4281 = vmatpush1.bf16.xpose.msra.mxu0 %v4280_v15  ;;  %1385 = vmatprep.mubr.f32.mxu0 %v556_v19  ;;  %v4296_v15 = vpack.c.bf16 %v877_v9, %v869_v8  ;;  %v933_v8 = vld [vmem:[%s5810_s13 + $0x410] sm:$0xff] }
 0x16b   : > { %2408 = vmatmul.mubr.f32.vlgmr.msra.gmra.mrb[0].mxu1 %v547_v14  ;;  %4283 = vmatprep.subr.bf16.mxu0 %v4282_v20  ;;  %v611_v14 = vld [vmem:[%s5802_s29 + $0x200] sm:$0xff]  ;;  %v4298_v20 = vpack.c.bf16 %v894_v13, %v886_v12  ;;  %v941_v9 = vld [vmem:[%s5810_s13 + $0x450] sm:$0xff]  ;;  %v950_v12 = vld [vmem:[%s5810_s13 + $0x498] sm:$0xff] }
 0x16c   : > { %4537 = vmatpush1.bf16.xpose.msra.mxu1 %v4536_v18  ;;  %2413 = vmatprep.mubr.f32.mxu1 %v556_v19  ;;  %v4552_v18 = vpack.c.bf16 %v1133_v11, %v1125_v10  ;;  %v620_v19 = vld [vmem:[%s5802_s29 + $0x248] sm:$0xff]  ;;  %v1189_v10 = vld [vmem:[%s5810_s13 + $0xc10] sm:$0xff]  ;;  %v958_v13 = vld [vmem:[%s5810_s13 + $0x4d8] sm:$0xff] }
 0x16d   : > { %1386 = vmatmul.mubr.f32.gmra.mrb[2].mxu0 %v555_v22  ;;  %4539 = vmatprep.subr.bf16.mxu1 %v4538_v21  ;;  %v4554_v21 = vpack.c.bf16 %v1150_v17, %v1142_v16  ;;  %v1197_v11 = vld [vmem:[%s5810_s13 + $0xc50] sm:$0xff]  ;;  %v1206_v16 = vld [vmem:[%s5810_s13 + $0xc98] sm:$0xff] }
 0x16e   : > { %1391 = vmatprep.mubr.f32.mxu0 %v564_v23  ;;  %v1214_v17 = vld [vmem:[%s5810_s13 + $0xcd8] sm:$0xff] }
 0x16f   : > { %2414 = vmatmul.mubr.f32.gmra.mrb[2].mxu1 %v555_v22  ;;  %v619_v22 = vld [vmem:[%s5802_s29 + $0x240] sm:$0xff] }
 0x170   : > { %2419 = vmatprep.mubr.f32.mxu1 %v564_v23  ;;  %v628_v23 = vld [vmem:[%s5802_s29 + $0x288] sm:$0xff] }
 0x171   : > { %1392 = vmatmul.mubr.f32.gmra.mrb[4].mxu0 %v563_v30 }
 0x172   : > { %4285 = vmatpush1.bf16.xpose.msra.mxu0 %v4284_v31  ;;  %1397 = vmatprep.mubr.f32.mxu0 %v572_v35  ;;  %v4300_v31 = vpack.c.bf16 %v893_v25, %v885_v24  ;;  %v949_v24 = vld [vmem:[%s5810_s13 + $0x490] sm:$0xff] }
 0x173   : > { %2420 = vmatmul.mubr.f32.gmra.mrb[4].mxu1 %v563_v30  ;;  %4287 = vmatprep.subr.bf16.mxu0 %v4286_v36  ;;  %v627_v30 = vld [vmem:[%s5802_s29 + $0x280] sm:$0xff]  ;;  %v4302_v36 = vpack.c.bf16 %v910_v29, %v902_v28  ;;  %v957_v25 = vld [vmem:[%s5810_s13 + $0x4d0] sm:$0xff]  ;;  %v966_v28 = vld [vmem:[%s5810_s13 + $0x518] sm:$0xff] }
 0x174   : > { %4541 = vmatpush1.bf16.xpose.msra.mxu1 %v4540_v34  ;;  %2425 = vmatprep.mubr.f32.mxu1 %v572_v35  ;;  %v4556_v34 = vpack.c.bf16 %v1149_v27, %v1141_v26  ;;  %v636_v35 = vld [vmem:[%s5802_s29 + $0x2c8] sm:$0xff]  ;;  %v1205_v26 = vld [vmem:[%s5810_s13 + $0xc90] sm:$0xff]  ;;  %v974_v29 = vld [vmem:[%s5810_s13 + $0x558] sm:$0xff] }
 0x175   : > { %1398 = vmatmul.mubr.f32.gmra.mrb[6].mxu0 %v571_v38  ;;  %4543 = vmatprep.subr.bf16.mxu1 %v4542_v37  ;;  %v4558_v37 = vpack.c.bf16 %v1166_v33, %v1158_v32  ;;  %v1213_v27 = vld [vmem:[%s5810_s13 + $0xcd0] sm:$0xff]  ;;  %v1222_v32 = vld [vmem:[%s5810_s13 + $0xd18] sm:$0xff] }
 0x176   : > { %1403 = vmatprep.mubr.f32.mxu0 %v580_v39  ;;  %v1230_v33 = vld [vmem:[%s5810_s13 + $0xd58] sm:$0xff] }
 0x177   : > { %2426 = vmatmul.mubr.f32.gmra.mrb[6].mxu1 %v571_v38  ;;  %v635_v38 = vld [vmem:[%s5802_s29 + $0x2c0] sm:$0xff] }
 0x178   : > { %2431 = vmatprep.mubr.f32.mxu1 %v580_v39  ;;  %v644_v39 = vld [vmem:[%s5802_s29 + $0x308] sm:$0xff] }
 0x179   : > { %1404 = vmatmul.mubr.f32.gmra.mrb[8].mxu0 %v579_v46 }
 0x17a   : > { %4289 = vmatpush1.bf16.xpose.msra.mxu0 %v4288_v47  ;;  %1409 = vmatprep.mubr.f32.mxu0 %v588_v51  ;;  %v4304_v47 = vpack.c.bf16 %v909_v41, %v901_v40  ;;  %v965_v40 = vld [vmem:[%s5810_s13 + $0x510] sm:$0xff] }
 0x17b   : > { %2432 = vmatmul.mubr.f32.gmra.mrb[8].mxu1 %v579_v46  ;;  %4291 = vmatprep.subr.bf16.mxu0 %v4290_v52  ;;  %v643_v46 = vld [vmem:[%s5802_s29 + $0x300] sm:$0xff]  ;;  %v4306_v52 = vpack.c.bf16 %v926_v45, %v918_v44  ;;  %v973_v41 = vld [vmem:[%s5810_s13 + $0x550] sm:$0xff]  ;;  %v982_v44 = vld [vmem:[%s5810_s13 + $0x598] sm:$0xff] }
 0x17c   : > { %4545 = vmatpush1.bf16.xpose.msra.mxu1 %v4544_v50  ;;  %2437 = vmatprep.mubr.f32.mxu1 %v588_v51  ;;  %v4560_v50 = vpack.c.bf16 %v1165_v43, %v1157_v42  ;;  %v652_v51 = vld [vmem:[%s5802_s29 + $0x348] sm:$0xff]  ;;  %v1221_v42 = vld [vmem:[%s5810_s13 + $0xd10] sm:$0xff]  ;;  %v990_v45 = vld [vmem:[%s5810_s13 + $0x5d8] sm:$0xff] }
 0x17d   : > { %1410 = vmatmul.mubr.f32.gmra.mrb[10].mxu0 %v587_v54  ;;  %4547 = vmatprep.subr.bf16.mxu1 %v4546_v53  ;;  %v4562_v53 = vpack.c.bf16 %v1182_v49, %v1174_v48  ;;  %v1229_v43 = vld [vmem:[%s5810_s13 + $0xd50] sm:$0xff]  ;;  %v1238_v48 = vld [vmem:[%s5810_s13 + $0xd98] sm:$0xff] }
 0x17e   : > { %1415 = vmatprep.mubr.f32.mxu0 %v596_v55  ;;  %v1246_v49 = vld [vmem:[%s5810_s13 + $0xdd8] sm:$0xff] }
 0x17f   : > { %2438 = vmatmul.mubr.f32.gmra.mrb[10].mxu1 %v587_v54  ;;  %v651_v54 = vld [vmem:[%s5802_s29 + $0x340] sm:$0xff] }
 0x180   : > { %2443 = vmatprep.mubr.f32.mxu1 %v596_v55  ;;  %v660_v55 = vld [vmem:[%s5802_s29 + $0x388] sm:$0xff] }
 0x181   : > { %1416 = vmatmul.mubr.f32.gmra.mrb[12].mxu0 %v595_v62 }
 0x182   : > { %4293 = vmatpush1.bf16.xpose.msra.mxu0 %v4292_v63  ;;  %1421 = vmatprep.mubr.f32.mxu0 %v604_v3  ;;  %v4308_v63 = vpack.c.bf16 %v925_v57, %v917_v56  ;;  %v981_v56 = vld [vmem:[%s5810_s13 + $0x590] sm:$0xff] }
 0x183   : > { %2444 = vmatmul.mubr.f32.gmra.mrb[12].mxu1 %v595_v62  ;;  %4295 = vmatprep.subr.bf16.mxu0 %v4294_v4  ;;  %v659_v62 = vld [vmem:[%s5802_s29 + $0x380] sm:$0xff]  ;;  %v4310_v4 = vpack.c.bf16 %v942_v61, %v934_v60  ;;  %v989_v57 = vld [vmem:[%s5810_s13 + $0x5d0] sm:$0xff]  ;;  %v998_v60 = vld [vmem:[%s5810_s13 + $0x618] sm:$0xff] }
 0x184   : > { %4549 = vmatpush1.bf16.xpose.msra.mxu1 %v4548_v2  ;;  %2449 = vmatprep.mubr.f32.mxu1 %v604_v3  ;;  %v4564_v2 = vpack.c.bf16 %v1181_v59, %v1173_v58  ;;  %v668_v3 = vld [vmem:[%s5802_s29 + $0x3c8] sm:$0xff]  ;;  %v1237_v58 = vld [vmem:[%s5810_s13 + $0xd90] sm:$0xff]  ;;  %v1006_v61 = vld [vmem:[%s5810_s13 + $0x658] sm:$0xff] }
 0x185   : > { %1422 = vmatmul.mubr.f32.gmra.mrb[14].mxu0 %v603_v6  ;;  %4551 = vmatprep.subr.bf16.mxu1 %v4550_v5  ;;  %v4566_v5 = vpack.c.bf16 %v1198_v1, %v1190_v0  ;;  %v1245_v59 = vld [vmem:[%s5810_s13 + $0xdd0] sm:$0xff]  ;;  %v1254_v0 = vld [vmem:[%s5810_s13 + $0xe18] sm:$0xff] }
 0x186   : > { %1427 = vmatprep.mubr.f32.mxu0 %v612_v7  ;;  %v1262_v1 = vld [vmem:[%s5810_s13 + $0xe58] sm:$0xff] }
 0x187   : > { %2450 = vmatmul.mubr.f32.gmra.mrb[14].mxu1 %v603_v6  ;;  %v667_v6 = vld [vmem:[%s5802_s29 + $0x3c0] sm:$0xff] }
 0x188   : > { %2455 = vmatprep.mubr.f32.mxu1 %v612_v7  ;;  %v676_v7 = vld [vmem:[%s5802_s29 + $0x408] sm:$0xff] }
 0x189   : > { %1428 = vmatmul.mubr.f32.gmra.mrb[16].mxu0 %v611_v14 }
 0x18a   : > { %4297 = vmatpush1.bf16.xpose.msra.mxu0 %v4296_v15  ;;  %1433 = vmatprep.mubr.f32.mxu0 %v620_v19  ;;  %v4312_v15 = vpack.c.bf16 %v941_v9, %v933_v8  ;;  %v997_v8 = vld [vmem:[%s5810_s13 + $0x610] sm:$0xff] }
 0x18b   : > { %2456 = vmatmul.mubr.f32.gmra.mrb[16].mxu1 %v611_v14  ;;  %4299 = vmatprep.subr.bf16.mxu0 %v4298_v20  ;;  %v675_v14 = vld [vmem:[%s5802_s29 + $0x400] sm:$0xff]  ;;  %v4314_v20 = vpack.c.bf16 %v958_v13, %v950_v12  ;;  %v1005_v9 = vld [vmem:[%s5810_s13 + $0x650] sm:$0xff]  ;;  %v1014_v12 = vld [vmem:[%s5810_s13 + $0x698] sm:$0xff] }
 0x18c   : > { %4553 = vmatpush1.bf16.xpose.msra.mxu1 %v4552_v18  ;;  %2461 = vmatprep.mubr.f32.mxu1 %v620_v19  ;;  %v4568_v18 = vpack.c.bf16 %v1197_v11, %v1189_v10  ;;  %v684_v19 = vld [vmem:[%s5802_s29 + $0x448] sm:$0xff]  ;;  %v1253_v10 = vld [vmem:[%s5810_s13 + $0xe10] sm:$0xff]  ;;  %v1022_v13 = vld [vmem:[%s5810_s13 + $0x6d8] sm:$0xff] }
 0x18d   : > { %1434 = vmatmul.mubr.f32.gmra.mrb[18].mxu0 %v619_v22  ;;  %4555 = vmatprep.subr.bf16.mxu1 %v4554_v21  ;;  %v4570_v21 = vpack.c.bf16 %v1214_v17, %v1206_v16  ;;  %v1261_v11 = vld [vmem:[%s5810_s13 + $0xe50] sm:$0xff]  ;;  %v1270_v16 = vld [vmem:[%s5810_s13 + $0xe98] sm:$0xff] }
 0x18e   : > { %1439 = vmatprep.mubr.f32.mxu0 %v628_v23  ;;  %v1278_v17 = vld [vmem:[%s5810_s13 + $0xed8] sm:$0xff] }
 0x18f   : > { %2462 = vmatmul.mubr.f32.gmra.mrb[18].mxu1 %v619_v22  ;;  %v683_v22 = vld [vmem:[%s5802_s29 + $0x440] sm:$0xff] }
 0x190   : > { %2467 = vmatprep.mubr.f32.mxu1 %v628_v23  ;;  %v692_v23 = vld [vmem:[%s5802_s29 + $0x488] sm:$0xff] }
 0x191   : > { %1440 = vmatmul.mubr.f32.gmra.mrb[20].mxu0 %v627_v30 }
 0x192   : > { %4301 = vmatpush1.bf16.xpose.msra.mxu0 %v4300_v31  ;;  %1445 = vmatprep.mubr.f32.mxu0 %v636_v35  ;;  %v4316_v31 = vpack.c.bf16 %v957_v25, %v949_v24  ;;  %v1013_v24 = vld [vmem:[%s5810_s13 + $0x690] sm:$0xff] }
 0x193   : > { %2468 = vmatmul.mubr.f32.gmra.mrb[20].mxu1 %v627_v30  ;;  %4303 = vmatprep.subr.bf16.mxu0 %v4302_v36  ;;  %v691_v30 = vld [vmem:[%s5802_s29 + $0x480] sm:$0xff]  ;;  %v4318_v36 = vpack.c.bf16 %v974_v29, %v966_v28  ;;  %v1021_v25 = vld [vmem:[%s5810_s13 + $0x6d0] sm:$0xff]  ;;  %v1030_v28 = vld [vmem:[%s5810_s13 + $0x718] sm:$0xff] }
 0x194   : > { %4557 = vmatpush1.bf16.xpose.msra.mxu1 %v4556_v34  ;;  %2473 = vmatprep.mubr.f32.mxu1 %v636_v35  ;;  %v4572_v34 = vpack.c.bf16 %v1213_v27, %v1205_v26  ;;  %v700_v35 = vld [vmem:[%s5802_s29 + $0x4c8] sm:$0xff]  ;;  %v1269_v26 = vld [vmem:[%s5810_s13 + $0xe90] sm:$0xff]  ;;  %v1038_v29 = vld [vmem:[%s5810_s13 + $0x758] sm:$0xff] }
 0x195   : > { %1446 = vmatmul.mubr.f32.gmra.mrb[22].mxu0 %v635_v38  ;;  %4559 = vmatprep.subr.bf16.mxu1 %v4558_v37  ;;  %v4574_v37 = vpack.c.bf16 %v1230_v33, %v1222_v32  ;;  %v1277_v27 = vld [vmem:[%s5810_s13 + $0xed0] sm:$0xff]  ;;  %v1286_v32 = vld [vmem:[%s5810_s13 + $0xf18] sm:$0xff] }
 0x196   : > { %1451 = vmatprep.mubr.f32.mxu0 %v644_v39  ;;  %v1294_v33 = vld [vmem:[%s5810_s13 + $0xf58] sm:$0xff] }
 0x197   : > { %2474 = vmatmul.mubr.f32.gmra.mrb[22].mxu1 %v635_v38  ;;  %v699_v38 = vld [vmem:[%s5802_s29 + $0x4c0] sm:$0xff] }
 0x198   : > { %2479 = vmatprep.mubr.f32.mxu1 %v644_v39  ;;  %v708_v39 = vld [vmem:[%s5802_s29 + $0x508] sm:$0xff] }
 0x199   : > { %1452 = vmatmul.mubr.f32.gmra.mrb[24].mxu0 %v643_v46 }
 0x19a   : > { %4305 = vmatpush1.bf16.xpose.msra.mxu0 %v4304_v47  ;;  %1457 = vmatprep.mubr.f32.mxu0 %v652_v51  ;;  %v4320_v47 = vpack.c.bf16 %v973_v41, %v965_v40  ;;  %v1029_v40 = vld [vmem:[%s5810_s13 + $0x710] sm:$0xff] }
 0x19b   : > { %2480 = vmatmul.mubr.f32.gmra.mrb[24].mxu1 %v643_v46  ;;  %4307 = vmatprep.subr.bf16.mxu0 %v4306_v52  ;;  %v707_v46 = vld [vmem:[%s5802_s29 + $0x500] sm:$0xff]  ;;  %v4322_v52 = vpack.c.bf16 %v990_v45, %v982_v44  ;;  %v1037_v41 = vld [vmem:[%s5810_s13 + $0x750] sm:$0xff]  ;;  %v1046_v44 = vld [vmem:[%s5810_s13 + $0x798] sm:$0xff] }
 0x19c   : > { %4561 = vmatpush1.bf16.xpose.msra.mxu1 %v4560_v50  ;;  %2485 = vmatprep.mubr.f32.mxu1 %v652_v51  ;;  %v4576_v50 = vpack.c.bf16 %v1229_v43, %v1221_v42  ;;  %v716_v51 = vld [vmem:[%s5802_s29 + $0x548] sm:$0xff]  ;;  %v1285_v42 = vld [vmem:[%s5810_s13 + $0xf10] sm:$0xff]  ;;  %v1054_v45 = vld [vmem:[%s5810_s13 + $0x7d8] sm:$0xff] }
 0x19d   : > { %1458 = vmatmul.mubr.f32.gmra.mrb[26].mxu0 %v651_v54  ;;  %4563 = vmatprep.subr.bf16.mxu1 %v4562_v53  ;;  %v4578_v53 = vpack.c.bf16 %v1246_v49, %v1238_v48  ;;  %v1293_v43 = vld [vmem:[%s5810_s13 + $0xf50] sm:$0xff]  ;;  %v1302_v48 = vld [vmem:[%s5810_s13 + $0xf98] sm:$0xff] }
 0x19e   : > { %1463 = vmatprep.mubr.f32.mxu0 %v660_v55  ;;  %v1310_v49 = vld [vmem:[%s5810_s13 + $0xfd8] sm:$0xff] }
 0x19f   : > { %2486 = vmatmul.mubr.f32.gmra.mrb[26].mxu1 %v651_v54  ;;  %v715_v54 = vld [vmem:[%s5802_s29 + $0x540] sm:$0xff] }
 0x1a0   : > { %2491 = vmatprep.mubr.f32.mxu1 %v660_v55  ;;  %v724_v55 = vld [vmem:[%s5802_s29 + $0x588] sm:$0xff] }
 0x1a1   : > { %1464 = vmatmul.mubr.f32.gmra.mrb[28].mxu0 %v659_v62 }
 0x1a2   : > { %4309 = vmatpush1.bf16.xpose.msra.mxu0 %v4308_v63  ;;  %1469 = vmatprep.mubr.f32.mxu0 %v668_v3  ;;  %v4324_v63 = vpack.c.bf16 %v989_v57, %v981_v56  ;;  %v1045_v56 = vld [vmem:[%s5810_s13 + $0x790] sm:$0xff] }
 0x1a3   : > { %2492 = vmatmul.mubr.f32.gmra.mrb[28].mxu1 %v659_v62  ;;  %4311 = vmatprep.subr.bf16.mxu0 %v4310_v4  ;;  %v723_v62 = vld [vmem:[%s5802_s29 + $0x580] sm:$0xff]  ;;  %v4326_v4 = vpack.c.bf16 %v1006_v61, %v998_v60  ;;  %v1053_v57 = vld [vmem:[%s5810_s13 + $0x7d0] sm:$0xff]  ;;  %v808_v60 = vld [vmem:[%s5810_s13 + $0x28] sm:$0xff] }
 0x1a4   : > { %4565 = vmatpush1.bf16.xpose.msra.mxu1 %v4564_v2  ;;  %2497 = vmatprep.mubr.f32.mxu1 %v668_v3  ;;  %v4580_v2 = vpack.c.bf16 %v1245_v59, %v1237_v58  ;;  %v732_v3 = vld [vmem:[%s5802_s29 + $0x5c8] sm:$0xff]  ;;  %v1301_v58 = vld [vmem:[%s5810_s13 + $0xf90] sm:$0xff] }
 0x1a5   : > { %1470 = vmatmul.mubr.f32.gmra.mrb[30].mxu0 %v667_v6  ;;  %4567 = vmatprep.subr.bf16.mxu1 %v4566_v5  ;;  %v4582_v5 = vpack.c.bf16 %v1262_v1, %v1254_v0  ;;  %v1309_v59 = vld [vmem:[%s5810_s13 + $0xfd0] sm:$0xff]  ;;  %v816_v61 = vld [vmem:[%s5810_s13 + $0x68] sm:$0xff] }
 0x1a6   : > { %1475 = vmatprep.mubr.f32.mxu0 %v676_v7  ;;  %v1064_v0 = vld [vmem:[%s5810_s13 + $0x828] sm:$0xff] }
 0x1a7   : > { %2498 = vmatmul.mubr.f32.gmra.mrb[30].mxu1 %v667_v6  ;;  %v731_v6 = vld [vmem:[%s5802_s29 + $0x5c0] sm:$0xff]  ;;  %v1072_v1 = vld [vmem:[%s5810_s13 + $0x868] sm:$0xff] }
 0x1a8   : > { %2503 = vmatprep.mubr.f32.mxu1 %v676_v7  ;;  %v740_v7 = vld [vmem:[%s5802_s29 + $0x608] sm:$0xff] }
 0x1a9   : > { %1476 = vmatmul.mubr.f32.gmra.mrb[32].mxu0 %v675_v14 }
 0x1aa   : > { %4313 = vmatpush1.bf16.xpose.msra.mxu0 %v4312_v15  ;;  %1481 = vmatprep.mubr.f32.mxu0 %v684_v19  ;;  %v4328_v15 = vpack.c.bf16 %v1005_v9, %v997_v8  ;;  %v807_v8 = vld [vmem:[%s5810_s13 + $0x20] sm:$0xff] }
 0x1ab   : > { %2504 = vmatmul.mubr.f32.gmra.mrb[32].mxu1 %v675_v14  ;;  %4315 = vmatprep.subr.bf16.mxu0 %v4314_v20  ;;  %v739_v14 = vld [vmem:[%s5802_s29 + $0x600] sm:$0xff]  ;;  %v4330_v20 = vpack.c.bf16 %v1022_v13, %v1014_v12  ;;  %v824_v12 = vld [vmem:[%s5810_s13 + $0xa8] sm:$0xff] }
 0x1ac   : > { %4569 = vmatpush1.bf16.xpose.msra.mxu1 %v4568_v18  ;;  %2509 = vmatprep.mubr.f32.mxu1 %v684_v19  ;;  %v4584_v18 = vpack.c.bf16 %v1261_v11, %v1253_v10  ;;  %v748_v19 = vld [vmem:[%s5802_s29 + $0x648] sm:$0xff]  ;;  %v815_v9 = vld [vmem:[%s5810_s13 + $0x60] sm:$0xff] }
 0x1ad   : > { %1482 = vmatmul.mubr.f32.gmra.mrb[34].mxu0 %v683_v22  ;;  %4571 = vmatprep.subr.bf16.mxu1 %v4570_v21  ;;  %v4586_v21 = vpack.c.bf16 %v1278_v17, %v1270_v16  ;;  %v1063_v10 = vld [vmem:[%s5810_s13 + $0x820] sm:$0xff]  ;;  %v832_v13 = vld [vmem:[%s5810_s13 + $0xe8] sm:$0xff] }
 0x1ae   : > { %1487 = vmatprep.mubr.f32.mxu0 %v692_v23  ;;  %v1071_v11 = vld [vmem:[%s5810_s13 + $0x860] sm:$0xff]  ;;  %v1080_v16 = vld [vmem:[%s5810_s13 + $0x8a8] sm:$0xff] }
 0x1af   : > { %2510 = vmatmul.mubr.f32.gmra.mrb[34].mxu1 %v683_v22  ;;  %v747_v22 = vld [vmem:[%s5802_s29 + $0x640] sm:$0xff]  ;;  %v1088_v17 = vld [vmem:[%s5810_s13 + $0x8e8] sm:$0xff] }
 0x1b0   : > { %2515 = vmatprep.mubr.f32.mxu1 %v692_v23  ;;  %v756_v23 = vld [vmem:[%s5802_s29 + $0x688] sm:$0xff] }
 0x1b1   : > { %1488 = vmatmul.mubr.f32.gmra.mrb[36].mxu0 %v691_v30 }
 0x1b2   : > { %4317 = vmatpush1.bf16.xpose.msra.mxu0 %v4316_v31  ;;  %1493 = vmatprep.mubr.f32.mxu0 %v700_v35  ;;  %v4332_v31 = vpack.c.bf16 %v1021_v25, %v1013_v24  ;;  %v823_v24 = vld [vmem:[%s5810_s13 + $0xa0] sm:$0xff] }
 0x1b3   : > { %2516 = vmatmul.mubr.f32.gmra.mrb[36].mxu1 %v691_v30  ;;  %4319 = vmatprep.subr.bf16.mxu0 %v4318_v36  ;;  %v755_v30 = vld [vmem:[%s5802_s29 + $0x680] sm:$0xff]  ;;  %v4334_v36 = vpack.c.bf16 %v1038_v29, %v1030_v28  ;;  %v840_v28 = vld [vmem:[%s5810_s13 + $0x128] sm:$0xff] }
 0x1b4   : > { %4573 = vmatpush1.bf16.xpose.msra.mxu1 %v4572_v34  ;;  %2521 = vmatprep.mubr.f32.mxu1 %v700_v35  ;;  %v4588_v34 = vpack.c.bf16 %v1277_v27, %v1269_v26  ;;  %v764_v35 = vld [vmem:[%s5802_s29 + $0x6c8] sm:$0xff]  ;;  %v831_v25 = vld [vmem:[%s5810_s13 + $0xe0] sm:$0xff] }
 0x1b5   : > { %1494 = vmatmul.mubr.f32.gmra.mrb[38].mxu0 %v699_v38  ;;  %4575 = vmatprep.subr.bf16.mxu1 %v4574_v37  ;;  %v4590_v37 = vpack.c.bf16 %v1294_v33, %v1286_v32  ;;  %v1079_v26 = vld [vmem:[%s5810_s13 + $0x8a0] sm:$0xff]  ;;  %v848_v29 = vld [vmem:[%s5810_s13 + $0x168] sm:$0xff] }
 0x1b6   : > { %1499 = vmatprep.mubr.f32.mxu0 %v708_v39  ;;  %v1087_v27 = vld [vmem:[%s5810_s13 + $0x8e0] sm:$0xff]  ;;  %v1096_v32 = vld [vmem:[%s5810_s13 + $0x928] sm:$0xff] }
 0x1b7   : > { %2522 = vmatmul.mubr.f32.gmra.mrb[38].mxu1 %v699_v38  ;;  %v763_v38 = vld [vmem:[%s5802_s29 + $0x6c0] sm:$0xff]  ;;  %v1104_v33 = vld [vmem:[%s5810_s13 + $0x968] sm:$0xff] }
 0x1b8   : > { %2527 = vmatprep.mubr.f32.mxu1 %v708_v39  ;;  %v772_v39 = vld [vmem:[%s5802_s29 + $0x708] sm:$0xff] }
 0x1b9   : > { %1500 = vmatmul.mubr.f32.gmra.mrb[40].mxu0 %v707_v46 }
 0x1ba   : > { %4321 = vmatpush1.bf16.xpose.msra.mxu0 %v4320_v47  ;;  %1505 = vmatprep.mubr.f32.mxu0 %v716_v51  ;;  %v4336_v47 = vpack.c.bf16 %v1037_v41, %v1029_v40  ;;  %v839_v40 = vld [vmem:[%s5810_s13 + $0x120] sm:$0xff] }
 0x1bb   : > { %2528 = vmatmul.mubr.f32.gmra.mrb[40].mxu1 %v707_v46  ;;  %4323 = vmatprep.subr.bf16.mxu0 %v4322_v52  ;;  %v771_v46 = vld [vmem:[%s5802_s29 + $0x700] sm:$0xff]  ;;  %v4338_v52 = vpack.c.bf16 %v1054_v45, %v1046_v44  ;;  %v856_v44 = vld [vmem:[%s5810_s13 + $0x1a8] sm:$0xff] }
 0x1bc   : > { %4577 = vmatpush1.bf16.xpose.msra.mxu1 %v4576_v50  ;;  %2533 = vmatprep.mubr.f32.mxu1 %v716_v51  ;;  %v4592_v50 = vpack.c.bf16 %v1293_v43, %v1285_v42  ;;  %v780_v51 = vld [vmem:[%s5802_s29 + $0x748] sm:$0xff]  ;;  %v847_v41 = vld [vmem:[%s5810_s13 + $0x160] sm:$0xff] }
 0x1bd   : > { %1506 = vmatmul.mubr.f32.gmra.mrb[42].mxu0 %v715_v54  ;;  %4579 = vmatprep.subr.bf16.mxu1 %v4578_v53  ;;  %v4594_v53 = vpack.c.bf16 %v1310_v49, %v1302_v48  ;;  %v1095_v42 = vld [vmem:[%s5810_s13 + $0x920] sm:$0xff]  ;;  %v864_v45 = vld [vmem:[%s5810_s13 + $0x1e8] sm:$0xff] }
 0x1be   : > { %1511 = vmatprep.mubr.f32.mxu0 %v724_v55  ;;  %v1103_v43 = vld [vmem:[%s5810_s13 + $0x960] sm:$0xff]  ;;  %v1112_v48 = vld [vmem:[%s5810_s13 + $0x9a8] sm:$0xff] }
 0x1bf   : > { %2534 = vmatmul.mubr.f32.gmra.mrb[42].mxu1 %v715_v54  ;;  %v779_v54 = vld [vmem:[%s5802_s29 + $0x740] sm:$0xff]  ;;  %v1120_v49 = vld [vmem:[%s5810_s13 + $0x9e8] sm:$0xff] }
 0x1c0   : > { %2539 = vmatprep.mubr.f32.mxu1 %v724_v55  ;;  %v788_v55 = vld [vmem:[%s5802_s29 + $0x788] sm:$0xff] }
 0x1c1   : > { %1512 = vmatmul.mubr.f32.gmra.mrb[44].mxu0 %v723_v62 }
 0x1c2   : > { %4325 = vmatpush1.bf16.xpose.msra.mxu0 %v4324_v63  ;;  %1517 = vmatprep.mubr.f32.mxu0 %v732_v3  ;;  %v4340_v63 = vpack.c.bf16 %v1053_v57, %v1045_v56  ;;  %v855_v56 = vld [vmem:[%s5810_s13 + $0x1a0] sm:$0xff] }
 0x1c3   : > { %2540 = vmatmul.mubr.f32.gmra.mrb[44].mxu1 %v723_v62  ;;  %4327 = vmatprep.subr.bf16.mxu0 %v4326_v4  ;;  %v787_v62 = vld [vmem:[%s5802_s29 + $0x780] sm:$0xff]  ;;  %v4342_v4 = vpack.c.bf16 %v816_v61, %v808_v60  ;;  %v872_v60 = vld [vmem:[%s5810_s13 + $0x228] sm:$0xff] }
 0x1c4   : > { %4581 = vmatpush1.bf16.xpose.msra.mxu1 %v4580_v2  ;;  %2545 = vmatprep.mubr.f32.mxu1 %v732_v3  ;;  %v4596_v2 = vpack.c.bf16 %v1309_v59, %v1301_v58  ;;  %v796_v3 = vld [vmem:[%s5802_s29 + $0x7c8] sm:$0xff]  ;;  %v863_v57 = vld [vmem:[%s5810_s13 + $0x1e0] sm:$0xff] }
 0x1c5   : > { %1518 = vmatmul.mubr.f32.gmra.mrb[46].mxu0 %v731_v6  ;;  %4583 = vmatprep.subr.bf16.mxu1 %v4582_v5  ;;  %v4598_v5 = vpack.c.bf16 %v1072_v1, %v1064_v0  ;;  %v1111_v58 = vld [vmem:[%s5810_s13 + $0x9a0] sm:$0xff]  ;;  %v880_v61 = vld [vmem:[%s5810_s13 + $0x268] sm:$0xff] }
 0x1c6   : > { %1523 = vmatprep.mubr.f32.mxu0 %v740_v7  ;;  %v1119_v59 = vld [vmem:[%s5810_s13 + $0x9e0] sm:$0xff]  ;;  %v1128_v0 = vld [vmem:[%s5810_s13 + $0xa28] sm:$0xff] }
 0x1c7   : > { %2546 = vmatmul.mubr.f32.gmra.mrb[46].mxu1 %v731_v6  ;;  %v795_v6 = vld [vmem:[%s5802_s29 + $0x7c0] sm:$0xff]  ;;  %v1136_v1 = vld [vmem:[%s5810_s13 + $0xa68] sm:$0xff] }
 0x1c8   : > { %2551 = vmatprep.mubr.f32.mxu1 %v740_v7  ;;  %v550_v7 = vld [vmem:[%s5802_s29 + $0x18] sm:$0xff] }
 0x1c9   : > { %1524 = vmatmul.mubr.f32.gmra.mrb[48].mxu0 %v739_v14 }
 0x1ca   : > { %4329 = vmatpush1.bf16.xpose.msra.mxu0 %v4328_v15  ;;  %1529 = vmatprep.mubr.f32.mxu0 %v748_v19  ;;  %v4344_v15 = vpack.c.bf16 %v815_v9, %v807_v8  ;;  %v871_v8 = vld [vmem:[%s5810_s13 + $0x220] sm:$0xff] }
 0x1cb   : > { %2552 = vmatmul.mubr.f32.gmra.mrb[48].mxu1 %v739_v14  ;;  %4331 = vmatprep.subr.bf16.mxu0 %v4330_v20  ;;  %v549_v14 = vld [vmem:[%s5802_s29 + $0x10] sm:$0xff]  ;;  %v4346_v20 = vpack.c.bf16 %v832_v13, %v824_v12  ;;  %v879_v9 = vld [vmem:[%s5810_s13 + $0x260] sm:$0xff]  ;;  %v888_v12 = vld [vmem:[%s5810_s13 + $0x2a8] sm:$0xff] }
 0x1cc   : > { %4585 = vmatpush1.bf16.xpose.msra.mxu1 %v4584_v18  ;;  %2557 = vmatprep.mubr.f32.mxu1 %v748_v19  ;;  %v4600_v18 = vpack.c.bf16 %v1071_v11, %v1063_v10  ;;  %v558_v19 = vld [vmem:[%s5802_s29 + $0x58] sm:$0xff]  ;;  %v1127_v10 = vld [vmem:[%s5810_s13 + $0xa20] sm:$0xff]  ;;  %v896_v13 = vld [vmem:[%s5810_s13 + $0x2e8] sm:$0xff] }
 0x1cd   : > { %1530 = vmatmul.mubr.f32.gmra.mrb[50].mxu0 %v747_v22  ;;  %4587 = vmatprep.subr.bf16.mxu1 %v4586_v21  ;;  %v4602_v21 = vpack.c.bf16 %v1088_v17, %v1080_v16  ;;  %v1135_v11 = vld [vmem:[%s5810_s13 + $0xa60] sm:$0xff]  ;;  %v1144_v16 = vld [vmem:[%s5810_s13 + $0xaa8] sm:$0xff] }
 0x1ce   : > { %1535 = vmatprep.mubr.f32.mxu0 %v756_v23  ;;  %v1152_v17 = vld [vmem:[%s5810_s13 + $0xae8] sm:$0xff] }
 0x1cf   : > { %2558 = vmatmul.mubr.f32.gmra.mrb[50].mxu1 %v747_v22  ;;  %v557_v22 = vld [vmem:[%s5802_s29 + $0x50] sm:$0xff] }
 0x1d0   : > { %2563 = vmatprep.mubr.f32.mxu1 %v756_v23  ;;  %v566_v23 = vld [vmem:[%s5802_s29 + $0x98] sm:$0xff] }
 0x1d1   : > { %1536 = vmatmul.mubr.f32.gmra.mrb[52].mxu0 %v755_v30 }
 0x1d2   : > { %4333 = vmatpush1.bf16.xpose.msra.mxu0 %v4332_v31  ;;  %1541 = vmatprep.mubr.f32.mxu0 %v764_v35  ;;  %v4348_v31 = vpack.c.bf16 %v831_v25, %v823_v24  ;;  %v887_v24 = vld [vmem:[%s5810_s13 + $0x2a0] sm:$0xff] }
 0x1d3   : > { %2564 = vmatmul.mubr.f32.gmra.mrb[52].mxu1 %v755_v30  ;;  %4335 = vmatprep.subr.bf16.mxu0 %v4334_v36  ;;  %v565_v30 = vld [vmem:[%s5802_s29 + $0x90] sm:$0xff]  ;;  %v4350_v36 = vpack.c.bf16 %v848_v29, %v840_v28  ;;  %v895_v25 = vld [vmem:[%s5810_s13 + $0x2e0] sm:$0xff]  ;;  %v904_v28 = vld [vmem:[%s5810_s13 + $0x328] sm:$0xff] }
 0x1d4   : > { %4589 = vmatpush1.bf16.xpose.msra.mxu1 %v4588_v34  ;;  %2569 = vmatprep.mubr.f32.mxu1 %v764_v35  ;;  %v4604_v34 = vpack.c.bf16 %v1087_v27, %v1079_v26  ;;  %v574_v35 = vld [vmem:[%s5802_s29 + $0xd8] sm:$0xff]  ;;  %v1143_v26 = vld [vmem:[%s5810_s13 + $0xaa0] sm:$0xff]  ;;  %v912_v29 = vld [vmem:[%s5810_s13 + $0x368] sm:$0xff] }
 0x1d5   : > { %1542 = vmatmul.mubr.f32.gmra.mrb[54].mxu0 %v763_v38  ;;  %4591 = vmatprep.subr.bf16.mxu1 %v4590_v37  ;;  %v4606_v37 = vpack.c.bf16 %v1104_v33, %v1096_v32  ;;  %v1151_v27 = vld [vmem:[%s5810_s13 + $0xae0] sm:$0xff]  ;;  %v1160_v32 = vld [vmem:[%s5810_s13 + $0xb28] sm:$0xff] }
 0x1d6   : > { %1547 = vmatprep.mubr.f32.mxu0 %v772_v39  ;;  %v1168_v33 = vld [vmem:[%s5810_s13 + $0xb68] sm:$0xff] }
 0x1d7   : > { %2570 = vmatmul.mubr.f32.gmra.mrb[54].mxu1 %v763_v38  ;;  %v573_v38 = vld [vmem:[%s5802_s29 + $0xd0] sm:$0xff] }
 0x1d8   : > { %2575 = vmatprep.mubr.f32.mxu1 %v772_v39  ;;  %v582_v39 = vld [vmem:[%s5802_s29 + $0x118] sm:$0xff] }
 0x1d9   : > { %1548 = vmatmul.mubr.f32.gmra.mrb[56].mxu0 %v771_v46 }
 0x1da   : > { %4337 = vmatpush1.bf16.xpose.msra.mxu0 %v4336_v47  ;;  %1553 = vmatprep.mubr.f32.mxu0 %v780_v51  ;;  %v4352_v47 = vpack.c.bf16 %v847_v41, %v839_v40  ;;  %v903_v40 = vld [vmem:[%s5810_s13 + $0x320] sm:$0xff] }
 0x1db   : > { %2576 = vmatmul.mubr.f32.gmra.mrb[56].mxu1 %v771_v46  ;;  %4339 = vmatprep.subr.bf16.mxu0 %v4338_v52  ;;  %v581_v46 = vld [vmem:[%s5802_s29 + $0x110] sm:$0xff]  ;;  %v4354_v52 = vpack.c.bf16 %v864_v45, %v856_v44  ;;  %v911_v41 = vld [vmem:[%s5810_s13 + $0x360] sm:$0xff]  ;;  %v920_v44 = vld [vmem:[%s5810_s13 + $0x3a8] sm:$0xff] }
 0x1dc   : > { %4593 = vmatpush1.bf16.xpose.msra.mxu1 %v4592_v50  ;;  %2581 = vmatprep.mubr.f32.mxu1 %v780_v51  ;;  %v4608_v50 = vpack.c.bf16 %v1103_v43, %v1095_v42  ;;  %v590_v51 = vld [vmem:[%s5802_s29 + $0x158] sm:$0xff]  ;;  %v1159_v42 = vld [vmem:[%s5810_s13 + $0xb20] sm:$0xff]  ;;  %v928_v45 = vld [vmem:[%s5810_s13 + $0x3e8] sm:$0xff] }
 0x1dd   : > { %1554 = vmatmul.mubr.f32.gmra.mrb[58].mxu0 %v779_v54  ;;  %4595 = vmatprep.subr.bf16.mxu1 %v4594_v53  ;;  %v4610_v53 = vpack.c.bf16 %v1120_v49, %v1112_v48  ;;  %v1167_v43 = vld [vmem:[%s5810_s13 + $0xb60] sm:$0xff]  ;;  %v1176_v48 = vld [vmem:[%s5810_s13 + $0xba8] sm:$0xff] }
 0x1de   : > { %1559 = vmatprep.mubr.f32.mxu0 %v788_v55  ;;  %v1184_v49 = vld [vmem:[%s5810_s13 + $0xbe8] sm:$0xff] }
 0x1df   : > { %2582 = vmatmul.mubr.f32.gmra.mrb[58].mxu1 %v779_v54  ;;  %v589_v54 = vld [vmem:[%s5802_s29 + $0x150] sm:$0xff] }
 0x1e0   : > { %2587 = vmatprep.mubr.f32.mxu1 %v788_v55  ;;  %v598_v55 = vld [vmem:[%s5802_s29 + $0x198] sm:$0xff] }
 0x1e1   : > { %1560 = vmatmul.mubr.f32.gmra.mrb[60].mxu0 %v787_v62 }
 0x1e2   : > { %4341 = vmatpush1.bf16.xpose.msra.mxu0 %v4340_v63  ;;  %1565 = vmatprep.mubr.f32.mxu0 %v796_v3  ;;  %v4356_v63 = vpack.c.bf16 %v863_v57, %v855_v56  ;;  %v919_v56 = vld [vmem:[%s5810_s13 + $0x3a0] sm:$0xff] }
 0x1e3   : > { %2588 = vmatmul.mubr.f32.gmra.mrb[60].mxu1 %v787_v62  ;;  %4343 = vmatprep.subr.bf16.mxu0 %v4342_v4  ;;  %v597_v62 = vld [vmem:[%s5802_s29 + $0x190] sm:$0xff]  ;;  %v4358_v4 = vpack.c.bf16 %v880_v61, %v872_v60  ;;  %v927_v57 = vld [vmem:[%s5810_s13 + $0x3e0] sm:$0xff]  ;;  %v936_v60 = vld [vmem:[%s5810_s13 + $0x428] sm:$0xff] }
 0x1e4   : > { %4597 = vmatpush1.bf16.xpose.msra.mxu1 %v4596_v2  ;;  %2593 = vmatprep.mubr.f32.mxu1 %v796_v3  ;;  %v4612_v2 = vpack.c.bf16 %v1119_v59, %v1111_v58  ;;  %v606_v3 = vld [vmem:[%s5802_s29 + $0x1d8] sm:$0xff]  ;;  %v1175_v58 = vld [vmem:[%s5810_s13 + $0xba0] sm:$0xff]  ;;  %v944_v61 = vld [vmem:[%s5810_s13 + $0x468] sm:$0xff] }
 0x1e5   : > { %1566 = vmatmul.mubr.f32.gmra.mrb[62].mxu0 %v795_v6  ;;  %4599 = vmatprep.subr.bf16.mxu1 %v4598_v5  ;;  %v4614_v5 = vpack.c.bf16 %v1136_v1, %v1128_v0  ;;  %v1183_v59 = vld [vmem:[%s5810_s13 + $0xbe0] sm:$0xff]  ;;  %v1192_v0 = vld [vmem:[%s5810_s13 + $0xc28] sm:$0xff] }
 0x1e6   : > { %1636 = vmatprep.mubr.f32.mxu0 %v550_v7  ;;  %v1200_v1 = vld [vmem:[%s5810_s13 + $0xc68] sm:$0xff] }
 0x1e7   : > { %2594 = vmatmul.mubr.f32.gmra.mrb[62].mxu1 %v795_v6  ;;  %v605_v6 = vld [vmem:[%s5802_s29 + $0x1d0] sm:$0xff] }
 0x1e8   : > { %2664 = vmatprep.mubr.f32.mxu1 %v550_v7  ;;  %v614_v7 = vld [vmem:[%s5802_s29 + $0x218] sm:$0xff] }
 0x1e9   : > { %1637 = vmatmul.mubr.f32.vlgmr.msra.gmra.mrb[0].mxu0 %v549_v14 }
 0x1ea   : > { %4345 = vmatpush1.bf16.xpose.msra.mxu0 %v4344_v15  ;;  %1642 = vmatprep.mubr.f32.mxu0 %v558_v19  ;;  %v4360_v15 = vpack.c.bf16 %v879_v9, %v871_v8  ;;  %v935_v8 = vld [vmem:[%s5810_s13 + $0x420] sm:$0xff] }
 0x1eb   : > { %2665 = vmatmul.mubr.f32.vlgmr.msra.gmra.mrb[0].mxu1 %v549_v14  ;;  %4347 = vmatprep.subr.bf16.mxu0 %v4346_v20  ;;  %v613_v14 = vld [vmem:[%s5802_s29 + $0x210] sm:$0xff]  ;;  %v4362_v20 = vpack.c.bf16 %v896_v13, %v888_v12  ;;  %v943_v9 = vld [vmem:[%s5810_s13 + $0x460] sm:$0xff]  ;;  %v952_v12 = vld [vmem:[%s5810_s13 + $0x4a8] sm:$0xff] }
 0x1ec   : > { %4601 = vmatpush1.bf16.xpose.msra.mxu1 %v4600_v18  ;;  %2670 = vmatprep.mubr.f32.mxu1 %v558_v19  ;;  %v4616_v18 = vpack.c.bf16 %v1135_v11, %v1127_v10  ;;  %v622_v19 = vld [vmem:[%s5802_s29 + $0x258] sm:$0xff]  ;;  %v1191_v10 = vld [vmem:[%s5810_s13 + $0xc20] sm:$0xff]  ;;  %v960_v13 = vld [vmem:[%s5810_s13 + $0x4e8] sm:$0xff] }
 0x1ed   : > { %1643 = vmatmul.mubr.f32.gmra.mrb[2].mxu0 %v557_v22  ;;  %4603 = vmatprep.subr.bf16.mxu1 %v4602_v21  ;;  %v4618_v21 = vpack.c.bf16 %v1152_v17, %v1144_v16  ;;  %v1199_v11 = vld [vmem:[%s5810_s13 + $0xc60] sm:$0xff]  ;;  %v1208_v16 = vld [vmem:[%s5810_s13 + $0xca8] sm:$0xff] }
 0x1ee   : > { %1648 = vmatprep.mubr.f32.mxu0 %v566_v23  ;;  %v1216_v17 = vld [vmem:[%s5810_s13 + $0xce8] sm:$0xff] }
 0x1ef   : > { %2671 = vmatmul.mubr.f32.gmra.mrb[2].mxu1 %v557_v22  ;;  %v621_v22 = vld [vmem:[%s5802_s29 + $0x250] sm:$0xff] }
 0x1f0   : > { %2676 = vmatprep.mubr.f32.mxu1 %v566_v23  ;;  %v630_v23 = vld [vmem:[%s5802_s29 + $0x298] sm:$0xff] }
 0x1f1   : > { %1649 = vmatmul.mubr.f32.gmra.mrb[4].mxu0 %v565_v30 }
 0x1f2   : > { %4349 = vmatpush1.bf16.xpose.msra.mxu0 %v4348_v31  ;;  %1654 = vmatprep.mubr.f32.mxu0 %v574_v35  ;;  %v4364_v31 = vpack.c.bf16 %v895_v25, %v887_v24  ;;  %v951_v24 = vld [vmem:[%s5810_s13 + $0x4a0] sm:$0xff] }
 0x1f3   : > { %2677 = vmatmul.mubr.f32.gmra.mrb[4].mxu1 %v565_v30  ;;  %4351 = vmatprep.subr.bf16.mxu0 %v4350_v36  ;;  %v629_v30 = vld [vmem:[%s5802_s29 + $0x290] sm:$0xff]  ;;  %v4366_v36 = vpack.c.bf16 %v912_v29, %v904_v28  ;;  %v959_v25 = vld [vmem:[%s5810_s13 + $0x4e0] sm:$0xff]  ;;  %v968_v28 = vld [vmem:[%s5810_s13 + $0x528] sm:$0xff] }
 0x1f4   : > { %4605 = vmatpush1.bf16.xpose.msra.mxu1 %v4604_v34  ;;  %2682 = vmatprep.mubr.f32.mxu1 %v574_v35  ;;  %v4620_v34 = vpack.c.bf16 %v1151_v27, %v1143_v26  ;;  %v638_v35 = vld [vmem:[%s5802_s29 + $0x2d8] sm:$0xff]  ;;  %v1207_v26 = vld [vmem:[%s5810_s13 + $0xca0] sm:$0xff]  ;;  %v976_v29 = vld [vmem:[%s5810_s13 + $0x568] sm:$0xff] }
 0x1f5   : > { %1655 = vmatmul.mubr.f32.gmra.mrb[6].mxu0 %v573_v38  ;;  %4607 = vmatprep.subr.bf16.mxu1 %v4606_v37  ;;  %v4622_v37 = vpack.c.bf16 %v1168_v33, %v1160_v32  ;;  %v1215_v27 = vld [vmem:[%s5810_s13 + $0xce0] sm:$0xff]  ;;  %v1224_v32 = vld [vmem:[%s5810_s13 + $0xd28] sm:$0xff] }
 0x1f6   : > { %1660 = vmatprep.mubr.f32.mxu0 %v582_v39  ;;  %v1232_v33 = vld [vmem:[%s5810_s13 + $0xd68] sm:$0xff] }
 0x1f7   : > { %2683 = vmatmul.mubr.f32.gmra.mrb[6].mxu1 %v573_v38  ;;  %v637_v38 = vld [vmem:[%s5802_s29 + $0x2d0] sm:$0xff] }
 0x1f8   : > { %2688 = vmatprep.mubr.f32.mxu1 %v582_v39  ;;  %v646_v39 = vld [vmem:[%s5802_s29 + $0x318] sm:$0xff] }
 0x1f9   : > { %1661 = vmatmul.mubr.f32.gmra.mrb[8].mxu0 %v581_v46 }
 0x1fa   : > { %4353 = vmatpush1.bf16.xpose.msra.mxu0 %v4352_v47  ;;  %1666 = vmatprep.mubr.f32.mxu0 %v590_v51  ;;  %v4368_v47 = vpack.c.bf16 %v911_v41, %v903_v40  ;;  %v967_v40 = vld [vmem:[%s5810_s13 + $0x520] sm:$0xff] }
 0x1fb   : > { %2689 = vmatmul.mubr.f32.gmra.mrb[8].mxu1 %v581_v46  ;;  %4355 = vmatprep.subr.bf16.mxu0 %v4354_v52  ;;  %v645_v46 = vld [vmem:[%s5802_s29 + $0x310] sm:$0xff]  ;;  %v4370_v52 = vpack.c.bf16 %v928_v45, %v920_v44  ;;  %v975_v41 = vld [vmem:[%s5810_s13 + $0x560] sm:$0xff]  ;;  %v984_v44 = vld [vmem:[%s5810_s13 + $0x5a8] sm:$0xff] }
 0x1fc   : > { %4609 = vmatpush1.bf16.xpose.msra.mxu1 %v4608_v50  ;;  %2694 = vmatprep.mubr.f32.mxu1 %v590_v51  ;;  %v4624_v50 = vpack.c.bf16 %v1167_v43, %v1159_v42  ;;  %v654_v51 = vld [vmem:[%s5802_s29 + $0x358] sm:$0xff]  ;;  %v1223_v42 = vld [vmem:[%s5810_s13 + $0xd20] sm:$0xff]  ;;  %v992_v45 = vld [vmem:[%s5810_s13 + $0x5e8] sm:$0xff] }
 0x1fd   : > { %1667 = vmatmul.mubr.f32.gmra.mrb[10].mxu0 %v589_v54  ;;  %4611 = vmatprep.subr.bf16.mxu1 %v4610_v53  ;;  %v4626_v53 = vpack.c.bf16 %v1184_v49, %v1176_v48  ;;  %v1231_v43 = vld [vmem:[%s5810_s13 + $0xd60] sm:$0xff]  ;;  %v1240_v48 = vld [vmem:[%s5810_s13 + $0xda8] sm:$0xff] }
 0x1fe   : > { %1672 = vmatprep.mubr.f32.mxu0 %v598_v55  ;;  %v1248_v49 = vld [vmem:[%s5810_s13 + $0xde8] sm:$0xff] }
 0x1ff   : > { %2695 = vmatmul.mubr.f32.gmra.mrb[10].mxu1 %v589_v54  ;;  %v653_v54 = vld [vmem:[%s5802_s29 + $0x350] sm:$0xff] }
 0x200   : > { %2700 = vmatprep.mubr.f32.mxu1 %v598_v55  ;;  %v662_v55 = vld [vmem:[%s5802_s29 + $0x398] sm:$0xff] }
 0x201   : > { %1673 = vmatmul.mubr.f32.gmra.mrb[12].mxu0 %v597_v62 }
 0x202   : > { %4357 = vmatpush1.bf16.xpose.msra.mxu0 %v4356_v63  ;;  %1678 = vmatprep.mubr.f32.mxu0 %v606_v3  ;;  %v4372_v63 = vpack.c.bf16 %v927_v57, %v919_v56  ;;  %v983_v56 = vld [vmem:[%s5810_s13 + $0x5a0] sm:$0xff] }
 0x203   : > { %2701 = vmatmul.mubr.f32.gmra.mrb[12].mxu1 %v597_v62  ;;  %4359 = vmatprep.subr.bf16.mxu0 %v4358_v4  ;;  %v661_v62 = vld [vmem:[%s5802_s29 + $0x390] sm:$0xff]  ;;  %v4374_v4 = vpack.c.bf16 %v944_v61, %v936_v60  ;;  %v991_v57 = vld [vmem:[%s5810_s13 + $0x5e0] sm:$0xff]  ;;  %v1000_v60 = vld [vmem:[%s5810_s13 + $0x628] sm:$0xff] }
 0x204   : > { %4613 = vmatpush1.bf16.xpose.msra.mxu1 %v4612_v2  ;;  %2706 = vmatprep.mubr.f32.mxu1 %v606_v3  ;;  %v4628_v2 = vpack.c.bf16 %v1183_v59, %v1175_v58  ;;  %v670_v3 = vld [vmem:[%s5802_s29 + $0x3d8] sm:$0xff]  ;;  %v1239_v58 = vld [vmem:[%s5810_s13 + $0xda0] sm:$0xff]  ;;  %v1008_v61 = vld [vmem:[%s5810_s13 + $0x668] sm:$0xff] }
 0x205   : > { %1679 = vmatmul.mubr.f32.gmra.mrb[14].mxu0 %v605_v6  ;;  %4615 = vmatprep.subr.bf16.mxu1 %v4614_v5  ;;  %v4630_v5 = vpack.c.bf16 %v1200_v1, %v1192_v0  ;;  %v1247_v59 = vld [vmem:[%s5810_s13 + $0xde0] sm:$0xff]  ;;  %v1256_v0 = vld [vmem:[%s5810_s13 + $0xe28] sm:$0xff] }
 0x206   : > { %1684 = vmatprep.mubr.f32.mxu0 %v614_v7  ;;  %v1264_v1 = vld [vmem:[%s5810_s13 + $0xe68] sm:$0xff] }
 0x207   : > { %2707 = vmatmul.mubr.f32.gmra.mrb[14].mxu1 %v605_v6  ;;  %v669_v6 = vld [vmem:[%s5802_s29 + $0x3d0] sm:$0xff] }
 0x208   : > { %2712 = vmatprep.mubr.f32.mxu1 %v614_v7  ;;  %v678_v7 = vld [vmem:[%s5802_s29 + $0x418] sm:$0xff] }
 0x209   : > { %1685 = vmatmul.mubr.f32.gmra.mrb[16].mxu0 %v613_v14 }
 0x20a   : > { %4361 = vmatpush1.bf16.xpose.msra.mxu0 %v4360_v15  ;;  %1690 = vmatprep.mubr.f32.mxu0 %v622_v19  ;;  %v4376_v15 = vpack.c.bf16 %v943_v9, %v935_v8  ;;  %v999_v8 = vld [vmem:[%s5810_s13 + $0x620] sm:$0xff] }
 0x20b   : > { %2713 = vmatmul.mubr.f32.gmra.mrb[16].mxu1 %v613_v14  ;;  %4363 = vmatprep.subr.bf16.mxu0 %v4362_v20  ;;  %v677_v14 = vld [vmem:[%s5802_s29 + $0x410] sm:$0xff]  ;;  %v4378_v20 = vpack.c.bf16 %v960_v13, %v952_v12  ;;  %v1007_v9 = vld [vmem:[%s5810_s13 + $0x660] sm:$0xff]  ;;  %v1016_v12 = vld [vmem:[%s5810_s13 + $0x6a8] sm:$0xff] }
 0x20c   : > { %4617 = vmatpush1.bf16.xpose.msra.mxu1 %v4616_v18  ;;  %2718 = vmatprep.mubr.f32.mxu1 %v622_v19  ;;  %v4632_v18 = vpack.c.bf16 %v1199_v11, %v1191_v10  ;;  %v686_v19 = vld [vmem:[%s5802_s29 + $0x458] sm:$0xff]  ;;  %v1255_v10 = vld [vmem:[%s5810_s13 + $0xe20] sm:$0xff]  ;;  %v1024_v13 = vld [vmem:[%s5810_s13 + $0x6e8] sm:$0xff] }
 0x20d   : > { %1691 = vmatmul.mubr.f32.gmra.mrb[18].mxu0 %v621_v22  ;;  %4619 = vmatprep.subr.bf16.mxu1 %v4618_v21  ;;  %v4634_v21 = vpack.c.bf16 %v1216_v17, %v1208_v16  ;;  %v1263_v11 = vld [vmem:[%s5810_s13 + $0xe60] sm:$0xff]  ;;  %v1272_v16 = vld [vmem:[%s5810_s13 + $0xea8] sm:$0xff] }
 0x20e   : > { %1696 = vmatprep.mubr.f32.mxu0 %v630_v23  ;;  %v1280_v17 = vld [vmem:[%s5810_s13 + $0xee8] sm:$0xff] }
 0x20f   : > { %2719 = vmatmul.mubr.f32.gmra.mrb[18].mxu1 %v621_v22  ;;  %v685_v22 = vld [vmem:[%s5802_s29 + $0x450] sm:$0xff] }
 0x210   : > { %2724 = vmatprep.mubr.f32.mxu1 %v630_v23  ;;  %v694_v23 = vld [vmem:[%s5802_s29 + $0x498] sm:$0xff] }
 0x211   : > { %1697 = vmatmul.mubr.f32.gmra.mrb[20].mxu0 %v629_v30 }
 0x212   : > { %4365 = vmatpush1.bf16.xpose.msra.mxu0 %v4364_v31  ;;  %1702 = vmatprep.mubr.f32.mxu0 %v638_v35  ;;  %v4380_v31 = vpack.c.bf16 %v959_v25, %v951_v24  ;;  %v1015_v24 = vld [vmem:[%s5810_s13 + $0x6a0] sm:$0xff] }
 0x213   : > { %2725 = vmatmul.mubr.f32.gmra.mrb[20].mxu1 %v629_v30  ;;  %4367 = vmatprep.subr.bf16.mxu0 %v4366_v36  ;;  %v693_v30 = vld [vmem:[%s5802_s29 + $0x490] sm:$0xff]  ;;  %v4382_v36 = vpack.c.bf16 %v976_v29, %v968_v28  ;;  %v1023_v25 = vld [vmem:[%s5810_s13 + $0x6e0] sm:$0xff]  ;;  %v1032_v28 = vld [vmem:[%s5810_s13 + $0x728] sm:$0xff] }
 0x214   : > { %4621 = vmatpush1.bf16.xpose.msra.mxu1 %v4620_v34  ;;  %2730 = vmatprep.mubr.f32.mxu1 %v638_v35  ;;  %v4636_v34 = vpack.c.bf16 %v1215_v27, %v1207_v26  ;;  %v702_v35 = vld [vmem:[%s5802_s29 + $0x4d8] sm:$0xff]  ;;  %v1271_v26 = vld [vmem:[%s5810_s13 + $0xea0] sm:$0xff]  ;;  %v1040_v29 = vld [vmem:[%s5810_s13 + $0x768] sm:$0xff] }
 0x215   : > { %1703 = vmatmul.mubr.f32.gmra.mrb[22].mxu0 %v637_v38  ;;  %4623 = vmatprep.subr.bf16.mxu1 %v4622_v37  ;;  %v4638_v37 = vpack.c.bf16 %v1232_v33, %v1224_v32  ;;  %v1279_v27 = vld [vmem:[%s5810_s13 + $0xee0] sm:$0xff]  ;;  %v1288_v32 = vld [vmem:[%s5810_s13 + $0xf28] sm:$0xff] }
 0x216   : > { %1708 = vmatprep.mubr.f32.mxu0 %v646_v39  ;;  %v1296_v33 = vld [vmem:[%s5810_s13 + $0xf68] sm:$0xff] }
 0x217   : > { %2731 = vmatmul.mubr.f32.gmra.mrb[22].mxu1 %v637_v38  ;;  %v701_v38 = vld [vmem:[%s5802_s29 + $0x4d0] sm:$0xff] }
 0x218   : > { %2736 = vmatprep.mubr.f32.mxu1 %v646_v39  ;;  %v710_v39 = vld [vmem:[%s5802_s29 + $0x518] sm:$0xff] }
 0x219   : > { %1709 = vmatmul.mubr.f32.gmra.mrb[24].mxu0 %v645_v46 }
 0x21a   : > { %4369 = vmatpush1.bf16.xpose.msra.mxu0 %v4368_v47  ;;  %1714 = vmatprep.mubr.f32.mxu0 %v654_v51  ;;  %v4384_v47 = vpack.c.bf16 %v975_v41, %v967_v40  ;;  %v1031_v40 = vld [vmem:[%s5810_s13 + $0x720] sm:$0xff] }
 0x21b   : > { %2737 = vmatmul.mubr.f32.gmra.mrb[24].mxu1 %v645_v46  ;;  %4371 = vmatprep.subr.bf16.mxu0 %v4370_v52  ;;  %v709_v46 = vld [vmem:[%s5802_s29 + $0x510] sm:$0xff]  ;;  %v4386_v52 = vpack.c.bf16 %v992_v45, %v984_v44  ;;  %v1039_v41 = vld [vmem:[%s5810_s13 + $0x760] sm:$0xff]  ;;  %v1048_v44 = vld [vmem:[%s5810_s13 + $0x7a8] sm:$0xff] }
 0x21c   : > { %4625 = vmatpush1.bf16.xpose.msra.mxu1 %v4624_v50  ;;  %2742 = vmatprep.mubr.f32.mxu1 %v654_v51  ;;  %v4640_v50 = vpack.c.bf16 %v1231_v43, %v1223_v42  ;;  %v718_v51 = vld [vmem:[%s5802_s29 + $0x558] sm:$0xff]  ;;  %v1287_v42 = vld [vmem:[%s5810_s13 + $0xf20] sm:$0xff]  ;;  %v1056_v45 = vld [vmem:[%s5810_s13 + $0x7e8] sm:$0xff] }
 0x21d   : > { %1715 = vmatmul.mubr.f32.gmra.mrb[26].mxu0 %v653_v54  ;;  %4627 = vmatprep.subr.bf16.mxu1 %v4626_v53  ;;  %v4642_v53 = vpack.c.bf16 %v1248_v49, %v1240_v48  ;;  %v1295_v43 = vld [vmem:[%s5810_s13 + $0xf60] sm:$0xff]  ;;  %v1304_v48 = vld [vmem:[%s5810_s13 + $0xfa8] sm:$0xff] }
 0x21e   : > { %1720 = vmatprep.mubr.f32.mxu0 %v662_v55  ;;  %v1312_v49 = vld [vmem:[%s5810_s13 + $0xfe8] sm:$0xff] }
 0x21f   : > { %2743 = vmatmul.mubr.f32.gmra.mrb[26].mxu1 %v653_v54  ;;  %v717_v54 = vld [vmem:[%s5802_s29 + $0x550] sm:$0xff] }
 0x220   : > { %2748 = vmatprep.mubr.f32.mxu1 %v662_v55  ;;  %v726_v55 = vld [vmem:[%s5802_s29 + $0x598] sm:$0xff] }
 0x221   : > { %1721 = vmatmul.mubr.f32.gmra.mrb[28].mxu0 %v661_v62 }
 0x222   : > { %4373 = vmatpush1.bf16.xpose.msra.mxu0 %v4372_v63  ;;  %1726 = vmatprep.mubr.f32.mxu0 %v670_v3  ;;  %v4388_v63 = vpack.c.bf16 %v991_v57, %v983_v56  ;;  %v1047_v56 = vld [vmem:[%s5810_s13 + $0x7a0] sm:$0xff] }
 0x223   : > { %2749 = vmatmul.mubr.f32.gmra.mrb[28].mxu1 %v661_v62  ;;  %4375 = vmatprep.subr.bf16.mxu0 %v4374_v4  ;;  %v725_v62 = vld [vmem:[%s5802_s29 + $0x590] sm:$0xff]  ;;  %v4390_v4 = vpack.c.bf16 %v1008_v61, %v1000_v60  ;;  %v1055_v57 = vld [vmem:[%s5810_s13 + $0x7e0] sm:$0xff]  ;;  %v810_v60 = vld [vmem:[%s5810_s13 + $0x38] sm:$0xff] }
 0x224   : > { %4629 = vmatpush1.bf16.xpose.msra.mxu1 %v4628_v2  ;;  %2754 = vmatprep.mubr.f32.mxu1 %v670_v3  ;;  %v4644_v2 = vpack.c.bf16 %v1247_v59, %v1239_v58  ;;  %v734_v3 = vld [vmem:[%s5802_s29 + $0x5d8] sm:$0xff]  ;;  %v1303_v58 = vld [vmem:[%s5810_s13 + $0xfa0] sm:$0xff] }
 0x225   : > { %1727 = vmatmul.mubr.f32.gmra.mrb[30].mxu0 %v669_v6  ;;  %4631 = vmatprep.subr.bf16.mxu1 %v4630_v5  ;;  %v4646_v5 = vpack.c.bf16 %v1264_v1, %v1256_v0  ;;  %v1311_v59 = vld [vmem:[%s5810_s13 + $0xfe0] sm:$0xff]  ;;  %v818_v61 = vld [vmem:[%s5810_s13 + $0x78] sm:$0xff] }
 0x226   : > { %1732 = vmatprep.mubr.f32.mxu0 %v678_v7  ;;  %v1066_v0 = vld [vmem:[%s5810_s13 + $0x838] sm:$0xff] }
 0x227   : > { %2755 = vmatmul.mubr.f32.gmra.mrb[30].mxu1 %v669_v6  ;;  %v733_v6 = vld [vmem:[%s5802_s29 + $0x5d0] sm:$0xff]  ;;  %v1074_v1 = vld [vmem:[%s5810_s13 + $0x878] sm:$0xff] }
 0x228   : > { %2760 = vmatprep.mubr.f32.mxu1 %v678_v7  ;;  %v742_v7 = vld [vmem:[%s5802_s29 + $0x618] sm:$0xff] }
 0x229   : > { %1733 = vmatmul.mubr.f32.gmra.mrb[32].mxu0 %v677_v14 }
 0x22a   : > { %4377 = vmatpush1.bf16.xpose.msra.mxu0 %v4376_v15  ;;  %1738 = vmatprep.mubr.f32.mxu0 %v686_v19  ;;  %v4392_v15 = vpack.c.bf16 %v1007_v9, %v999_v8  ;;  %v809_v8 = vld [vmem:[%s5810_s13 + $0x30] sm:$0xff] }
 0x22b   : > { %2761 = vmatmul.mubr.f32.gmra.mrb[32].mxu1 %v677_v14  ;;  %4379 = vmatprep.subr.bf16.mxu0 %v4378_v20  ;;  %v741_v14 = vld [vmem:[%s5802_s29 + $0x610] sm:$0xff]  ;;  %v4394_v20 = vpack.c.bf16 %v1024_v13, %v1016_v12  ;;  %v826_v12 = vld [vmem:[%s5810_s13 + $0xb8] sm:$0xff] }
 0x22c   : > { %4633 = vmatpush1.bf16.xpose.msra.mxu1 %v4632_v18  ;;  %2766 = vmatprep.mubr.f32.mxu1 %v686_v19  ;;  %v4648_v18 = vpack.c.bf16 %v1263_v11, %v1255_v10  ;;  %v750_v19 = vld [vmem:[%s5802_s29 + $0x658] sm:$0xff]  ;;  %v817_v9 = vld [vmem:[%s5810_s13 + $0x70] sm:$0xff] }
 0x22d   : > { %1739 = vmatmul.mubr.f32.gmra.mrb[34].mxu0 %v685_v22  ;;  %4635 = vmatprep.subr.bf16.mxu1 %v4634_v21  ;;  %v4650_v21 = vpack.c.bf16 %v1280_v17, %v1272_v16  ;;  %v1065_v10 = vld [vmem:[%s5810_s13 + $0x830] sm:$0xff]  ;;  %v834_v13 = vld [vmem:[%s5810_s13 + $0xf8] sm:$0xff] }
 0x22e   : > { %1744 = vmatprep.mubr.f32.mxu0 %v694_v23  ;;  %v1073_v11 = vld [vmem:[%s5810_s13 + $0x870] sm:$0xff]  ;;  %v1082_v16 = vld [vmem:[%s5810_s13 + $0x8b8] sm:$0xff] }
 0x22f   : > { %2767 = vmatmul.mubr.f32.gmra.mrb[34].mxu1 %v685_v22  ;;  %v749_v22 = vld [vmem:[%s5802_s29 + $0x650] sm:$0xff]  ;;  %v1090_v17 = vld [vmem:[%s5810_s13 + $0x8f8] sm:$0xff] }
 0x230   : > { %2772 = vmatprep.mubr.f32.mxu1 %v694_v23  ;;  %v758_v23 = vld [vmem:[%s5802_s29 + $0x698] sm:$0xff] }
 0x231   : > { %1745 = vmatmul.mubr.f32.gmra.mrb[36].mxu0 %v693_v30 }
 0x232   : > { %4381 = vmatpush1.bf16.xpose.msra.mxu0 %v4380_v31  ;;  %1750 = vmatprep.mubr.f32.mxu0 %v702_v35  ;;  %v4396_v31 = vpack.c.bf16 %v1023_v25, %v1015_v24  ;;  %v825_v24 = vld [vmem:[%s5810_s13 + $0xb0] sm:$0xff] }
 0x233   : > { %2773 = vmatmul.mubr.f32.gmra.mrb[36].mxu1 %v693_v30  ;;  %4383 = vmatprep.subr.bf16.mxu0 %v4382_v36  ;;  %v757_v30 = vld [vmem:[%s5802_s29 + $0x690] sm:$0xff]  ;;  %v4398_v36 = vpack.c.bf16 %v1040_v29, %v1032_v28  ;;  %v842_v28 = vld [vmem:[%s5810_s13 + $0x138] sm:$0xff] }
 0x234   : > { %4637 = vmatpush1.bf16.xpose.msra.mxu1 %v4636_v34  ;;  %2778 = vmatprep.mubr.f32.mxu1 %v702_v35  ;;  %v4652_v34 = vpack.c.bf16 %v1279_v27, %v1271_v26  ;;  %v766_v35 = vld [vmem:[%s5802_s29 + $0x6d8] sm:$0xff]  ;;  %v833_v25 = vld [vmem:[%s5810_s13 + $0xf0] sm:$0xff] }
 0x235   : > { %1751 = vmatmul.mubr.f32.gmra.mrb[38].mxu0 %v701_v38  ;;  %4639 = vmatprep.subr.bf16.mxu1 %v4638_v37  ;;  %v4654_v37 = vpack.c.bf16 %v1296_v33, %v1288_v32  ;;  %v1081_v26 = vld [vmem:[%s5810_s13 + $0x8b0] sm:$0xff]  ;;  %v850_v29 = vld [vmem:[%s5810_s13 + $0x178] sm:$0xff] }
 0x236   : > { %1756 = vmatprep.mubr.f32.mxu0 %v710_v39  ;;  %v1089_v27 = vld [vmem:[%s5810_s13 + $0x8f0] sm:$0xff]  ;;  %v1098_v32 = vld [vmem:[%s5810_s13 + $0x938] sm:$0xff] }
 0x237   : > { %2779 = vmatmul.mubr.f32.gmra.mrb[38].mxu1 %v701_v38  ;;  %v765_v38 = vld [vmem:[%s5802_s29 + $0x6d0] sm:$0xff]  ;;  %v1106_v33 = vld [vmem:[%s5810_s13 + $0x978] sm:$0xff] }
 0x238   : > { %2784 = vmatprep.mubr.f32.mxu1 %v710_v39  ;;  %v774_v39 = vld [vmem:[%s5802_s29 + $0x718] sm:$0xff] }
 0x239   : > { %1757 = vmatmul.mubr.f32.gmra.mrb[40].mxu0 %v709_v46 }
 0x23a   : > { %4385 = vmatpush1.bf16.xpose.msra.mxu0 %v4384_v47  ;;  %1762 = vmatprep.mubr.f32.mxu0 %v718_v51  ;;  %v4400_v47 = vpack.c.bf16 %v1039_v41, %v1031_v40  ;;  %v841_v40 = vld [vmem:[%s5810_s13 + $0x130] sm:$0xff] }
 0x23b   : > { %2785 = vmatmul.mubr.f32.gmra.mrb[40].mxu1 %v709_v46  ;;  %4387 = vmatprep.subr.bf16.mxu0 %v4386_v52  ;;  %v773_v46 = vld [vmem:[%s5802_s29 + $0x710] sm:$0xff]  ;;  %v4402_v52 = vpack.c.bf16 %v1056_v45, %v1048_v44  ;;  %v858_v44 = vld [vmem:[%s5810_s13 + $0x1b8] sm:$0xff] }
 0x23c   : > { %4641 = vmatpush1.bf16.xpose.msra.mxu1 %v4640_v50  ;;  %2790 = vmatprep.mubr.f32.mxu1 %v718_v51  ;;  %v4656_v50 = vpack.c.bf16 %v1295_v43, %v1287_v42  ;;  %v782_v51 = vld [vmem:[%s5802_s29 + $0x758] sm:$0xff]  ;;  %v849_v41 = vld [vmem:[%s5810_s13 + $0x170] sm:$0xff] }
 0x23d   : > { %1763 = vmatmul.mubr.f32.gmra.mrb[42].mxu0 %v717_v54  ;;  %4643 = vmatprep.subr.bf16.mxu1 %v4642_v53  ;;  %v4658_v53 = vpack.c.bf16 %v1312_v49, %v1304_v48  ;;  %v1097_v42 = vld [vmem:[%s5810_s13 + $0x930] sm:$0xff]  ;;  %v866_v45 = vld [vmem:[%s5810_s13 + $0x1f8] sm:$0xff] }
 0x23e   : > { %1768 = vmatprep.mubr.f32.mxu0 %v726_v55  ;;  %v1105_v43 = vld [vmem:[%s5810_s13 + $0x970] sm:$0xff]  ;;  %v1114_v48 = vld [vmem:[%s5810_s13 + $0x9b8] sm:$0xff] }
 0x23f   : > { %2791 = vmatmul.mubr.f32.gmra.mrb[42].mxu1 %v717_v54  ;;  %v781_v54 = vld [vmem:[%s5802_s29 + $0x750] sm:$0xff]  ;;  %v1122_v49 = vld [vmem:[%s5810_s13 + $0x9f8] sm:$0xff] }
 0x240   : > { %2796 = vmatprep.mubr.f32.mxu1 %v726_v55  ;;  %v790_v55 = vld [vmem:[%s5802_s29 + $0x798] sm:$0xff] }
 0x241   : > { %1769 = vmatmul.mubr.f32.gmra.mrb[44].mxu0 %v725_v62 }
 0x242   : > { %4389 = vmatpush1.bf16.xpose.msra.mxu0 %v4388_v63  ;;  %1774 = vmatprep.mubr.f32.mxu0 %v734_v3  ;;  %v4404_v63 = vpack.c.bf16 %v1055_v57, %v1047_v56  ;;  %v857_v56 = vld [vmem:[%s5810_s13 + $0x1b0] sm:$0xff] }
 0x243   : > { %2797 = vmatmul.mubr.f32.gmra.mrb[44].mxu1 %v725_v62  ;;  %4391 = vmatprep.subr.bf16.mxu0 %v4390_v4  ;;  %v789_v62 = vld [vmem:[%s5802_s29 + $0x790] sm:$0xff]  ;;  %v4406_v4 = vpack.c.bf16 %v818_v61, %v810_v60  ;;  %v874_v60 = vld [vmem:[%s5810_s13 + $0x238] sm:$0xff] }
 0x244   : > { %4645 = vmatpush1.bf16.xpose.msra.mxu1 %v4644_v2  ;;  %2802 = vmatprep.mubr.f32.mxu1 %v734_v3  ;;  %v4660_v2 = vpack.c.bf16 %v1311_v59, %v1303_v58  ;;  %v798_v3 = vld [vmem:[%s5802_s29 + $0x7d8] sm:$0xff]  ;;  %v865_v57 = vld [vmem:[%s5810_s13 + $0x1f0] sm:$0xff] }
 0x245   : > { %1775 = vmatmul.mubr.f32.gmra.mrb[46].mxu0 %v733_v6  ;;  %4647 = vmatprep.subr.bf16.mxu1 %v4646_v5  ;;  %v4662_v5 = vpack.c.bf16 %v1074_v1, %v1066_v0  ;;  %v1113_v58 = vld [vmem:[%s5810_s13 + $0x9b0] sm:$0xff]  ;;  %v882_v61 = vld [vmem:[%s5810_s13 + $0x278] sm:$0xff] }
 0x246   : > { %1780 = vmatprep.mubr.f32.mxu0 %v742_v7  ;;  %v1121_v59 = vld [vmem:[%s5810_s13 + $0x9f0] sm:$0xff]  ;;  %v1130_v0 = vld [vmem:[%s5810_s13 + $0xa38] sm:$0xff] }
 0x247   : > { %2803 = vmatmul.mubr.f32.gmra.mrb[46].mxu1 %v733_v6  ;;  %v797_v6 = vld [vmem:[%s5802_s29 + $0x7d0] sm:$0xff]  ;;  %v1138_v1 = vld [vmem:[%s5810_s13 + $0xa78] sm:$0xff] }
 0x248   : > { %2808 = vmatprep.mubr.f32.mxu1 %v742_v7  ;;  %v552_v7 = vld [vmem:[%s5802_s29 + $0x28] sm:$0xff] }
 0x249   : > { %1781 = vmatmul.mubr.f32.gmra.mrb[48].mxu0 %v741_v14 }
 0x24a   : > { %4393 = vmatpush1.bf16.xpose.msra.mxu0 %v4392_v15  ;;  %1786 = vmatprep.mubr.f32.mxu0 %v750_v19  ;;  %v4408_v15 = vpack.c.bf16 %v817_v9, %v809_v8  ;;  %v873_v8 = vld [vmem:[%s5810_s13 + $0x230] sm:$0xff] }
 0x24b   : > { %2809 = vmatmul.mubr.f32.gmra.mrb[48].mxu1 %v741_v14  ;;  %4395 = vmatprep.subr.bf16.mxu0 %v4394_v20  ;;  %v551_v14 = vld [vmem:[%s5802_s29 + $0x20] sm:$0xff]  ;;  %v4410_v20 = vpack.c.bf16 %v834_v13, %v826_v12  ;;  %v881_v9 = vld [vmem:[%s5810_s13 + $0x270] sm:$0xff]  ;;  %v890_v12 = vld [vmem:[%s5810_s13 + $0x2b8] sm:$0xff] }
 0x24c   : > { %4649 = vmatpush1.bf16.xpose.msra.mxu1 %v4648_v18  ;;  %2814 = vmatprep.mubr.f32.mxu1 %v750_v19  ;;  %v4664_v18 = vpack.c.bf16 %v1073_v11, %v1065_v10  ;;  %v560_v19 = vld [vmem:[%s5802_s29 + $0x68] sm:$0xff]  ;;  %v1129_v10 = vld [vmem:[%s5810_s13 + $0xa30] sm:$0xff]  ;;  %v898_v13 = vld [vmem:[%s5810_s13 + $0x2f8] sm:$0xff] }
 0x24d   : > { %1787 = vmatmul.mubr.f32.gmra.mrb[50].mxu0 %v749_v22  ;;  %4651 = vmatprep.subr.bf16.mxu1 %v4650_v21  ;;  %v4666_v21 = vpack.c.bf16 %v1090_v17, %v1082_v16  ;;  %v1137_v11 = vld [vmem:[%s5810_s13 + $0xa70] sm:$0xff]  ;;  %v1146_v16 = vld [vmem:[%s5810_s13 + $0xab8] sm:$0xff] }
 0x24e   : > { %1792 = vmatprep.mubr.f32.mxu0 %v758_v23  ;;  %v1154_v17 = vld [vmem:[%s5810_s13 + $0xaf8] sm:$0xff] }
 0x24f   : > { %2815 = vmatmul.mubr.f32.gmra.mrb[50].mxu1 %v749_v22  ;;  %v559_v22 = vld [vmem:[%s5802_s29 + $0x60] sm:$0xff] }
 0x250   : > { %2820 = vmatprep.mubr.f32.mxu1 %v758_v23  ;;  %v568_v23 = vld [vmem:[%s5802_s29 + $0xa8] sm:$0xff] }
 0x251   : > { %1793 = vmatmul.mubr.f32.gmra.mrb[52].mxu0 %v757_v30 }
 0x252   : > { %4397 = vmatpush1.bf16.xpose.msra.mxu0 %v4396_v31  ;;  %1798 = vmatprep.mubr.f32.mxu0 %v766_v35  ;;  %v4412_v31 = vpack.c.bf16 %v833_v25, %v825_v24  ;;  %v889_v24 = vld [vmem:[%s5810_s13 + $0x2b0] sm:$0xff] }
 0x253   : > { %2821 = vmatmul.mubr.f32.gmra.mrb[52].mxu1 %v757_v30  ;;  %4399 = vmatprep.subr.bf16.mxu0 %v4398_v36  ;;  %v567_v30 = vld [vmem:[%s5802_s29 + $0xa0] sm:$0xff]  ;;  %v4414_v36 = vpack.c.bf16 %v850_v29, %v842_v28  ;;  %v897_v25 = vld [vmem:[%s5810_s13 + $0x2f0] sm:$0xff]  ;;  %v906_v28 = vld [vmem:[%s5810_s13 + $0x338] sm:$0xff] }
 0x254   : > { %4653 = vmatpush1.bf16.xpose.msra.mxu1 %v4652_v34  ;;  %2826 = vmatprep.mubr.f32.mxu1 %v766_v35  ;;  %v4668_v34 = vpack.c.bf16 %v1089_v27, %v1081_v26  ;;  %v576_v35 = vld [vmem:[%s5802_s29 + $0xe8] sm:$0xff]  ;;  %v1145_v26 = vld [vmem:[%s5810_s13 + $0xab0] sm:$0xff]  ;;  %v914_v29 = vld [vmem:[%s5810_s13 + $0x378] sm:$0xff] }
 0x255   : > { %1799 = vmatmul.mubr.f32.gmra.mrb[54].mxu0 %v765_v38  ;;  %4655 = vmatprep.subr.bf16.mxu1 %v4654_v37  ;;  %v4670_v37 = vpack.c.bf16 %v1106_v33, %v1098_v32  ;;  %v1153_v27 = vld [vmem:[%s5810_s13 + $0xaf0] sm:$0xff]  ;;  %v1162_v32 = vld [vmem:[%s5810_s13 + $0xb38] sm:$0xff] }
 0x256   : > { %1804 = vmatprep.mubr.f32.mxu0 %v774_v39  ;;  %v1170_v33 = vld [vmem:[%s5810_s13 + $0xb78] sm:$0xff] }
 0x257   : > { %2827 = vmatmul.mubr.f32.gmra.mrb[54].mxu1 %v765_v38  ;;  %v575_v38 = vld [vmem:[%s5802_s29 + $0xe0] sm:$0xff] }
 0x258   : > { %2832 = vmatprep.mubr.f32.mxu1 %v774_v39  ;;  %v584_v39 = vld [vmem:[%s5802_s29 + $0x128] sm:$0xff] }
 0x259   : > { %1805 = vmatmul.mubr.f32.gmra.mrb[56].mxu0 %v773_v46 }
 0x25a   : > { %4401 = vmatpush1.bf16.xpose.msra.mxu0 %v4400_v47  ;;  %1810 = vmatprep.mubr.f32.mxu0 %v782_v51  ;;  %v4416_v47 = vpack.c.bf16 %v849_v41, %v841_v40  ;;  %v905_v40 = vld [vmem:[%s5810_s13 + $0x330] sm:$0xff] }
 0x25b   : > { %2833 = vmatmul.mubr.f32.gmra.mrb[56].mxu1 %v773_v46  ;;  %4403 = vmatprep.subr.bf16.mxu0 %v4402_v52  ;;  %v583_v46 = vld [vmem:[%s5802_s29 + $0x120] sm:$0xff]  ;;  %v4418_v52 = vpack.c.bf16 %v866_v45, %v858_v44  ;;  %v913_v41 = vld [vmem:[%s5810_s13 + $0x370] sm:$0xff]  ;;  %v922_v44 = vld [vmem:[%s5810_s13 + $0x3b8] sm:$0xff] }
 0x25c   : > { %4657 = vmatpush1.bf16.xpose.msra.mxu1 %v4656_v50  ;;  %2838 = vmatprep.mubr.f32.mxu1 %v782_v51  ;;  %v4672_v50 = vpack.c.bf16 %v1105_v43, %v1097_v42  ;;  %v592_v51 = vld [vmem:[%s5802_s29 + $0x168] sm:$0xff]  ;;  %v1161_v42 = vld [vmem:[%s5810_s13 + $0xb30] sm:$0xff]  ;;  %v930_v45 = vld [vmem:[%s5810_s13 + $0x3f8] sm:$0xff] }
 0x25d   : > { %1811 = vmatmul.mubr.f32.gmra.mrb[58].mxu0 %v781_v54  ;;  %4659 = vmatprep.subr.bf16.mxu1 %v4658_v53  ;;  %v4674_v53 = vpack.c.bf16 %v1122_v49, %v1114_v48  ;;  %v1169_v43 = vld [vmem:[%s5810_s13 + $0xb70] sm:$0xff]  ;;  %v1178_v48 = vld [vmem:[%s5810_s13 + $0xbb8] sm:$0xff] }
 0x25e   : > { %1816 = vmatprep.mubr.f32.mxu0 %v790_v55  ;;  %v1186_v49 = vld [vmem:[%s5810_s13 + $0xbf8] sm:$0xff] }
 0x25f   : > { %2839 = vmatmul.mubr.f32.gmra.mrb[58].mxu1 %v781_v54  ;;  %v591_v54 = vld [vmem:[%s5802_s29 + $0x160] sm:$0xff] }
 0x260   : > { %2844 = vmatprep.mubr.f32.mxu1 %v790_v55  ;;  %v600_v55 = vld [vmem:[%s5802_s29 + $0x1a8] sm:$0xff] }
 0x261   : > { %1817 = vmatmul.mubr.f32.gmra.mrb[60].mxu0 %v789_v62 }
 0x262   : > { %4405 = vmatpush1.bf16.xpose.msra.mxu0 %v4404_v63  ;;  %1822 = vmatprep.mubr.f32.mxu0 %v798_v3  ;;  %v4420_v63 = vpack.c.bf16 %v865_v57, %v857_v56  ;;  %v921_v56 = vld [vmem:[%s5810_s13 + $0x3b0] sm:$0xff] }
 0x263   : > { %2845 = vmatmul.mubr.f32.gmra.mrb[60].mxu1 %v789_v62  ;;  %4407 = vmatprep.subr.bf16.mxu0 %v4406_v4  ;;  %v599_v62 = vld [vmem:[%s5802_s29 + $0x1a0] sm:$0xff]  ;;  %v4422_v4 = vpack.c.bf16 %v882_v61, %v874_v60  ;;  %v929_v57 = vld [vmem:[%s5810_s13 + $0x3f0] sm:$0xff]  ;;  %v938_v60 = vld [vmem:[%s5810_s13 + $0x438] sm:$0xff] }
 0x264   : > { %4661 = vmatpush1.bf16.xpose.msra.mxu1 %v4660_v2  ;;  %2850 = vmatprep.mubr.f32.mxu1 %v798_v3  ;;  %v4676_v2 = vpack.c.bf16 %v1121_v59, %v1113_v58  ;;  %v608_v3 = vld [vmem:[%s5802_s29 + $0x1e8] sm:$0xff]  ;;  %v1177_v58 = vld [vmem:[%s5810_s13 + $0xbb0] sm:$0xff]  ;;  %v946_v61 = vld [vmem:[%s5810_s13 + $0x478] sm:$0xff] }
 0x265   : > { %1823 = vmatmul.mubr.f32.gmra.mrb[62].mxu0 %v797_v6  ;;  %4663 = vmatprep.subr.bf16.mxu1 %v4662_v5  ;;  %v4678_v5 = vpack.c.bf16 %v1138_v1, %v1130_v0  ;;  %v1185_v59 = vld [vmem:[%s5810_s13 + $0xbf0] sm:$0xff]  ;;  %v1194_v0 = vld [vmem:[%s5810_s13 + $0xc38] sm:$0xff] }
 0x266   : > { %1893 = vmatprep.mubr.f32.mxu0 %v552_v7  ;;  %v1202_v1 = vld [vmem:[%s5810_s13 + $0xc78] sm:$0xff] }
 0x267   : > { %2851 = vmatmul.mubr.f32.gmra.mrb[62].mxu1 %v797_v6  ;;  %v607_v6 = vld [vmem:[%s5802_s29 + $0x1e0] sm:$0xff] }
 0x268   : > { %2921 = vmatprep.mubr.f32.mxu1 %v552_v7  ;;  %v616_v7 = vld [vmem:[%s5802_s29 + $0x228] sm:$0xff] }
 0x269   : > { %1894 = vmatmul.mubr.f32.vlgmr.msra.gmra.mrb[0].mxu0 %v551_v14 }
 0x26a   : > { %4409 = vmatpush1.bf16.xpose.msra.mxu0 %v4408_v15  ;;  %1899 = vmatprep.mubr.f32.mxu0 %v560_v19  ;;  %v4424_v15 = vpack.c.bf16 %v881_v9, %v873_v8  ;;  %v937_v8 = vld [vmem:[%s5810_s13 + $0x430] sm:$0xff] }
 0x26b   : > { %2922 = vmatmul.mubr.f32.vlgmr.msra.gmra.mrb[0].mxu1 %v551_v14  ;;  %4411 = vmatprep.subr.bf16.mxu0 %v4410_v20  ;;  %v615_v14 = vld [vmem:[%s5802_s29 + $0x220] sm:$0xff]  ;;  %v4426_v20 = vpack.c.bf16 %v898_v13, %v890_v12  ;;  %v945_v9 = vld [vmem:[%s5810_s13 + $0x470] sm:$0xff]  ;;  %v954_v12 = vld [vmem:[%s5810_s13 + $0x4b8] sm:$0xff] }
 0x26c   : > { %4665 = vmatpush1.bf16.xpose.msra.mxu1 %v4664_v18  ;;  %2927 = vmatprep.mubr.f32.mxu1 %v560_v19  ;;  %v4680_v18 = vpack.c.bf16 %v1137_v11, %v1129_v10  ;;  %v624_v19 = vld [vmem:[%s5802_s29 + $0x268] sm:$0xff]  ;;  %v1193_v10 = vld [vmem:[%s5810_s13 + $0xc30] sm:$0xff]  ;;  %v962_v13 = vld [vmem:[%s5810_s13 + $0x4f8] sm:$0xff] }
 0x26d   : > { %1900 = vmatmul.mubr.f32.gmra.mrb[2].mxu0 %v559_v22  ;;  %4667 = vmatprep.subr.bf16.mxu1 %v4666_v21  ;;  %v4682_v21 = vpack.c.bf16 %v1154_v17, %v1146_v16  ;;  %v1201_v11 = vld [vmem:[%s5810_s13 + $0xc70] sm:$0xff]  ;;  %v1210_v16 = vld [vmem:[%s5810_s13 + $0xcb8] sm:$0xff] }
 0x26e   : > { %1905 = vmatprep.mubr.f32.mxu0 %v568_v23  ;;  %v1218_v17 = vld [vmem:[%s5810_s13 + $0xcf8] sm:$0xff] }
 0x26f   : > { %2928 = vmatmul.mubr.f32.gmra.mrb[2].mxu1 %v559_v22  ;;  %v623_v22 = vld [vmem:[%s5802_s29 + $0x260] sm:$0xff] }
 0x270   : > { %2933 = vmatprep.mubr.f32.mxu1 %v568_v23  ;;  %v632_v23 = vld [vmem:[%s5802_s29 + $0x2a8] sm:$0xff] }
 0x271   : > { %1906 = vmatmul.mubr.f32.gmra.mrb[4].mxu0 %v567_v30 }
 0x272   : > { %4413 = vmatpush1.bf16.xpose.msra.mxu0 %v4412_v31  ;;  %1911 = vmatprep.mubr.f32.mxu0 %v576_v35  ;;  %v4428_v31 = vpack.c.bf16 %v897_v25, %v889_v24  ;;  %v953_v24 = vld [vmem:[%s5810_s13 + $0x4b0] sm:$0xff] }
 0x273   : > { %2934 = vmatmul.mubr.f32.gmra.mrb[4].mxu1 %v567_v30  ;;  %4415 = vmatprep.subr.bf16.mxu0 %v4414_v36  ;;  %v631_v30 = vld [vmem:[%s5802_s29 + $0x2a0] sm:$0xff]  ;;  %v4430_v36 = vpack.c.bf16 %v914_v29, %v906_v28  ;;  %v961_v25 = vld [vmem:[%s5810_s13 + $0x4f0] sm:$0xff]  ;;  %v970_v28 = vld [vmem:[%s5810_s13 + $0x538] sm:$0xff] }
 0x274   : > { %4669 = vmatpush1.bf16.xpose.msra.mxu1 %v4668_v34  ;;  %2939 = vmatprep.mubr.f32.mxu1 %v576_v35  ;;  %v4684_v34 = vpack.c.bf16 %v1153_v27, %v1145_v26  ;;  %v640_v35 = vld [vmem:[%s5802_s29 + $0x2e8] sm:$0xff]  ;;  %v1209_v26 = vld [vmem:[%s5810_s13 + $0xcb0] sm:$0xff]  ;;  %v978_v29 = vld [vmem:[%s5810_s13 + $0x578] sm:$0xff] }
 0x275   : > { %1912 = vmatmul.mubr.f32.gmra.mrb[6].mxu0 %v575_v38  ;;  %4671 = vmatprep.subr.bf16.mxu1 %v4670_v37  ;;  %v4686_v37 = vpack.c.bf16 %v1170_v33, %v1162_v32  ;;  %v1217_v27 = vld [vmem:[%s5810_s13 + $0xcf0] sm:$0xff]  ;;  %v1226_v32 = vld [vmem:[%s5810_s13 + $0xd38] sm:$0xff] }
 0x276   : > { %1917 = vmatprep.mubr.f32.mxu0 %v584_v39  ;;  %v1234_v33 = vld [vmem:[%s5810_s13 + $0xd78] sm:$0xff] }
 0x277   : > { %2940 = vmatmul.mubr.f32.gmra.mrb[6].mxu1 %v575_v38  ;;  %v639_v38 = vld [vmem:[%s5802_s29 + $0x2e0] sm:$0xff] }
 0x278   : > { %2945 = vmatprep.mubr.f32.mxu1 %v584_v39  ;;  %v648_v39 = vld [vmem:[%s5802_s29 + $0x328] sm:$0xff] }
 0x279   : > { %1918 = vmatmul.mubr.f32.gmra.mrb[8].mxu0 %v583_v46 }
 0x27a   : > { %4417 = vmatpush1.bf16.xpose.msra.mxu0 %v4416_v47  ;;  %1923 = vmatprep.mubr.f32.mxu0 %v592_v51  ;;  %v4432_v47 = vpack.c.bf16 %v913_v41, %v905_v40  ;;  %v969_v40 = vld [vmem:[%s5810_s13 + $0x530] sm:$0xff] }
 0x27b   : > { %2946 = vmatmul.mubr.f32.gmra.mrb[8].mxu1 %v583_v46  ;;  %4419 = vmatprep.subr.bf16.mxu0 %v4418_v52  ;;  %v647_v46 = vld [vmem:[%s5802_s29 + $0x320] sm:$0xff]  ;;  %v4434_v52 = vpack.c.bf16 %v930_v45, %v922_v44  ;;  %v977_v41 = vld [vmem:[%s5810_s13 + $0x570] sm:$0xff]  ;;  %v986_v44 = vld [vmem:[%s5810_s13 + $0x5b8] sm:$0xff] }
 0x27c   : > { %4673 = vmatpush1.bf16.xpose.msra.mxu1 %v4672_v50  ;;  %2951 = vmatprep.mubr.f32.mxu1 %v592_v51  ;;  %v4688_v50 = vpack.c.bf16 %v1169_v43, %v1161_v42  ;;  %v656_v51 = vld [vmem:[%s5802_s29 + $0x368] sm:$0xff]  ;;  %v1225_v42 = vld [vmem:[%s5810_s13 + $0xd30] sm:$0xff]  ;;  %v994_v45 = vld [vmem:[%s5810_s13 + $0x5f8] sm:$0xff] }
 0x27d   : > { %1924 = vmatmul.mubr.f32.gmra.mrb[10].mxu0 %v591_v54  ;;  %4675 = vmatprep.subr.bf16.mxu1 %v4674_v53  ;;  %v4690_v53 = vpack.c.bf16 %v1186_v49, %v1178_v48  ;;  %v1233_v43 = vld [vmem:[%s5810_s13 + $0xd70] sm:$0xff]  ;;  %v1242_v48 = vld [vmem:[%s5810_s13 + $0xdb8] sm:$0xff] }
 0x27e   : > { %1929 = vmatprep.mubr.f32.mxu0 %v600_v55  ;;  %v1250_v49 = vld [vmem:[%s5810_s13 + $0xdf8] sm:$0xff] }
 0x27f   : > { %2952 = vmatmul.mubr.f32.gmra.mrb[10].mxu1 %v591_v54  ;;  %v655_v54 = vld [vmem:[%s5802_s29 + $0x360] sm:$0xff] }
 0x280   : > { %2957 = vmatprep.mubr.f32.mxu1 %v600_v55  ;;  %v664_v55 = vld [vmem:[%s5802_s29 + $0x3a8] sm:$0xff] }
 0x281   : > { %1930 = vmatmul.mubr.f32.gmra.mrb[12].mxu0 %v599_v62 }
 0x282   : > { %4421 = vmatpush1.bf16.xpose.msra.mxu0 %v4420_v63  ;;  %1935 = vmatprep.mubr.f32.mxu0 %v608_v3  ;;  %v4436_v63 = vpack.c.bf16 %v929_v57, %v921_v56  ;;  %v985_v56 = vld [vmem:[%s5810_s13 + $0x5b0] sm:$0xff] }
 0x283   : > { %2958 = vmatmul.mubr.f32.gmra.mrb[12].mxu1 %v599_v62  ;;  %4423 = vmatprep.subr.bf16.mxu0 %v4422_v4  ;;  %v663_v62 = vld [vmem:[%s5802_s29 + $0x3a0] sm:$0xff]  ;;  %v4438_v4 = vpack.c.bf16 %v946_v61, %v938_v60  ;;  %v993_v57 = vld [vmem:[%s5810_s13 + $0x5f0] sm:$0xff]  ;;  %v1002_v60 = vld [vmem:[%s5810_s13 + $0x638] sm:$0xff] }
 0x284   : > { %4677 = vmatpush1.bf16.xpose.msra.mxu1 %v4676_v2  ;;  %2963 = vmatprep.mubr.f32.mxu1 %v608_v3  ;;  %v4692_v2 = vpack.c.bf16 %v1185_v59, %v1177_v58  ;;  %v672_v3 = vld [vmem:[%s5802_s29 + $0x3e8] sm:$0xff]  ;;  %v1241_v58 = vld [vmem:[%s5810_s13 + $0xdb0] sm:$0xff]  ;;  %v1010_v61 = vld [vmem:[%s5810_s13 + $0x678] sm:$0xff] }
 0x285   : > { %1936 = vmatmul.mubr.f32.gmra.mrb[14].mxu0 %v607_v6  ;;  %4679 = vmatprep.subr.bf16.mxu1 %v4678_v5  ;;  %v4694_v5 = vpack.c.bf16 %v1202_v1, %v1194_v0  ;;  %v1249_v59 = vld [vmem:[%s5810_s13 + $0xdf0] sm:$0xff]  ;;  %v1258_v0 = vld [vmem:[%s5810_s13 + $0xe38] sm:$0xff] }
 0x286   : > { %1941 = vmatprep.mubr.f32.mxu0 %v616_v7  ;;  %v1266_v1 = vld [vmem:[%s5810_s13 + $0xe78] sm:$0xff] }
 0x287   : > { %2964 = vmatmul.mubr.f32.gmra.mrb[14].mxu1 %v607_v6  ;;  %v671_v6 = vld [vmem:[%s5802_s29 + $0x3e0] sm:$0xff] }
 0x288   : > { %2969 = vmatprep.mubr.f32.mxu1 %v616_v7  ;;  %v680_v7 = vld [vmem:[%s5802_s29 + $0x428] sm:$0xff] }
 0x289   : > { %1942 = vmatmul.mubr.f32.gmra.mrb[16].mxu0 %v615_v14 }
 0x28a   : > { %4425 = vmatpush1.bf16.xpose.msra.mxu0 %v4424_v15  ;;  %1947 = vmatprep.mubr.f32.mxu0 %v624_v19  ;;  %v4440_v15 = vpack.c.bf16 %v945_v9, %v937_v8  ;;  %v1001_v8 = vld [vmem:[%s5810_s13 + $0x630] sm:$0xff] }
 0x28b   : > { %2970 = vmatmul.mubr.f32.gmra.mrb[16].mxu1 %v615_v14  ;;  %4427 = vmatprep.subr.bf16.mxu0 %v4426_v20  ;;  %v679_v14 = vld [vmem:[%s5802_s29 + $0x420] sm:$0xff]  ;;  %v4442_v20 = vpack.c.bf16 %v962_v13, %v954_v12  ;;  %v1009_v9 = vld [vmem:[%s5810_s13 + $0x670] sm:$0xff]  ;;  %v1018_v12 = vld [vmem:[%s5810_s13 + $0x6b8] sm:$0xff] }
 0x28c   : > { %4681 = vmatpush1.bf16.xpose.msra.mxu1 %v4680_v18  ;;  %2975 = vmatprep.mubr.f32.mxu1 %v624_v19  ;;  %v4696_v18 = vpack.c.bf16 %v1201_v11, %v1193_v10  ;;  %v688_v19 = vld [vmem:[%s5802_s29 + $0x468] sm:$0xff]  ;;  %v1257_v10 = vld [vmem:[%s5810_s13 + $0xe30] sm:$0xff]  ;;  %v1026_v13 = vld [vmem:[%s5810_s13 + $0x6f8] sm:$0xff] }
 0x28d   : > { %1948 = vmatmul.mubr.f32.gmra.mrb[18].mxu0 %v623_v22  ;;  %4683 = vmatprep.subr.bf16.mxu1 %v4682_v21  ;;  %v4698_v21 = vpack.c.bf16 %v1218_v17, %v1210_v16  ;;  %v1265_v11 = vld [vmem:[%s5810_s13 + $0xe70] sm:$0xff]  ;;  %v1274_v16 = vld [vmem:[%s5810_s13 + $0xeb8] sm:$0xff] }
 0x28e   : > { %1953 = vmatprep.mubr.f32.mxu0 %v632_v23  ;;  %v1282_v17 = vld [vmem:[%s5810_s13 + $0xef8] sm:$0xff] }
 0x28f   : > { %2976 = vmatmul.mubr.f32.gmra.mrb[18].mxu1 %v623_v22  ;;  %v687_v22 = vld [vmem:[%s5802_s29 + $0x460] sm:$0xff] }
 0x290   : > { %2981 = vmatprep.mubr.f32.mxu1 %v632_v23  ;;  %v696_v23 = vld [vmem:[%s5802_s29 + $0x4a8] sm:$0xff] }
 0x291   : > { %1954 = vmatmul.mubr.f32.gmra.mrb[20].mxu0 %v631_v30 }
 0x292   : > { %4429 = vmatpush1.bf16.xpose.msra.mxu0 %v4428_v31  ;;  %1959 = vmatprep.mubr.f32.mxu0 %v640_v35  ;;  %v4444_v31 = vpack.c.bf16 %v961_v25, %v953_v24  ;;  %v1017_v24 = vld [vmem:[%s5810_s13 + $0x6b0] sm:$0xff] }
 0x293   : > { %2982 = vmatmul.mubr.f32.gmra.mrb[20].mxu1 %v631_v30  ;;  %4431 = vmatprep.subr.bf16.mxu0 %v4430_v36  ;;  %v695_v30 = vld [vmem:[%s5802_s29 + $0x4a0] sm:$0xff]  ;;  %v4446_v36 = vpack.c.bf16 %v978_v29, %v970_v28  ;;  %v1025_v25 = vld [vmem:[%s5810_s13 + $0x6f0] sm:$0xff]  ;;  %v1034_v28 = vld [vmem:[%s5810_s13 + $0x738] sm:$0xff] }
 0x294   : > { %4685 = vmatpush1.bf16.xpose.msra.mxu1 %v4684_v34  ;;  %2987 = vmatprep.mubr.f32.mxu1 %v640_v35  ;;  %v4700_v34 = vpack.c.bf16 %v1217_v27, %v1209_v26  ;;  %v704_v35 = vld [vmem:[%s5802_s29 + $0x4e8] sm:$0xff]  ;;  %v1273_v26 = vld [vmem:[%s5810_s13 + $0xeb0] sm:$0xff]  ;;  %v1042_v29 = vld [vmem:[%s5810_s13 + $0x778] sm:$0xff] }
 0x295   : > { %1960 = vmatmul.mubr.f32.gmra.mrb[22].mxu0 %v639_v38  ;;  %4687 = vmatprep.subr.bf16.mxu1 %v4686_v37  ;;  %v4702_v37 = vpack.c.bf16 %v1234_v33, %v1226_v32  ;;  %v1281_v27 = vld [vmem:[%s5810_s13 + $0xef0] sm:$0xff]  ;;  %v1290_v32 = vld [vmem:[%s5810_s13 + $0xf38] sm:$0xff] }
 0x296   : > { %1965 = vmatprep.mubr.f32.mxu0 %v648_v39  ;;  %v1298_v33 = vld [vmem:[%s5810_s13 + $0xf78] sm:$0xff] }
 0x297   : > { %2988 = vmatmul.mubr.f32.gmra.mrb[22].mxu1 %v639_v38  ;;  %v703_v38 = vld [vmem:[%s5802_s29 + $0x4e0] sm:$0xff] }
 0x298   : > { %2993 = vmatprep.mubr.f32.mxu1 %v648_v39  ;;  %v712_v39 = vld [vmem:[%s5802_s29 + $0x528] sm:$0xff] }
 0x299   : > { %1966 = vmatmul.mubr.f32.gmra.mrb[24].mxu0 %v647_v46 }
 0x29a   : > { %4433 = vmatpush1.bf16.xpose.msra.mxu0 %v4432_v47  ;;  %1971 = vmatprep.mubr.f32.mxu0 %v656_v51  ;;  %v4448_v47 = vpack.c.bf16 %v977_v41, %v969_v40  ;;  %v1033_v40 = vld [vmem:[%s5810_s13 + $0x730] sm:$0xff] }
 0x29b   : > { %2994 = vmatmul.mubr.f32.gmra.mrb[24].mxu1 %v647_v46  ;;  %4435 = vmatprep.subr.bf16.mxu0 %v4434_v52  ;;  %v711_v46 = vld [vmem:[%s5802_s29 + $0x520] sm:$0xff]  ;;  %v4450_v52 = vpack.c.bf16 %v994_v45, %v986_v44  ;;  %v1041_v41 = vld [vmem:[%s5810_s13 + $0x770] sm:$0xff]  ;;  %v1050_v44 = vld [vmem:[%s5810_s13 + $0x7b8] sm:$0xff] }
 0x29c   : > { %4689 = vmatpush1.bf16.xpose.msra.mxu1 %v4688_v50  ;;  %2999 = vmatprep.mubr.f32.mxu1 %v656_v51  ;;  %v4704_v50 = vpack.c.bf16 %v1233_v43, %v1225_v42  ;;  %v720_v51 = vld [vmem:[%s5802_s29 + $0x568] sm:$0xff]  ;;  %v1289_v42 = vld [vmem:[%s5810_s13 + $0xf30] sm:$0xff]  ;;  %v1058_v45 = vld [vmem:[%s5810_s13 + $0x7f8] sm:$0xff] }
 0x29d   : > { %1972 = vmatmul.mubr.f32.gmra.mrb[26].mxu0 %v655_v54  ;;  %4691 = vmatprep.subr.bf16.mxu1 %v4690_v53  ;;  %v4706_v53 = vpack.c.bf16 %v1250_v49, %v1242_v48  ;;  %v1297_v43 = vld [vmem:[%s5810_s13 + $0xf70] sm:$0xff]  ;;  %v1306_v48 = vld [vmem:[%s5810_s13 + $0xfb8] sm:$0xff] }
 0x29e   : > { %1977 = vmatprep.mubr.f32.mxu0 %v664_v55  ;;  %v1314_v49 = vld [vmem:[%s5810_s13 + $0xff8] sm:$0xff] }
 0x29f   : > { %3000 = vmatmul.mubr.f32.gmra.mrb[26].mxu1 %v655_v54  ;;  %v719_v54 = vld [vmem:[%s5802_s29 + $0x560] sm:$0xff] }
 0x2a0   : > { %3005 = vmatprep.mubr.f32.mxu1 %v664_v55  ;;  %v728_v55 = vld [vmem:[%s5802_s29 + $0x5a8] sm:$0xff] }
 0x2a1   : > { %1978 = vmatmul.mubr.f32.gmra.mrb[28].mxu0 %v663_v62 }
 0x2a2   : > { %4437 = vmatpush1.bf16.xpose.msra.mxu0 %v4436_v63  ;;  %1983 = vmatprep.mubr.f32.mxu0 %v672_v3  ;;  %v4452_v63 = vpack.c.bf16 %v993_v57, %v985_v56  ;;  %v1049_v56 = vld [vmem:[%s5810_s13 + $0x7b0] sm:$0xff] }
 0x2a3   : > { %3006 = vmatmul.mubr.f32.gmra.mrb[28].mxu1 %v663_v62  ;;  %4439 = vmatprep.subr.bf16.mxu0 %v4438_v4  ;;  %v727_v62 = vld [vmem:[%s5802_s29 + $0x5a0] sm:$0xff]  ;;  %v4454_v4 = vpack.c.bf16 %v1010_v61, %v1002_v60  ;;  %v1057_v57 = vld [vmem:[%s5810_s13 + $0x7f0] sm:$0xff] }
 0x2a4   : > { %4693 = vmatpush1.bf16.xpose.msra.mxu1 %v4692_v2  ;;  %3011 = vmatprep.mubr.f32.mxu1 %v672_v3  ;;  %v4708_v2 = vpack.c.bf16 %v1249_v59, %v1241_v58  ;;  %v736_v3 = vld [vmem:[%s5802_s29 + $0x5e8] sm:$0xff]  ;;  %v1305_v58 = vld [vmem:[%s5810_s13 + $0xfb0] sm:$0xff]  ;;  %v791_v60 = vld [vmem:[%s5802_s29 + $0x7a0] sm:$0xff]  ;;  %v4468_v61 = vpack.c.bf16 %v1057_v57, %v1049_v56 }
 0x2a5   : > { %1984 = vmatmul.mubr.f32.gmra.mrb[30].mxu0 %v671_v6  ;;  %4695 = vmatprep.subr.bf16.mxu1 %v4694_v5  ;;  %v4710_v5 = vpack.c.bf16 %v1266_v1, %v1258_v0  ;;  %v1313_v59 = vld [vmem:[%s5810_s13 + $0xff0] sm:$0xff]  ;;  %v799_v0 = vld [vmem:[%s5802_s29 + $0x7e0] sm:$0xff]  ;;  %v554_v1 = vld [vmem:[%s5802_s29 + $0x38] sm:$0xff] }
 0x2a6   : > { %1989 = vmatprep.mubr.f32.mxu0 %v680_v7  ;;  %v769_v56 = vld [vmem:[%s5802_s29 + $0x6f0] sm:$0xff]  ;;  %v778_v57 = vld [vmem:[%s5802_s29 + $0x738] sm:$0xff] }
 0x2a7   : > { %3012 = vmatmul.mubr.f32.gmra.mrb[30].mxu1 %v671_v6  ;;  %v735_v6 = vld [vmem:[%s5802_s29 + $0x5e0] sm:$0xff] }
 0x2a8   : > { %3017 = vmatprep.mubr.f32.mxu1 %v680_v7  ;;  %v744_v7 = vld [vmem:[%s5802_s29 + $0x628] sm:$0xff] }
 0x2a9   : > { %1990 = vmatmul.mubr.f32.gmra.mrb[32].mxu0 %v679_v14 }
 0x2aa   : > { %4441 = vmatpush1.bf16.xpose.msra.mxu0 %v4440_v15  ;;  %1995 = vmatprep.mubr.f32.mxu0 %v688_v19  ;;  %v4456_v15 = vpack.c.bf16 %v1009_v9, %v1001_v8  ;;  %v577_v8 = vld [vmem:[%s5802_s29 + $0xf0] sm:$0xff]  ;;  %v586_v9 = vld [vmem:[%s5802_s29 + $0x138] sm:$0xff] }
 0x2ab   : > { %3018 = vmatmul.mubr.f32.gmra.mrb[32].mxu1 %v679_v14  ;;  %4443 = vmatprep.subr.bf16.mxu0 %v4442_v20  ;;  %v743_v14 = vld [vmem:[%s5802_s29 + $0x620] sm:$0xff]  ;;  %v4458_v20 = vpack.c.bf16 %v1026_v13, %v1018_v12  ;;  %v593_v12 = vld [vmem:[%s5802_s29 + $0x170] sm:$0xff]  ;;  %v602_v13 = vld [vmem:[%s5802_s29 + $0x1b8] sm:$0xff] }
 0x2ac   : > { %4697 = vmatpush1.bf16.xpose.msra.mxu1 %v4696_v18  ;;  %3023 = vmatprep.mubr.f32.mxu1 %v688_v19  ;;  %v4712_v18 = vpack.c.bf16 %v1265_v11, %v1257_v10  ;;  %v752_v19 = vld [vmem:[%s5802_s29 + $0x668] sm:$0xff]  ;;  %v585_v10 = vld [vmem:[%s5802_s29 + $0x130] sm:$0xff]  ;;  %v594_v11 = vld [vmem:[%s5802_s29 + $0x178] sm:$0xff] }
 0x2ad   : > { %1996 = vmatmul.mubr.f32.gmra.mrb[34].mxu0 %v687_v22  ;;  %4699 = vmatprep.subr.bf16.mxu1 %v4698_v21  ;;  %v4714_v21 = vpack.c.bf16 %v1282_v17, %v1274_v16  ;;  %v609_v16 = vld [vmem:[%s5802_s29 + $0x1f0] sm:$0xff]  ;;  %v618_v17 = vld [vmem:[%s5802_s29 + $0x238] sm:$0xff] }
 0x2ae   : > { %2001 = vmatprep.mubr.f32.mxu0 %v696_v23 }
 0x2af   : > { %3024 = vmatmul.mubr.f32.gmra.mrb[34].mxu1 %v687_v22  ;;  %v751_v22 = vld [vmem:[%s5802_s29 + $0x660] sm:$0xff] }
 0x2b0   : > { %3029 = vmatprep.mubr.f32.mxu1 %v696_v23  ;;  %v760_v23 = vld [vmem:[%s5802_s29 + $0x6a8] sm:$0xff] }
 0x2b1   : > { %2002 = vmatmul.mubr.f32.gmra.mrb[36].mxu0 %v695_v30 }
 0x2b2   : > { %4445 = vmatpush1.bf16.xpose.msra.mxu0 %v4444_v31  ;;  %2007 = vmatprep.mubr.f32.mxu0 %v704_v35  ;;  %v4460_v31 = vpack.c.bf16 %v1025_v25, %v1017_v24  ;;  %v641_v24 = vld [vmem:[%s5802_s29 + $0x2f0] sm:$0xff]  ;;  %v650_v25 = vld [vmem:[%s5802_s29 + $0x338] sm:$0xff] }
 0x2b3   : > { %3030 = vmatmul.mubr.f32.gmra.mrb[36].mxu1 %v695_v30  ;;  %4447 = vmatprep.subr.bf16.mxu0 %v4446_v36  ;;  %v759_v30 = vld [vmem:[%s5802_s29 + $0x6a0] sm:$0xff]  ;;  %v4462_v36 = vpack.c.bf16 %v1042_v29, %v1034_v28  ;;  %v657_v28 = vld [vmem:[%s5802_s29 + $0x370] sm:$0xff]  ;;  %v666_v29 = vld [vmem:[%s5802_s29 + $0x3b8] sm:$0xff] }
 0x2b4   : > { %4701 = vmatpush1.bf16.xpose.msra.mxu1 %v4700_v34  ;;  %3035 = vmatprep.mubr.f32.mxu1 %v704_v35  ;;  %v4716_v34 = vpack.c.bf16 %v1281_v27, %v1273_v26  ;;  %v768_v35 = vld [vmem:[%s5802_s29 + $0x6e8] sm:$0xff]  ;;  %v649_v26 = vld [vmem:[%s5802_s29 + $0x330] sm:$0xff]  ;;  %v658_v27 = vld [vmem:[%s5802_s29 + $0x378] sm:$0xff] }
 0x2b5   : > { %2008 = vmatmul.mubr.f32.gmra.mrb[38].mxu0 %v703_v38  ;;  %4703 = vmatprep.subr.bf16.mxu1 %v4702_v37  ;;  %v4718_v37 = vpack.c.bf16 %v1298_v33, %v1290_v32  ;;  %v673_v32 = vld [vmem:[%s5802_s29 + $0x3f0] sm:$0xff]  ;;  %v682_v33 = vld [vmem:[%s5802_s29 + $0x438] sm:$0xff] }
 0x2b6   : > { %2013 = vmatprep.mubr.f32.mxu0 %v712_v39 }
 0x2b7   : > { %3036 = vmatmul.mubr.f32.gmra.mrb[38].mxu1 %v703_v38  ;;  %v767_v38 = vld [vmem:[%s5802_s29 + $0x6e0] sm:$0xff] }
 0x2b8   : > { %3041 = vmatprep.mubr.f32.mxu1 %v712_v39  ;;  %v776_v39 = vld [vmem:[%s5802_s29 + $0x728] sm:$0xff] }
 0x2b9   : > { %2014 = vmatmul.mubr.f32.gmra.mrb[40].mxu0 %v711_v46 }
 0x2ba   : > { %4449 = vmatpush1.bf16.xpose.msra.mxu0 %v4448_v47  ;;  %2019 = vmatprep.mubr.f32.mxu0 %v720_v51  ;;  %v4464_v47 = vpack.c.bf16 %v1041_v41, %v1033_v40  ;;  %v705_v40 = vld [vmem:[%s5802_s29 + $0x4f0] sm:$0xff]  ;;  %v714_v41 = vld [vmem:[%s5802_s29 + $0x538] sm:$0xff] }
 0x2bb   : > { %3042 = vmatmul.mubr.f32.gmra.mrb[40].mxu1 %v711_v46  ;;  %4451 = vmatprep.subr.bf16.mxu0 %v4450_v52  ;;  %v775_v46 = vld [vmem:[%s5802_s29 + $0x720] sm:$0xff]  ;;  %v4466_v52 = vpack.c.bf16 %v1058_v45, %v1050_v44  ;;  %v721_v44 = vld [vmem:[%s5802_s29 + $0x570] sm:$0xff]  ;;  %v730_v45 = vld [vmem:[%s5802_s29 + $0x5b8] sm:$0xff] }
 0x2bc   : > { %4705 = vmatpush1.bf16.xpose.msra.mxu1 %v4704_v50  ;;  %3047 = vmatprep.mubr.f32.mxu1 %v720_v51  ;;  %v4720_v50 = vpack.c.bf16 %v1297_v43, %v1289_v42  ;;  %v784_v51 = vld [vmem:[%s5802_s29 + $0x768] sm:$0xff]  ;;  %v713_v42 = vld [vmem:[%s5802_s29 + $0x530] sm:$0xff]  ;;  %v722_v43 = vld [vmem:[%s5802_s29 + $0x578] sm:$0xff] }
 0x2bd   : > { %2020 = vmatmul.mubr.f32.gmra.mrb[42].mxu0 %v719_v54  ;;  %4707 = vmatprep.subr.bf16.mxu1 %v4706_v53  ;;  %v4722_v53 = vpack.c.bf16 %v1314_v49, %v1306_v48  ;;  %v737_v48 = vld [vmem:[%s5802_s29 + $0x5f0] sm:$0xff]  ;;  %v746_v49 = vld [vmem:[%s5802_s29 + $0x638] sm:$0xff] }
 0x2be   : > { %2025 = vmatprep.mubr.f32.mxu0 %v728_v55 }
 0x2bf   : > { %3048 = vmatmul.mubr.f32.gmra.mrb[42].mxu1 %v719_v54  ;;  %v783_v54 = vld [vmem:[%s5802_s29 + $0x760] sm:$0xff] }
 0x2c0   : > { %3053 = vmatprep.mubr.f32.mxu1 %v728_v55  ;;  %v792_v55 = vld [vmem:[%s5802_s29 + $0x7a8] sm:$0xff] }
 0x2c1   : > { %2026 = vmatmul.mubr.f32.gmra.mrb[44].mxu0 %v727_v62 }
 0x2c2   : > { %4453 = vmatpush1.bf16.xpose.msra.mxu0 %v4452_v63  ;;  %2031 = vmatprep.mubr.f32.mxu0 %v736_v3  ;;  %v800_v63 = vld [vmem:[%s5802_s29 + $0x7e8] sm:$0xff] }
 0x2c3   : > { %3054 = vmatmul.mubr.f32.gmra.mrb[44].mxu1 %v727_v62  ;;  %4455 = vmatprep.subr.bf16.mxu0 %v4454_v4  ;;  %v4724_v62 = vpack.c.bf16 %v1313_v59, %v1305_v58  ;;  %v561_v4 = vld [vmem:[%s5802_s29 + $0x70] sm:$0xff]  ;;  %v786_v59 = vld [vmem:[%s5802_s29 + $0x778] sm:$0xff] }
 0x2c4   : > { %4709 = vmatpush1.bf16.xpose.msra.mxu1 %v4708_v2  ;;  %3059 = vmatprep.mubr.f32.mxu1 %v736_v3  ;;  %v553_v2 = vld [vmem:[%s5802_s29 + $0x30] sm:$0xff]  ;;  %v562_v3 = vld [vmem:[%s5802_s29 + $0x78] sm:$0xff] }
 0x2c5   : > { %2032 = vmatmul.mubr.f32.gmra.mrb[46].mxu0 %v735_v6  ;;  %4711 = vmatprep.subr.bf16.mxu1 %v4710_v5  ;;  %v570_v5 = vld [vmem:[%s5802_s29 + $0xb8] sm:$0xff]  ;;  %v777_v58 = vld [vmem:[%s5802_s29 + $0x730] sm:$0xff] }
 0x2c6   : > { %2037 = vmatprep.mubr.f32.mxu0 %v744_v7 }
 0x2c7   : > { %3060 = vmatmul.mubr.f32.gmra.mrb[46].mxu1 %v735_v6  ;;  %v569_v6 = vld [vmem:[%s5802_s29 + $0xb0] sm:$0xff] }
 0x2c8   : > { %3065 = vmatprep.mubr.f32.mxu1 %v744_v7  ;;  %v578_v7 = vld [vmem:[%s5802_s29 + $0xf8] sm:$0xff] }
 0x2c9   : > { %2038 = vmatmul.mubr.f32.gmra.mrb[48].mxu0 %v743_v14 }
 0x2ca   : > { %4457 = vmatpush1.bf16.xpose.msra.mxu0 %v4456_v15  ;;  %2043 = vmatprep.mubr.f32.mxu0 %v752_v19  ;;  %v610_v15 = vld [vmem:[%s5802_s29 + $0x1f8] sm:$0xff] }
 0x2cb   : > { %3066 = vmatmul.mubr.f32.gmra.mrb[48].mxu1 %v743_v14  ;;  %4459 = vmatprep.subr.bf16.mxu0 %v4458_v20  ;;  %v601_v14 = vld [vmem:[%s5802_s29 + $0x1b0] sm:$0xff] }
 0x2cc   : > { %4713 = vmatpush1.bf16.xpose.msra.mxu1 %v4712_v18  ;;  %3071 = vmatprep.mubr.f32.mxu1 %v752_v19  ;;  %v617_v18 = vld [vmem:[%s5802_s29 + $0x230] sm:$0xff]  ;;  %v626_v19 = vld [vmem:[%s5802_s29 + $0x278] sm:$0xff] }
 0x2cd   : > { %2044 = vmatmul.mubr.f32.gmra.mrb[50].mxu0 %v751_v22  ;;  %4715 = vmatprep.subr.bf16.mxu1 %v4714_v21  ;;  %v625_v20 = vld [vmem:[%s5802_s29 + $0x270] sm:$0xff]  ;;  %v634_v21 = vld [vmem:[%s5802_s29 + $0x2b8] sm:$0xff] }
 0x2ce   : > { %2049 = vmatprep.mubr.f32.mxu0 %v760_v23 }
 0x2cf   : > { %3072 = vmatmul.mubr.f32.gmra.mrb[50].mxu1 %v751_v22  ;;  %v633_v22 = vld [vmem:[%s5802_s29 + $0x2b0] sm:$0xff] }
 0x2d0   : > { %3077 = vmatprep.mubr.f32.mxu1 %v760_v23  ;;  %v642_v23 = vld [vmem:[%s5802_s29 + $0x2f8] sm:$0xff] }
 0x2d1   : > { %2050 = vmatmul.mubr.f32.gmra.mrb[52].mxu0 %v759_v30 }
 0x2d2   : > { %4461 = vmatpush1.bf16.xpose.msra.mxu0 %v4460_v31  ;;  %2055 = vmatprep.mubr.f32.mxu0 %v768_v35  ;;  %v674_v31 = vld [vmem:[%s5802_s29 + $0x3f8] sm:$0xff] }
 0x2d3   : > { %3078 = vmatmul.mubr.f32.gmra.mrb[52].mxu1 %v759_v30  ;;  %4463 = vmatprep.subr.bf16.mxu0 %v4462_v36  ;;  %v665_v30 = vld [vmem:[%s5802_s29 + $0x3b0] sm:$0xff] }
 0x2d4   : > { %4717 = vmatpush1.bf16.xpose.msra.mxu1 %v4716_v34  ;;  %3083 = vmatprep.mubr.f32.mxu1 %v768_v35  ;;  %v681_v34 = vld [vmem:[%s5802_s29 + $0x430] sm:$0xff]  ;;  %v690_v35 = vld [vmem:[%s5802_s29 + $0x478] sm:$0xff] }
 0x2d5   : > { %2056 = vmatmul.mubr.f32.gmra.mrb[54].mxu0 %v767_v38  ;;  %4719 = vmatprep.subr.bf16.mxu1 %v4718_v37  ;;  %v689_v36 = vld [vmem:[%s5802_s29 + $0x470] sm:$0xff]  ;;  %v698_v37 = vld [vmem:[%s5802_s29 + $0x4b8] sm:$0xff] }
 0x2d6   : > { %2061 = vmatprep.mubr.f32.mxu0 %v776_v39 }
 0x2d7   : > { %3084 = vmatmul.mubr.f32.gmra.mrb[54].mxu1 %v767_v38  ;;  %v697_v38 = vld [vmem:[%s5802_s29 + $0x4b0] sm:$0xff] }
 0x2d8   : > { %3089 = vmatprep.mubr.f32.mxu1 %v776_v39  ;;  %v706_v39 = vld [vmem:[%s5802_s29 + $0x4f8] sm:$0xff] }
 0x2d9   : > { %2062 = vmatmul.mubr.f32.gmra.mrb[56].mxu0 %v775_v46 }
 0x2da   : > { %4465 = vmatpush1.bf16.xpose.msra.mxu0 %v4464_v47  ;;  %2067 = vmatprep.mubr.f32.mxu0 %v784_v51  ;;  %v738_v47 = vld [vmem:[%s5802_s29 + $0x5f8] sm:$0xff] }
 0x2db   : > { %3090 = vmatmul.mubr.f32.gmra.mrb[56].mxu1 %v775_v46  ;;  %4467 = vmatprep.subr.bf16.mxu0 %v4466_v52  ;;  %v729_v46 = vld [vmem:[%s5802_s29 + $0x5b0] sm:$0xff] }
 0x2dc   : > { %4721 = vmatpush1.bf16.xpose.msra.mxu1 %v4720_v50  ;;  %3095 = vmatprep.mubr.f32.mxu1 %v784_v51  ;;  %v745_v50 = vld [vmem:[%s5802_s29 + $0x630] sm:$0xff]  ;;  %v754_v51 = vld [vmem:[%s5802_s29 + $0x678] sm:$0xff] }
 0x2dd   : > { %2068 = vmatmul.mubr.f32.gmra.mrb[58].mxu0 %v783_v54  ;;  %4723 = vmatprep.subr.bf16.mxu1 %v4722_v53  ;;  %v753_v52 = vld [vmem:[%s5802_s29 + $0x670] sm:$0xff]  ;;  %v762_v53 = vld [vmem:[%s5802_s29 + $0x6b8] sm:$0xff] }
 0x2de   : > { %2073 = vmatprep.mubr.f32.mxu0 %v792_v55 }
 0x2df   : > { %3096 = vmatmul.mubr.f32.gmra.mrb[58].mxu1 %v783_v54  ;;  %v761_v54 = vld [vmem:[%s5802_s29 + $0x6b0] sm:$0xff] }
 0x2e0   : > { %3101 = vmatprep.mubr.f32.mxu1 %v792_v55  ;;  %v770_v55 = vld [vmem:[%s5802_s29 + $0x6f8] sm:$0xff] }
 0x2e1   : > { %2074 = vmatmul.mubr.f32.gmra.mrb[60].mxu0 %v791_v60 }
 0x2e2   : > { %4469 = vmatpush1.bf16.xpose.msra.mxu0 %v4468_v61  ;;  %2079 = vmatprep.mubr.f32.mxu0 %v800_v63  ;;  %v794_v61 = vld [vmem:[%s5802_s29 + $0x7b8] sm:$0xff] }
 0x2e3   : > { %3102 = vmatmul.mubr.f32.gmra.mrb[60].mxu1 %v791_v60  ;;  %v785_v60 = vld [vmem:[%s5802_s29 + $0x770] sm:$0xff] }
 0x2e4   : > { %4725 = vmatpush1.bf16.xpose.msra.mxu1 %v4724_v62  ;;  %3107 = vmatprep.mubr.f32.mxu1 %v800_v63  ;;  %v793_v62 = vld [vmem:[%s5802_s29 + $0x7b0] sm:$0xff]  ;;  %v802_v63 = vld [vmem:[%s5802_s29 + $0x7f8] sm:$0xff] }
 0x2e5   : > { %2080 = vmatmul.mubr.f32.gmra.mrb[62].mxu0 %v799_v0 }
 0x2e6   : > { %2150 = vmatprep.mubr.f32.mxu0 %v554_v1 }
 0x2e7   : > { %3108 = vmatmul.mubr.f32.gmra.mrb[62].mxu1 %v799_v0  ;;  %v801_v0 = vld [vmem:[%s5802_s29 + $0x7f0] sm:$0xff] }
 0x2e8   : > { %3178 = vmatprep.mubr.f32.mxu1 %v554_v1  ;;  %v419_v1 = vld [vmem:[#allocation2] sm:$0xff] }
 0x2e9   : > { %2151 = vmatmul.mubr.f32.vlgmr.msra.gmra.mrb[0].mxu0 %v553_v2 }
 0x2ea   : > { %2156 = vmatprep.mubr.f32.mxu0 %v562_v3 }
 0x2eb   : > { %3179 = vmatmul.mubr.f32.vlgmr.msra.gmra.mrb[0].mxu1 %v553_v2  ;;  %v421_v2 = vld [vmem:[#allocation2 + $0x10] sm:$0xff] }
 0x2ec   : > { %3184 = vmatprep.mubr.f32.mxu1 %v562_v3  ;;  %v420_v3 = vld [vmem:[#allocation2 + $0x8] sm:$0xff] }
 0x2ed   : > { %2157 = vmatmul.mubr.f32.gmra.mrb[2].mxu0 %v561_v4 }
 0x2ee   : > { %2162 = vmatprep.mubr.f32.mxu0 %v570_v5 }
 0x2ef   : > { %3185 = vmatmul.mubr.f32.gmra.mrb[2].mxu1 %v561_v4 }
 0x2f0   : > { %3190 = vmatprep.mubr.f32.mxu1 %v570_v5  ;;  %v422_v5 = vld [vmem:[#allocation2 + $0x18] sm:$0xff] }
 0x2f1   : > { %2163 = vmatmul.mubr.f32.gmra.mrb[4].mxu0 %v569_v6 }
 0x2f2   : > { %2168 = vmatprep.mubr.f32.mxu0 %v578_v7 }
 0x2f3   : > { %3191 = vmatmul.mubr.f32.gmra.mrb[4].mxu1 %v569_v6 }
 0x2f4   : > { %3196 = vmatprep.mubr.f32.mxu1 %v578_v7 }
 0x2f5   : > { %2169 = vmatmul.mubr.f32.gmra.mrb[6].mxu0 %v577_v8 }
 0x2f6   : > { %2174 = vmatprep.mubr.f32.mxu0 %v586_v9 }
 0x2f7   : > { %3197 = vmatmul.mubr.f32.gmra.mrb[6].mxu1 %v577_v8 }
 0x2f8   : > { %3202 = vmatprep.mubr.f32.mxu1 %v586_v9 }
 0x2f9   : > { %2175 = vmatmul.mubr.f32.gmra.mrb[8].mxu0 %v585_v10 }
 0x2fa   : > { %2180 = vmatprep.mubr.f32.mxu0 %v594_v11 }
 0x2fb   : > { %3203 = vmatmul.mubr.f32.gmra.mrb[8].mxu1 %v585_v10 }
 0x2fc   : > { %3208 = vmatprep.mubr.f32.mxu1 %v594_v11 }
 0x2fd   : > { %2181 = vmatmul.mubr.f32.gmra.mrb[10].mxu0 %v593_v12 }
 0x2fe   : > { %2186 = vmatprep.mubr.f32.mxu0 %v602_v13 }
 0x2ff   : > { %3209 = vmatmul.mubr.f32.gmra.mrb[10].mxu1 %v593_v12  ;;  %v423_v12 = vld [vmem:[#allocation2 + $0x20] sm:$0xff] }
 0x300   : > { %3214 = vmatprep.mubr.f32.mxu1 %v602_v13 }
 0x301   : > { %2187 = vmatmul.mubr.f32.gmra.mrb[12].mxu0 %v601_v14 }
 0x302   : > { %2192 = vmatprep.mubr.f32.mxu0 %v610_v15 }
 0x303   : > { %3215 = vmatmul.mubr.f32.gmra.mrb[12].mxu1 %v601_v14  ;;  %v425_v14 = vld [vmem:[#allocation2 + $0x30] sm:$0xff] }
 0x304   : > { %3220 = vmatprep.mubr.f32.mxu1 %v610_v15  ;;  %v424_v15 = vld [vmem:[#allocation2 + $0x28] sm:$0xff] }
 0x305   : > { %2193 = vmatmul.mubr.f32.gmra.mrb[14].mxu0 %v609_v16 }
 0x306   : > { %2198 = vmatprep.mubr.f32.mxu0 %v618_v17 }
 0x307   : > { %3221 = vmatmul.mubr.f32.gmra.mrb[14].mxu1 %v609_v16 }
 0x308   : > { %3226 = vmatprep.mubr.f32.mxu1 %v618_v17  ;;  %v426_v17 = vld [vmem:[#allocation2 + $0x38] sm:$0xff] }
 0x309   : > { %2199 = vmatmul.mubr.f32.gmra.mrb[16].mxu0 %v617_v18 }
 0x30a   : > { %2204 = vmatprep.mubr.f32.mxu0 %v626_v19 }
 0x30b   : > { %3227 = vmatmul.mubr.f32.gmra.mrb[16].mxu1 %v617_v18 }
 0x30c   : > { %3232 = vmatprep.mubr.f32.mxu1 %v626_v19 }
 0x30d   : > { %2205 = vmatmul.mubr.f32.gmra.mrb[18].mxu0 %v625_v20 }
 0x30e   : > { %2210 = vmatprep.mubr.f32.mxu0 %v634_v21 }
 0x30f   : > { %3233 = vmatmul.mubr.f32.gmra.mrb[18].mxu1 %v625_v20 }
 0x310   : > { %3238 = vmatprep.mubr.f32.mxu1 %v634_v21 }
 0x311   : > { %2211 = vmatmul.mubr.f32.gmra.mrb[20].mxu0 %v633_v22 }
 0x312   : > { %2216 = vmatprep.mubr.f32.mxu0 %v642_v23 }
 0x313   : > { %3239 = vmatmul.mubr.f32.gmra.mrb[20].mxu1 %v633_v22 }
 0x314   : > { %3244 = vmatprep.mubr.f32.mxu1 %v642_v23 }
 0x315   : > { %2217 = vmatmul.mubr.f32.gmra.mrb[22].mxu0 %v641_v24 }
 0x316   : > { %2222 = vmatprep.mubr.f32.mxu0 %v650_v25 }
 0x317   : > { %3245 = vmatmul.mubr.f32.gmra.mrb[22].mxu1 %v641_v24  ;;  %v427_v24 = vld [vmem:[#allocation2 + $0x40] sm:$0xff] }
 0x318   : > { %3250 = vmatprep.mubr.f32.mxu1 %v650_v25 }
 0x319   : > { %2223 = vmatmul.mubr.f32.gmra.mrb[24].mxu0 %v649_v26 }
 0x31a   : > { %2228 = vmatprep.mubr.f32.mxu0 %v658_v27 }
 0x31b   : > { %3251 = vmatmul.mubr.f32.gmra.mrb[24].mxu1 %v649_v26  ;;  %v429_v26 = vld [vmem:[#allocation2 + $0x50] sm:$0xff] }
 0x31c   : > { %3256 = vmatprep.mubr.f32.mxu1 %v658_v27  ;;  %v428_v27 = vld [vmem:[#allocation2 + $0x48] sm:$0xff] }
 0x31d   : > { %2229 = vmatmul.mubr.f32.gmra.mrb[26].mxu0 %v657_v28 }
 0x31e   : > { %2234 = vmatprep.mubr.f32.mxu0 %v666_v29 }
 0x31f   : > { %3257 = vmatmul.mubr.f32.gmra.mrb[26].mxu1 %v657_v28 }
 0x320   : > { %3262 = vmatprep.mubr.f32.mxu1 %v666_v29  ;;  %v430_v29 = vld [vmem:[#allocation2 + $0x58] sm:$0xff] }
 0x321   : > { %2235 = vmatmul.mubr.f32.gmra.mrb[28].mxu0 %v665_v30 }
 0x322   : > { %2240 = vmatprep.mubr.f32.mxu0 %v674_v31 }
 0x323   : > { %3263 = vmatmul.mubr.f32.gmra.mrb[28].mxu1 %v665_v30 }
 0x324   : > { %3268 = vmatprep.mubr.f32.mxu1 %v674_v31 }
 0x325   : > { %2241 = vmatmul.mubr.f32.gmra.mrb[30].mxu0 %v673_v32 }
 0x326   : > { %2246 = vmatprep.mubr.f32.mxu0 %v682_v33 }
 0x327   : > { %3269 = vmatmul.mubr.f32.gmra.mrb[30].mxu1 %v673_v32 }
 0x328   : > { %3274 = vmatprep.mubr.f32.mxu1 %v682_v33 }
 0x329   : > { %2247 = vmatmul.mubr.f32.gmra.mrb[32].mxu0 %v681_v34 }
 0x32a   : > { %2252 = vmatprep.mubr.f32.mxu0 %v690_v35 }
 0x32b   : > { %3275 = vmatmul.mubr.f32.gmra.mrb[32].mxu1 %v681_v34 }
 0x32c   : > { %3280 = vmatprep.mubr.f32.mxu1 %v690_v35 }
 0x32d   : > { %2253 = vmatmul.mubr.f32.gmra.mrb[34].mxu0 %v689_v36 }
 0x32e   : > { %2258 = vmatprep.mubr.f32.mxu0 %v698_v37 }
 0x32f   : > { %3281 = vmatmul.mubr.f32.gmra.mrb[34].mxu1 %v689_v36  ;;  %v431_v36 = vld [vmem:[#allocation2 + $0x60] sm:$0xff] }
 0x330   : > { %3286 = vmatprep.mubr.f32.mxu1 %v698_v37 }
 0x331   : > { %2259 = vmatmul.mubr.f32.gmra.mrb[36].mxu0 %v697_v38 }
 0x332   : > { %2264 = vmatprep.mubr.f32.mxu0 %v706_v39 }
 0x333   : > { %3287 = vmatmul.mubr.f32.gmra.mrb[36].mxu1 %v697_v38  ;;  %v433_v38 = vld [vmem:[#allocation2 + $0x70] sm:$0xff] }
 0x334   : > { %3292 = vmatprep.mubr.f32.mxu1 %v706_v39  ;;  %v432_v39 = vld [vmem:[#allocation2 + $0x68] sm:$0xff] }
 0x335   : > { %2265 = vmatmul.mubr.f32.gmra.mrb[38].mxu0 %v705_v40 }
 0x336   : > { %2270 = vmatprep.mubr.f32.mxu0 %v714_v41 }
 0x337   : > { %3293 = vmatmul.mubr.f32.gmra.mrb[38].mxu1 %v705_v40 }
 0x338   : > { %3298 = vmatprep.mubr.f32.mxu1 %v714_v41  ;;  %v434_v41 = vld [vmem:[#allocation2 + $0x78] sm:$0xff] }
 0x339   : > { %2271 = vmatmul.mubr.f32.gmra.mrb[40].mxu0 %v713_v42 }
 0x33a   : > { %2276 = vmatprep.mubr.f32.mxu0 %v722_v43 }
 0x33b   : > { %3299 = vmatmul.mubr.f32.gmra.mrb[40].mxu1 %v713_v42 }
 0x33c   : > { %3304 = vmatprep.mubr.f32.mxu1 %v722_v43 }
 0x33d   : > { %2277 = vmatmul.mubr.f32.gmra.mrb[42].mxu0 %v721_v44 }
 0x33e   : > { %2282 = vmatprep.mubr.f32.mxu0 %v730_v45 }
 0x33f   : > { %3305 = vmatmul.mubr.f32.gmra.mrb[42].mxu1 %v721_v44 }
 0x340   : > { %3310 = vmatprep.mubr.f32.mxu1 %v730_v45 }
 0x341   : > { %2283 = vmatmul.mubr.f32.gmra.mrb[44].mxu0 %v729_v46 }
 0x342   : > { %2288 = vmatprep.mubr.f32.mxu0 %v738_v47 }
 0x343   : > { %3311 = vmatmul.mubr.f32.gmra.mrb[44].mxu1 %v729_v46 }
 0x344   : > { %3316 = vmatprep.mubr.f32.mxu1 %v738_v47 }
 0x345   : > { %2289 = vmatmul.mubr.f32.gmra.mrb[46].mxu0 %v737_v48 }
 0x346   : > { %2294 = vmatprep.mubr.f32.mxu0 %v746_v49 }
 0x347   : > { %3317 = vmatmul.mubr.f32.gmra.mrb[46].mxu1 %v737_v48  ;;  %v435_v48 = vld [vmem:[#allocation2 + $0x80] sm:$0xff] }
 0x348   : > { %3322 = vmatprep.mubr.f32.mxu1 %v746_v49 }
 0x349   : > { %2295 = vmatmul.mubr.f32.gmra.mrb[48].mxu0 %v745_v50 }
 0x34a   : > { %2300 = vmatprep.mubr.f32.mxu0 %v754_v51 }
 0x34b   : > { %3323 = vmatmul.mubr.f32.gmra.mrb[48].mxu1 %v745_v50  ;;  %v437_v50 = vld [vmem:[#allocation2 + $0x90] sm:$0xff] }
 0x34c   : > { %3328 = vmatprep.mubr.f32.mxu1 %v754_v51  ;;  %v436_v51 = vld [vmem:[#allocation2 + $0x88] sm:$0xff] }
 0x34d   : > { %2301 = vmatmul.mubr.f32.gmra.mrb[50].mxu0 %v753_v52 }
 0x34e   : > { %2306 = vmatprep.mubr.f32.mxu0 %v762_v53 }
 0x34f   : > { %3329 = vmatmul.mubr.f32.gmra.mrb[50].mxu1 %v753_v52 }
 0x350   : > { %3334 = vmatprep.mubr.f32.mxu1 %v762_v53  ;;  %v438_v53 = vld [vmem:[#allocation2 + $0x98] sm:$0xff] }
 0x351   : > { %2307 = vmatmul.mubr.f32.gmra.mrb[52].mxu0 %v761_v54 }
 0x352   : > { %2312 = vmatprep.mubr.f32.mxu0 %v770_v55 }
 0x353   : > { %3335 = vmatmul.mubr.f32.gmra.mrb[52].mxu1 %v761_v54 }
 0x354   : > { %3340 = vmatprep.mubr.f32.mxu1 %v770_v55 }
 0x355   : > { %2313 = vmatmul.mubr.f32.gmra.mrb[54].mxu0 %v769_v56 }
 0x356   : > { %2318 = vmatprep.mubr.f32.mxu0 %v778_v57 }
 0x357   : > { %3341 = vmatmul.mubr.f32.gmra.mrb[54].mxu1 %v769_v56 }
 0x358   : > { %3346 = vmatprep.mubr.f32.mxu1 %v778_v57 }
 0x359   : > { %2319 = vmatmul.mubr.f32.gmra.mrb[56].mxu0 %v777_v58 }
 0x35a   : > { %2324 = vmatprep.mubr.f32.mxu0 %v786_v59 }
 0x35b   : > { %3347 = vmatmul.mubr.f32.gmra.mrb[56].mxu1 %v777_v58 }
 0x35c   : > { %3352 = vmatprep.mubr.f32.mxu1 %v786_v59 }
 0x35d   : > { %2325 = vmatmul.mubr.f32.gmra.mrb[58].mxu0 %v785_v60 }
 0x35e   : > { %2330 = vmatprep.mubr.f32.mxu0 %v794_v61 }
 0x35f   : > { %3353 = vmatmul.mubr.f32.gmra.mrb[58].mxu1 %v785_v60  ;;  %v439_v60 = vld [vmem:[#allocation2 + $0xa0] sm:$0xff] }
 0x360   : > { %3358 = vmatprep.mubr.f32.mxu1 %v794_v61 }
 0x361   : > { %2331 = vmatmul.mubr.f32.gmra.mrb[60].mxu0 %v793_v62 }
 0x362   : > { %2336 = vmatprep.mubr.f32.mxu0 %v802_v63 }
 0x363   : > { %3359 = vmatmul.mubr.f32.gmra.mrb[60].mxu1 %v793_v62  ;;  %v441_v62 = vld [vmem:[#allocation2 + $0xb0] sm:$0xff] }
 0x364   : > { %3364 = vmatprep.mubr.f32.mxu1 %v802_v63  ;;  %v440_v63 = vld [vmem:[#allocation2 + $0xa8] sm:$0xff] }
 0x365   : > { %2337 = vmatmul.mubr.f32.gmra.mrb[62].mxu0 %v801_v0 }
 0x367   : > { %3365 = vmatmul.mubr.f32.gmra.mrb[62].mxu1 %v801_v0 }
 0x3bc   : > { %v2152_v4 = vpop.f32.mrb[0].mxu0 }
 0x3bd   : > { %v3371_v6 = vadd.f32 %v2152_v4, %v419_v1  ;;  %v2154_v8 = vpop.f32.mrb[1].mxu0  ;;  %v442_v1 = vld [vmem:[#allocation2 + $0xb8] sm:$0xff] }
 0x3be   : > { %v3180_v7 = vpop.f32.mrb[0].mxu1  ;;  %v3372_v10 = vadd.f32 %v2154_v8, %v420_v3  ;;  %v443_v8 = vld [vmem:[#allocation2 + $0xc0] sm:$0xff] }
 0x3bf   : > { %v3373_v9 = vadd.f32 %v3180_v7, %v421_v2  ;;  %v3182_v11 = vpop.f32.mrb[1].mxu1  ;;  %3499 = vst [vmem:[#allocation2] sm:$0xff] %v3371_v6 }
 0x3c0   : > { %v3374_v13 = vadd.f32 %v3182_v11, %v422_v5  ;;  %3500 = vst [vmem:[#allocation2 + $0x8] sm:$0xff] %v3372_v10  ;;  %v2158_v16 = vpop.f32.mrb[2].mxu0  ;;  %v445_v10 = vld [vmem:[#allocation2 + $0xd0] sm:$0xff]  ;;  %v444_v11 = vld [vmem:[#allocation2 + $0xc8] sm:$0xff] }
 0x3c1   : > { %3501 = vst [vmem:[#allocation2 + $0x10] sm:$0xff] %v3373_v9  ;;  %v3375_v18 = vadd.f32 %v2158_v16, %v423_v12  ;;  %v2160_v20 = vpop.f32.mrb[3].mxu0 }
 0x3c2   : > { %3502 = vst [vmem:[#allocation2 + $0x18] sm:$0xff] %v3374_v13  ;;  %v3186_v19 = vpop.f32.mrb[2].mxu1  ;;  %v3376_v22 = vadd.f32 %v2160_v20, %v424_v15  ;;  %v446_v13 = vld [vmem:[#allocation2 + $0xd8] sm:$0xff]  ;;  %v447_v20 = vld [vmem:[#allocation2 + $0xe0] sm:$0xff] }
 0x3c3   : > { %v3377_v21 = vadd.f32 %v3186_v19, %v425_v14  ;;  %v3188_v23 = vpop.f32.mrb[3].mxu1  ;;  %3503 = vst [vmem:[#allocation2 + $0x20] sm:$0xff] %v3375_v18 }
 0x3c4   : > { %v3378_v25 = vadd.f32 %v3188_v23, %v426_v17  ;;  %3504 = vst [vmem:[#allocation2 + $0x28] sm:$0xff] %v3376_v22  ;;  %v2164_v28 = vpop.f32.mrb[4].mxu0  ;;  %v449_v22 = vld [vmem:[#allocation2 + $0xf0] sm:$0xff]  ;;  %v448_v23 = vld [vmem:[#allocation2 + $0xe8] sm:$0xff] }
 0x3c5   : > { %3505 = vst [vmem:[#allocation2 + $0x30] sm:$0xff] %v3377_v21  ;;  %v3379_v30 = vadd.f32 %v2164_v28, %v427_v24  ;;  %v2166_v32 = vpop.f32.mrb[5].mxu0 }
 0x3c6   : > { %3506 = vst [vmem:[#allocation2 + $0x38] sm:$0xff] %v3378_v25  ;;  %v3192_v31 = vpop.f32.mrb[4].mxu1  ;;  %v3380_v34 = vadd.f32 %v2166_v32, %v428_v27  ;;  %v450_v25 = vld [vmem:[#allocation2 + $0xf8] sm:$0xff]  ;;  %v451_v32 = vld [vmem:[#allocation2 + $0x100] sm:$0xff] }
 0x3c7   : > { %v3381_v33 = vadd.f32 %v3192_v31, %v429_v26  ;;  %v3194_v35 = vpop.f32.mrb[5].mxu1  ;;  %3507 = vst [vmem:[#allocation2 + $0x40] sm:$0xff] %v3379_v30 }
 0x3c8   : > { %v3382_v37 = vadd.f32 %v3194_v35, %v430_v29  ;;  %3508 = vst [vmem:[#allocation2 + $0x48] sm:$0xff] %v3380_v34  ;;  %v2170_v40 = vpop.f32.mrb[6].mxu0  ;;  %v453_v34 = vld [vmem:[#allocation2 + $0x110] sm:$0xff]  ;;  %v452_v35 = vld [vmem:[#allocation2 + $0x108] sm:$0xff] }
 0x3c9   : > { %3509 = vst [vmem:[#allocation2 + $0x50] sm:$0xff] %v3381_v33  ;;  %v3383_v42 = vadd.f32 %v2170_v40, %v431_v36  ;;  %v2172_v44 = vpop.f32.mrb[7].mxu0 }
 0x3ca   : > { %3510 = vst [vmem:[#allocation2 + $0x58] sm:$0xff] %v3382_v37  ;;  %v3198_v43 = vpop.f32.mrb[6].mxu1  ;;  %v3384_v46 = vadd.f32 %v2172_v44, %v432_v39  ;;  %v454_v37 = vld [vmem:[#allocation2 + $0x118] sm:$0xff]  ;;  %v455_v44 = vld [vmem:[#allocation2 + $0x120] sm:$0xff] }
 0x3cb   : > { %v3385_v45 = vadd.f32 %v3198_v43, %v433_v38  ;;  %v3200_v47 = vpop.f32.mrb[7].mxu1  ;;  %3511 = vst [vmem:[#allocation2 + $0x60] sm:$0xff] %v3383_v42 }
 0x3cc   : > { %v3386_v49 = vadd.f32 %v3200_v47, %v434_v41  ;;  %3512 = vst [vmem:[#allocation2 + $0x68] sm:$0xff] %v3384_v46  ;;  %v2176_v52 = vpop.f32.mrb[8].mxu0  ;;  %v457_v46 = vld [vmem:[#allocation2 + $0x130] sm:$0xff]  ;;  %v456_v47 = vld [vmem:[#allocation2 + $0x128] sm:$0xff] }
 0x3cd   : > { %3513 = vst [vmem:[#allocation2 + $0x70] sm:$0xff] %v3385_v45  ;;  %v3387_v54 = vadd.f32 %v2176_v52, %v435_v48  ;;  %v2178_v56 = vpop.f32.mrb[9].mxu0 }
 0x3ce   : > { %3514 = vst [vmem:[#allocation2 + $0x78] sm:$0xff] %v3386_v49  ;;  %v3204_v55 = vpop.f32.mrb[8].mxu1  ;;  %v3388_v58 = vadd.f32 %v2178_v56, %v436_v51  ;;  %v458_v49 = vld [vmem:[#allocation2 + $0x138] sm:$0xff]  ;;  %v459_v56 = vld [vmem:[#allocation2 + $0x140] sm:$0xff] }
 0x3cf   : > { %v3389_v57 = vadd.f32 %v3204_v55, %v437_v50  ;;  %v3206_v59 = vpop.f32.mrb[9].mxu1  ;;  %3515 = vst [vmem:[#allocation2 + $0x80] sm:$0xff] %v3387_v54 }
 0x3d0   : > { %v3390_v61 = vadd.f32 %v3206_v59, %v438_v53  ;;  %3516 = vst [vmem:[#allocation2 + $0x88] sm:$0xff] %v3388_v58  ;;  %v2182_v0 = vpop.f32.mrb[10].mxu0  ;;  %v461_v58 = vld [vmem:[#allocation2 + $0x150] sm:$0xff]  ;;  %v460_v59 = vld [vmem:[#allocation2 + $0x148] sm:$0xff] }
 0x3d1   : > { %3517 = vst [vmem:[#allocation2 + $0x90] sm:$0xff] %v3389_v57  ;;  %v3391_v2 = vadd.f32 %v2182_v0, %v439_v60  ;;  %v2184_v4 = vpop.f32.mrb[11].mxu0 }
 0x3d2   : > { %3518 = vst [vmem:[#allocation2 + $0x98] sm:$0xff] %v3390_v61  ;;  %v3210_v3 = vpop.f32.mrb[10].mxu1  ;;  %v3392_v6 = vadd.f32 %v2184_v4, %v440_v63  ;;  %v462_v61 = vld [vmem:[#allocation2 + $0x158] sm:$0xff]  ;;  %v463_v4 = vld [vmem:[#allocation2 + $0x160] sm:$0xff] }
 0x3d3   : > { %v3393_v5 = vadd.f32 %v3210_v3, %v441_v62  ;;  %v3212_v7 = vpop.f32.mrb[11].mxu1  ;;  %3519 = vst [vmem:[#allocation2 + $0xa0] sm:$0xff] %v3391_v2 }
 0x3d4   : > { %v3394_v9 = vadd.f32 %v3212_v7, %v442_v1  ;;  %3520 = vst [vmem:[#allocation2 + $0xa8] sm:$0xff] %v3392_v6  ;;  %v2188_v12 = vpop.f32.mrb[12].mxu0  ;;  %v465_v6 = vld [vmem:[#allocation2 + $0x170] sm:$0xff]  ;;  %v464_v7 = vld [vmem:[#allocation2 + $0x168] sm:$0xff] }
 0x3d5   : > { %3521 = vst [vmem:[#allocation2 + $0xb0] sm:$0xff] %v3393_v5  ;;  %v3395_v14 = vadd.f32 %v2188_v12, %v443_v8  ;;  %v2190_v16 = vpop.f32.mrb[13].mxu0 }
 0x3d6   : > { %3522 = vst [vmem:[#allocation2 + $0xb8] sm:$0xff] %v3394_v9  ;;  %v3216_v15 = vpop.f32.mrb[12].mxu1  ;;  %v3396_v18 = vadd.f32 %v2190_v16, %v444_v11  ;;  %v466_v9 = vld [vmem:[#allocation2 + $0x178] sm:$0xff]  ;;  %v467_v16 = vld [vmem:[#allocation2 + $0x180] sm:$0xff] }
 0x3d7   : > { %v3397_v17 = vadd.f32 %v3216_v15, %v445_v10  ;;  %v3218_v19 = vpop.f32.mrb[13].mxu1  ;;  %3523 = vst [vmem:[#allocation2 + $0xc0] sm:$0xff] %v3395_v14 }
 0x3d8   : > { %v3398_v21 = vadd.f32 %v3218_v19, %v446_v13  ;;  %3524 = vst [vmem:[#allocation2 + $0xc8] sm:$0xff] %v3396_v18  ;;  %v2194_v24 = vpop.f32.mrb[14].mxu0  ;;  %v469_v18 = vld [vmem:[#allocation2 + $0x190] sm:$0xff]  ;;  %v468_v19 = vld [vmem:[#allocation2 + $0x188] sm:$0xff] }
 0x3d9   : > { %3525 = vst [vmem:[#allocation2 + $0xd0] sm:$0xff] %v3397_v17  ;;  %v3399_v26 = vadd.f32 %v2194_v24, %v447_v20  ;;  %v2196_v28 = vpop.f32.mrb[15].mxu0 }
 0x3da   : > { %3526 = vst [vmem:[#allocation2 + $0xd8] sm:$0xff] %v3398_v21  ;;  %v3222_v27 = vpop.f32.mrb[14].mxu1  ;;  %v3400_v30 = vadd.f32 %v2196_v28, %v448_v23  ;;  %v470_v21 = vld [vmem:[#allocation2 + $0x198] sm:$0xff]  ;;  %v471_v28 = vld [vmem:[#allocation2 + $0x1a0] sm:$0xff] }
 0x3db   : > { %v3401_v29 = vadd.f32 %v3222_v27, %v449_v22  ;;  %v3224_v31 = vpop.f32.mrb[15].mxu1  ;;  %3527 = vst [vmem:[#allocation2 + $0xe0] sm:$0xff] %v3399_v26 }
 0x3dc   : > { %v3402_v33 = vadd.f32 %v3224_v31, %v450_v25  ;;  %3528 = vst [vmem:[#allocation2 + $0xe8] sm:$0xff] %v3400_v30  ;;  %v2200_v36 = vpop.f32.mrb[16].mxu0  ;;  %v473_v30 = vld [vmem:[#allocation2 + $0x1b0] sm:$0xff]  ;;  %v472_v31 = vld [vmem:[#allocation2 + $0x1a8] sm:$0xff] }
 0x3dd   : > { %3529 = vst [vmem:[#allocation2 + $0xf0] sm:$0xff] %v3401_v29  ;;  %v3403_v38 = vadd.f32 %v2200_v36, %v451_v32  ;;  %v2202_v40 = vpop.f32.mrb[17].mxu0 }
 0x3de   : > { %3530 = vst [vmem:[#allocation2 + $0xf8] sm:$0xff] %v3402_v33  ;;  %v3228_v39 = vpop.f32.mrb[16].mxu1  ;;  %v3404_v42 = vadd.f32 %v2202_v40, %v452_v35  ;;  %v474_v33 = vld [vmem:[#allocation2 + $0x1b8] sm:$0xff]  ;;  %v475_v40 = vld [vmem:[#allocation2 + $0x1c0] sm:$0xff] }
 0x3df   : > { %v3405_v41 = vadd.f32 %v3228_v39, %v453_v34  ;;  %v3230_v43 = vpop.f32.mrb[17].mxu1  ;;  %3531 = vst [vmem:[#allocation2 + $0x100] sm:$0xff] %v3403_v38 }
 0x3e0   : > { %v3406_v45 = vadd.f32 %v3230_v43, %v454_v37  ;;  %3532 = vst [vmem:[#allocation2 + $0x108] sm:$0xff] %v3404_v42  ;;  %v2206_v48 = vpop.f32.mrb[18].mxu0  ;;  %v477_v42 = vld [vmem:[#allocation2 + $0x1d0] sm:$0xff]  ;;  %v476_v43 = vld [vmem:[#allocation2 + $0x1c8] sm:$0xff] }
 0x3e1   : > { %3533 = vst [vmem:[#allocation2 + $0x110] sm:$0xff] %v3405_v41  ;;  %v3407_v50 = vadd.f32 %v2206_v48, %v455_v44  ;;  %v2208_v52 = vpop.f32.mrb[19].mxu0 }
 0x3e2   : > { %3534 = vst [vmem:[#allocation2 + $0x118] sm:$0xff] %v3406_v45  ;;  %v3234_v51 = vpop.f32.mrb[18].mxu1  ;;  %v3408_v54 = vadd.f32 %v2208_v52, %v456_v47  ;;  %v478_v45 = vld [vmem:[#allocation2 + $0x1d8] sm:$0xff]  ;;  %v479_v52 = vld [vmem:[#allocation2 + $0x1e0] sm:$0xff] }
 0x3e3   : > { %v3409_v53 = vadd.f32 %v3234_v51, %v457_v46  ;;  %v3236_v55 = vpop.f32.mrb[19].mxu1  ;;  %3535 = vst [vmem:[#allocation2 + $0x120] sm:$0xff] %v3407_v50 }
 0x3e4   : > { %v3410_v57 = vadd.f32 %v3236_v55, %v458_v49  ;;  %3536 = vst [vmem:[#allocation2 + $0x128] sm:$0xff] %v3408_v54  ;;  %v2212_v60 = vpop.f32.mrb[20].mxu0  ;;  %v481_v54 = vld [vmem:[#allocation2 + $0x1f0] sm:$0xff]  ;;  %v480_v55 = vld [vmem:[#allocation2 + $0x1e8] sm:$0xff] }
 0x3e5   : > { %3537 = vst [vmem:[#allocation2 + $0x130] sm:$0xff] %v3409_v53  ;;  %v3411_v62 = vadd.f32 %v2212_v60, %v459_v56  ;;  %v2214_v0 = vpop.f32.mrb[21].mxu0 }
 0x3e6   : > { %3538 = vst [vmem:[#allocation2 + $0x138] sm:$0xff] %v3410_v57  ;;  %v3240_v63 = vpop.f32.mrb[20].mxu1  ;;  %v3412_v2 = vadd.f32 %v2214_v0, %v460_v59  ;;  %v482_v57 = vld [vmem:[#allocation2 + $0x1f8] sm:$0xff]  ;;  %v483_v0 = vld [vmem:[#allocation2 + $0x200] sm:$0xff] }
 0x3e7   : > { %v3413_v1 = vadd.f32 %v3240_v63, %v461_v58  ;;  %v3242_v3 = vpop.f32.mrb[21].mxu1  ;;  %3539 = vst [vmem:[#allocation2 + $0x140] sm:$0xff] %v3411_v62 }
 0x3e8   : > { %v3414_v5 = vadd.f32 %v3242_v3, %v462_v61  ;;  %3540 = vst [vmem:[#allocation2 + $0x148] sm:$0xff] %v3412_v2  ;;  %v2218_v8 = vpop.f32.mrb[22].mxu0  ;;  %v485_v2 = vld [vmem:[#allocation2 + $0x210] sm:$0xff]  ;;  %v484_v3 = vld [vmem:[#allocation2 + $0x208] sm:$0xff] }
 0x3e9   : > { %3541 = vst [vmem:[#allocation2 + $0x150] sm:$0xff] %v3413_v1  ;;  %v3415_v10 = vadd.f32 %v2218_v8, %v463_v4  ;;  %v2220_v12 = vpop.f32.mrb[23].mxu0 }
 0x3ea   : > { %3542 = vst [vmem:[#allocation2 + $0x158] sm:$0xff] %v3414_v5  ;;  %v3246_v11 = vpop.f32.mrb[22].mxu1  ;;  %v3416_v14 = vadd.f32 %v2220_v12, %v464_v7  ;;  %v486_v5 = vld [vmem:[#allocation2 + $0x218] sm:$0xff]  ;;  %v487_v12 = vld [vmem:[#allocation2 + $0x220] sm:$0xff] }
 0x3eb   : > { %v3417_v13 = vadd.f32 %v3246_v11, %v465_v6  ;;  %v3248_v15 = vpop.f32.mrb[23].mxu1  ;;  %3543 = vst [vmem:[#allocation2 + $0x160] sm:$0xff] %v3415_v10 }
 0x3ec   : > { %v3418_v17 = vadd.f32 %v3248_v15, %v466_v9  ;;  %3544 = vst [vmem:[#allocation2 + $0x168] sm:$0xff] %v3416_v14  ;;  %v2224_v20 = vpop.f32.mrb[24].mxu0  ;;  %v489_v14 = vld [vmem:[#allocation2 + $0x230] sm:$0xff]  ;;  %v488_v15 = vld [vmem:[#allocation2 + $0x228] sm:$0xff] }
 0x3ed   : > { %3545 = vst [vmem:[#allocation2 + $0x170] sm:$0xff] %v3417_v13  ;;  %v3419_v22 = vadd.f32 %v2224_v20, %v467_v16  ;;  %v2226_v24 = vpop.f32.mrb[25].mxu0 }
 0x3ee   : > { %3546 = vst [vmem:[#allocation2 + $0x178] sm:$0xff] %v3418_v17  ;;  %v3252_v23 = vpop.f32.mrb[24].mxu1  ;;  %v3420_v26 = vadd.f32 %v2226_v24, %v468_v19  ;;  %v490_v17 = vld [vmem:[#allocation2 + $0x238] sm:$0xff]  ;;  %v491_v24 = vld [vmem:[#allocation2 + $0x240] sm:$0xff] }
 0x3ef   : > { %v3421_v25 = vadd.f32 %v3252_v23, %v469_v18  ;;  %v3254_v27 = vpop.f32.mrb[25].mxu1  ;;  %3547 = vst [vmem:[#allocation2 + $0x180] sm:$0xff] %v3419_v22 }
 0x3f0   : > { %v3422_v29 = vadd.f32 %v3254_v27, %v470_v21  ;;  %3548 = vst [vmem:[#allocation2 + $0x188] sm:$0xff] %v3420_v26  ;;  %v2230_v32 = vpop.f32.mrb[26].mxu0  ;;  %v493_v26 = vld [vmem:[#allocation2 + $0x250] sm:$0xff]  ;;  %v492_v27 = vld [vmem:[#allocation2 + $0x248] sm:$0xff] }
 0x3f1   : > { %3549 = vst [vmem:[#allocation2 + $0x190] sm:$0xff] %v3421_v25  ;;  %v3423_v34 = vadd.f32 %v2230_v32, %v471_v28  ;;  %v2232_v36 = vpop.f32.mrb[27].mxu0 }
 0x3f2   : > { %3550 = vst [vmem:[#allocation2 + $0x198] sm:$0xff] %v3422_v29  ;;  %v3258_v35 = vpop.f32.mrb[26].mxu1  ;;  %v3424_v38 = vadd.f32 %v2232_v36, %v472_v31  ;;  %v494_v29 = vld [vmem:[#allocation2 + $0x258] sm:$0xff]  ;;  %v495_v36 = vld [vmem:[#allocation2 + $0x260] sm:$0xff] }
 0x3f3   : > { %v3425_v37 = vadd.f32 %v3258_v35, %v473_v30  ;;  %v3260_v39 = vpop.f32.mrb[27].mxu1  ;;  %3551 = vst [vmem:[#allocation2 + $0x1a0] sm:$0xff] %v3423_v34 }
 0x3f4   : > { %v3426_v41 = vadd.f32 %v3260_v39, %v474_v33  ;;  %3552 = vst [vmem:[#allocation2 + $0x1a8] sm:$0xff] %v3424_v38  ;;  %v2236_v44 = vpop.f32.mrb[28].mxu0  ;;  %v497_v38 = vld [vmem:[#allocation2 + $0x270] sm:$0xff]  ;;  %v496_v39 = vld [vmem:[#allocation2 + $0x268] sm:$0xff] }
 0x3f5   : > { %3553 = vst [vmem:[#allocation2 + $0x1b0] sm:$0xff] %v3425_v37  ;;  %v3427_v46 = vadd.f32 %v2236_v44, %v475_v40  ;;  %v2238_v48 = vpop.f32.mrb[29].mxu0 }
 0x3f6   : > { %3554 = vst [vmem:[#allocation2 + $0x1b8] sm:$0xff] %v3426_v41  ;;  %v3264_v47 = vpop.f32.mrb[28].mxu1  ;;  %v3428_v50 = vadd.f32 %v2238_v48, %v476_v43  ;;  %v498_v41 = vld [vmem:[#allocation2 + $0x278] sm:$0xff]  ;;  %v499_v48 = vld [vmem:[#allocation2 + $0x280] sm:$0xff] }
 0x3f7   : > { %v3429_v49 = vadd.f32 %v3264_v47, %v477_v42  ;;  %v3266_v51 = vpop.f32.mrb[29].mxu1  ;;  %3555 = vst [vmem:[#allocation2 + $0x1c0] sm:$0xff] %v3427_v46 }
 0x3f8   : > { %v3430_v53 = vadd.f32 %v3266_v51, %v478_v45  ;;  %3556 = vst [vmem:[#allocation2 + $0x1c8] sm:$0xff] %v3428_v50  ;;  %v2242_v56 = vpop.f32.mrb[30].mxu0  ;;  %v501_v50 = vld [vmem:[#allocation2 + $0x290] sm:$0xff]  ;;  %v500_v51 = vld [vmem:[#allocation2 + $0x288] sm:$0xff] }
 0x3f9   : > { %3557 = vst [vmem:[#allocation2 + $0x1d0] sm:$0xff] %v3429_v49  ;;  %v3431_v58 = vadd.f32 %v2242_v56, %v479_v52  ;;  %v2244_v60 = vpop.f32.mrb[31].mxu0 }
 0x3fa   : > { %3558 = vst [vmem:[#allocation2 + $0x1d8] sm:$0xff] %v3430_v53  ;;  %v3270_v59 = vpop.f32.mrb[30].mxu1  ;;  %v3432_v62 = vadd.f32 %v2244_v60, %v480_v55  ;;  %v502_v53 = vld [vmem:[#allocation2 + $0x298] sm:$0xff]  ;;  %v503_v60 = vld [vmem:[#allocation2 + $0x2a0] sm:$0xff] }
 0x3fb   : > { %v3433_v61 = vadd.f32 %v3270_v59, %v481_v54  ;;  %v3272_v63 = vpop.f32.mrb[31].mxu1  ;;  %3559 = vst [vmem:[#allocation2 + $0x1e0] sm:$0xff] %v3431_v58 }
 0x3fc   : > { %v3434_v1 = vadd.f32 %v3272_v63, %v482_v57  ;;  %3560 = vst [vmem:[#allocation2 + $0x1e8] sm:$0xff] %v3432_v62  ;;  %v2248_v4 = vpop.f32.mrb[32].mxu0  ;;  %v505_v62 = vld [vmem:[#allocation2 + $0x2b0] sm:$0xff]  ;;  %v504_v63 = vld [vmem:[#allocation2 + $0x2a8] sm:$0xff] }
 0x3fd   : > { %3561 = vst [vmem:[#allocation2 + $0x1f0] sm:$0xff] %v3433_v61  ;;  %v3435_v6 = vadd.f32 %v2248_v4, %v483_v0  ;;  %v2250_v8 = vpop.f32.mrb[33].mxu0 }
 0x3fe   : > { %3562 = vst [vmem:[#allocation2 + $0x1f8] sm:$0xff] %v3434_v1  ;;  %v3276_v7 = vpop.f32.mrb[32].mxu1  ;;  %v3436_v10 = vadd.f32 %v2250_v8, %v484_v3  ;;  %v506_v1 = vld [vmem:[#allocation2 + $0x2b8] sm:$0xff]  ;;  %v507_v8 = vld [vmem:[#allocation2 + $0x2c0] sm:$0xff] }
 0x3ff   : > { %v3437_v9 = vadd.f32 %v3276_v7, %v485_v2  ;;  %v3278_v11 = vpop.f32.mrb[33].mxu1  ;;  %3563 = vst [vmem:[#allocation2 + $0x200] sm:$0xff] %v3435_v6 }
 0x400   : > { %v3438_v13 = vadd.f32 %v3278_v11, %v486_v5  ;;  %3564 = vst [vmem:[#allocation2 + $0x208] sm:$0xff] %v3436_v10  ;;  %v2254_v16 = vpop.f32.mrb[34].mxu0  ;;  %v509_v10 = vld [vmem:[#allocation2 + $0x2d0] sm:$0xff]  ;;  %v508_v11 = vld [vmem:[#allocation2 + $0x2c8] sm:$0xff] }
 0x401   : > { %3565 = vst [vmem:[#allocation2 + $0x210] sm:$0xff] %v3437_v9  ;;  %v3439_v18 = vadd.f32 %v2254_v16, %v487_v12  ;;  %v2256_v20 = vpop.f32.mrb[35].mxu0 }
 0x402   : > { %3566 = vst [vmem:[#allocation2 + $0x218] sm:$0xff] %v3438_v13  ;;  %v3282_v19 = vpop.f32.mrb[34].mxu1  ;;  %v3440_v22 = vadd.f32 %v2256_v20, %v488_v15  ;;  %v510_v13 = vld [vmem:[#allocation2 + $0x2d8] sm:$0xff]  ;;  %v511_v20 = vld [vmem:[#allocation2 + $0x2e0] sm:$0xff] }
 0x403   : > { %v3441_v21 = vadd.f32 %v3282_v19, %v489_v14  ;;  %v3284_v23 = vpop.f32.mrb[35].mxu1  ;;  %3567 = vst [vmem:[#allocation2 + $0x220] sm:$0xff] %v3439_v18 }
 0x404   : > { %v3442_v25 = vadd.f32 %v3284_v23, %v490_v17  ;;  %3568 = vst [vmem:[#allocation2 + $0x228] sm:$0xff] %v3440_v22  ;;  %v2260_v28 = vpop.f32.mrb[36].mxu0  ;;  %v513_v22 = vld [vmem:[#allocation2 + $0x2f0] sm:$0xff]  ;;  %v512_v23 = vld [vmem:[#allocation2 + $0x2e8] sm:$0xff] }
 0x405   : > { %3569 = vst [vmem:[#allocation2 + $0x230] sm:$0xff] %v3441_v21  ;;  %v3443_v30 = vadd.f32 %v2260_v28, %v491_v24  ;;  %v2262_v32 = vpop.f32.mrb[37].mxu0 }
 0x406   : > { %3570 = vst [vmem:[#allocation2 + $0x238] sm:$0xff] %v3442_v25  ;;  %v3288_v31 = vpop.f32.mrb[36].mxu1  ;;  %v3444_v34 = vadd.f32 %v2262_v32, %v492_v27  ;;  %v514_v25 = vld [vmem:[#allocation2 + $0x2f8] sm:$0xff]  ;;  %v515_v32 = vld [vmem:[#allocation2 + $0x300] sm:$0xff] }
 0x407   : > { %v3445_v33 = vadd.f32 %v3288_v31, %v493_v26  ;;  %v3290_v35 = vpop.f32.mrb[37].mxu1  ;;  %3571 = vst [vmem:[#allocation2 + $0x240] sm:$0xff] %v3443_v30 }
 0x408   : > { %v3446_v37 = vadd.f32 %v3290_v35, %v494_v29  ;;  %3572 = vst [vmem:[#allocation2 + $0x248] sm:$0xff] %v3444_v34  ;;  %v2266_v40 = vpop.f32.mrb[38].mxu0  ;;  %v517_v34 = vld [vmem:[#allocation2 + $0x310] sm:$0xff]  ;;  %v516_v35 = vld [vmem:[#allocation2 + $0x308] sm:$0xff] }
 0x409   : > { %3573 = vst [vmem:[#allocation2 + $0x250] sm:$0xff] %v3445_v33  ;;  %v3447_v42 = vadd.f32 %v2266_v40, %v495_v36  ;;  %v2268_v44 = vpop.f32.mrb[39].mxu0 }
 0x40a   : > { %3574 = vst [vmem:[#allocation2 + $0x258] sm:$0xff] %v3446_v37  ;;  %v3294_v43 = vpop.f32.mrb[38].mxu1  ;;  %v3448_v46 = vadd.f32 %v2268_v44, %v496_v39  ;;  %v518_v37 = vld [vmem:[#allocation2 + $0x318] sm:$0xff]  ;;  %v519_v44 = vld [vmem:[#allocation2 + $0x320] sm:$0xff] }
 0x40b   : > { %v3449_v45 = vadd.f32 %v3294_v43, %v497_v38  ;;  %v3296_v47 = vpop.f32.mrb[39].mxu1  ;;  %3575 = vst [vmem:[#allocation2 + $0x260] sm:$0xff] %v3447_v42 }
 0x40c   : > { %v3450_v49 = vadd.f32 %v3296_v47, %v498_v41  ;;  %3576 = vst [vmem:[#allocation2 + $0x268] sm:$0xff] %v3448_v46  ;;  %v2272_v52 = vpop.f32.mrb[40].mxu0  ;;  %v521_v46 = vld [vmem:[#allocation2 + $0x330] sm:$0xff]  ;;  %v520_v47 = vld [vmem:[#allocation2 + $0x328] sm:$0xff] }
 0x40d   : > { %3577 = vst [vmem:[#allocation2 + $0x270] sm:$0xff] %v3449_v45  ;;  %v3451_v54 = vadd.f32 %v2272_v52, %v499_v48  ;;  %v2274_v56 = vpop.f32.mrb[41].mxu0 }
 0x40e   : > { %3578 = vst [vmem:[#allocation2 + $0x278] sm:$0xff] %v3450_v49  ;;  %v3300_v55 = vpop.f32.mrb[40].mxu1  ;;  %v3452_v58 = vadd.f32 %v2274_v56, %v500_v51  ;;  %v522_v49 = vld [vmem:[#allocation2 + $0x338] sm:$0xff]  ;;  %v523_v56 = vld [vmem:[#allocation2 + $0x340] sm:$0xff] }
 0x40f   : > { %v3453_v57 = vadd.f32 %v3300_v55, %v501_v50  ;;  %v3302_v59 = vpop.f32.mrb[41].mxu1  ;;  %3579 = vst [vmem:[#allocation2 + $0x280] sm:$0xff] %v3451_v54 }
 0x410   : > { %v3454_v61 = vadd.f32 %v3302_v59, %v502_v53  ;;  %3580 = vst [vmem:[#allocation2 + $0x288] sm:$0xff] %v3452_v58  ;;  %v2278_v0 = vpop.f32.mrb[42].mxu0  ;;  %v525_v58 = vld [vmem:[#allocation2 + $0x350] sm:$0xff]  ;;  %v524_v59 = vld [vmem:[#allocation2 + $0x348] sm:$0xff] }
 0x411   : > { %3581 = vst [vmem:[#allocation2 + $0x290] sm:$0xff] %v3453_v57  ;;  %v3455_v2 = vadd.f32 %v2278_v0, %v503_v60  ;;  %v2280_v4 = vpop.f32.mrb[43].mxu0 }
 0x412   : > { %3582 = vst [vmem:[#allocation2 + $0x298] sm:$0xff] %v3454_v61  ;;  %v3306_v3 = vpop.f32.mrb[42].mxu1  ;;  %v3456_v6 = vadd.f32 %v2280_v4, %v504_v63  ;;  %v526_v61 = vld [vmem:[#allocation2 + $0x358] sm:$0xff]  ;;  %v527_v4 = vld [vmem:[#allocation2 + $0x360] sm:$0xff] }
 0x413   : > { %v3457_v5 = vadd.f32 %v3306_v3, %v505_v62  ;;  %v3308_v7 = vpop.f32.mrb[43].mxu1  ;;  %3583 = vst [vmem:[#allocation2 + $0x2a0] sm:$0xff] %v3455_v2 }
 0x414   : > { %v3458_v9 = vadd.f32 %v3308_v7, %v506_v1  ;;  %3584 = vst [vmem:[#allocation2 + $0x2a8] sm:$0xff] %v3456_v6  ;;  %v2284_v12 = vpop.f32.mrb[44].mxu0  ;;  %v529_v6 = vld [vmem:[#allocation2 + $0x370] sm:$0xff]  ;;  %v528_v7 = vld [vmem:[#allocation2 + $0x368] sm:$0xff] }
 0x415   : > { %3585 = vst [vmem:[#allocation2 + $0x2b0] sm:$0xff] %v3457_v5  ;;  %v3459_v14 = vadd.f32 %v2284_v12, %v507_v8  ;;  %v2286_v16 = vpop.f32.mrb[45].mxu0 }
 0x416   : > { %3586 = vst [vmem:[#allocation2 + $0x2b8] sm:$0xff] %v3458_v9  ;;  %v3312_v15 = vpop.f32.mrb[44].mxu1  ;;  %v3460_v18 = vadd.f32 %v2286_v16, %v508_v11  ;;  %v530_v9 = vld [vmem:[#allocation2 + $0x378] sm:$0xff]  ;;  %v531_v16 = vld [vmem:[#allocation2 + $0x380] sm:$0xff] }
 0x417   : > { %v3461_v17 = vadd.f32 %v3312_v15, %v509_v10  ;;  %v3314_v19 = vpop.f32.mrb[45].mxu1  ;;  %3587 = vst [vmem:[#allocation2 + $0x2c0] sm:$0xff] %v3459_v14 }
 0x418   : > { %v3462_v21 = vadd.f32 %v3314_v19, %v510_v13  ;;  %3588 = vst [vmem:[#allocation2 + $0x2c8] sm:$0xff] %v3460_v18  ;;  %v2290_v24 = vpop.f32.mrb[46].mxu0  ;;  %v533_v18 = vld [vmem:[#allocation2 + $0x390] sm:$0xff]  ;;  %v532_v19 = vld [vmem:[#allocation2 + $0x388] sm:$0xff] }
 0x419   : > { %3589 = vst [vmem:[#allocation2 + $0x2d0] sm:$0xff] %v3461_v17  ;;  %v3463_v26 = vadd.f32 %v2290_v24, %v511_v20  ;;  %v2292_v28 = vpop.f32.mrb[47].mxu0 }
 0x41a   : > { %3590 = vst [vmem:[#allocation2 + $0x2d8] sm:$0xff] %v3462_v21  ;;  %v3318_v27 = vpop.f32.mrb[46].mxu1  ;;  %v3464_v30 = vadd.f32 %v2292_v28, %v512_v23  ;;  %v534_v21 = vld [vmem:[#allocation2 + $0x398] sm:$0xff]  ;;  %v535_v28 = vld [vmem:[#allocation2 + $0x3a0] sm:$0xff] }
 0x41b   : > { %v3465_v29 = vadd.f32 %v3318_v27, %v513_v22  ;;  %v3320_v31 = vpop.f32.mrb[47].mxu1  ;;  %3591 = vst [vmem:[#allocation2 + $0x2e0] sm:$0xff] %v3463_v26 }
 0x41c   : > { %v3466_v33 = vadd.f32 %v3320_v31, %v514_v25  ;;  %3592 = vst [vmem:[#allocation2 + $0x2e8] sm:$0xff] %v3464_v30  ;;  %v2296_v36 = vpop.f32.mrb[48].mxu0  ;;  %v537_v30 = vld [vmem:[#allocation2 + $0x3b0] sm:$0xff]  ;;  %v536_v31 = vld [vmem:[#allocation2 + $0x3a8] sm:$0xff] }
 0x41d   : > { %3593 = vst [vmem:[#allocation2 + $0x2f0] sm:$0xff] %v3465_v29  ;;  %v3467_v38 = vadd.f32 %v2296_v36, %v515_v32  ;;  %v2298_v40 = vpop.f32.mrb[49].mxu0 }
 0x41e   : > { %3594 = vst [vmem:[#allocation2 + $0x2f8] sm:$0xff] %v3466_v33  ;;  %v3324_v39 = vpop.f32.mrb[48].mxu1  ;;  %v3468_v42 = vadd.f32 %v2298_v40, %v516_v35  ;;  %v538_v33 = vld [vmem:[#allocation2 + $0x3b8] sm:$0xff]  ;;  %v539_v40 = vld [vmem:[#allocation2 + $0x3c0] sm:$0xff] }
 0x41f   : > { %v3469_v41 = vadd.f32 %v3324_v39, %v517_v34  ;;  %v3326_v43 = vpop.f32.mrb[49].mxu1  ;;  %3595 = vst [vmem:[#allocation2 + $0x300] sm:$0xff] %v3467_v38 }
 0x420   : > { %v3470_v45 = vadd.f32 %v3326_v43, %v518_v37  ;;  %3596 = vst [vmem:[#allocation2 + $0x308] sm:$0xff] %v3468_v42  ;;  %v2302_v48 = vpop.f32.mrb[50].mxu0  ;;  %v541_v42 = vld [vmem:[#allocation2 + $0x3d0] sm:$0xff]  ;;  %v540_v43 = vld [vmem:[#allocation2 + $0x3c8] sm:$0xff] }
 0x421   : > { %3597 = vst [vmem:[#allocation2 + $0x310] sm:$0xff] %v3469_v41  ;;  %v3471_v50 = vadd.f32 %v2302_v48, %v519_v44  ;;  %v2304_v52 = vpop.f32.mrb[51].mxu0 }
 0x422   : > { %3598 = vst [vmem:[#allocation2 + $0x318] sm:$0xff] %v3470_v45  ;;  %v3330_v51 = vpop.f32.mrb[50].mxu1  ;;  %v3472_v54 = vadd.f32 %v2304_v52, %v520_v47  ;;  %v542_v45 = vld [vmem:[#allocation2 + $0x3d8] sm:$0xff]  ;;  %v543_v52 = vld [vmem:[#allocation2 + $0x3e0] sm:$0xff] }
 0x423   : > { %v3473_v53 = vadd.f32 %v3330_v51, %v521_v46  ;;  %v3332_v55 = vpop.f32.mrb[51].mxu1  ;;  %3599 = vst [vmem:[#allocation2 + $0x320] sm:$0xff] %v3471_v50 }
 0x424   : > { %v3474_v57 = vadd.f32 %v3332_v55, %v522_v49  ;;  %3600 = vst [vmem:[#allocation2 + $0x328] sm:$0xff] %v3472_v54  ;;  %v2308_v60 = vpop.f32.mrb[52].mxu0  ;;  %v545_v54 = vld [vmem:[#allocation2 + $0x3f0] sm:$0xff]  ;;  %v544_v55 = vld [vmem:[#allocation2 + $0x3e8] sm:$0xff] }
 0x425   : > { %3601 = vst [vmem:[#allocation2 + $0x330] sm:$0xff] %v3473_v53  ;;  %v3475_v62 = vadd.f32 %v2308_v60, %v523_v56  ;;  %v2310_v0 = vpop.f32.mrb[53].mxu0 }
 0x426   : > { %3602 = vst [vmem:[#allocation2 + $0x338] sm:$0xff] %v3474_v57  ;;  %v3336_v63 = vpop.f32.mrb[52].mxu1  ;;  %v3476_v2 = vadd.f32 %v2310_v0, %v524_v59  ;;  %v546_v57 = vld [vmem:[#allocation2 + $0x3f8] sm:$0xff] }
 0x427   : > { %v3477_v1 = vadd.f32 %v3336_v63, %v525_v58  ;;  %v3338_v3 = vpop.f32.mrb[53].mxu1  ;;  %3603 = vst [vmem:[#allocation2 + $0x340] sm:$0xff] %v3475_v62 }
 0x428   : > { %v3478_v5 = vadd.f32 %v3338_v3, %v526_v61  ;;  %3604 = vst [vmem:[#allocation2 + $0x348] sm:$0xff] %v3476_v2  ;;  %v2314_v8 = vpop.f32.mrb[54].mxu0  ;;  %v3759_v2 = vld [vmem:[#allocation8] sm:$0xf] (!%p4203_p12) }
 0x429   : > { %3605 = vst [vmem:[#allocation2 + $0x350] sm:$0xff] %v3477_v1  ;;  %v3479_v10 = vadd.f32 %v2314_v8, %v527_v4  ;;  %v2316_v12 = vpop.f32.mrb[55].mxu0  ;;  %v3761_v1 = vlaneseq (!%p4203_p12)  ;;  %v3631_v4 = vld [vmem:[#allocation2] sm:$0xff] (!%p4203_p12) }
 0x42a   : > { %3606 = vst [vmem:[#allocation2 + $0x358] sm:$0xff] %v3478_v5  ;;  %v3342_v11 = vpop.f32.mrb[54].mxu1  ;;  %v3480_v14 = vadd.f32 %v2316_v12, %v528_v7  ;;  %v3632_v5 = vld [vmem:[#allocation2 + $0x8] sm:$0xff] (!%p4203_p12)  ;;  %v3634_v7 = vld [vmem:[#allocation2 + $0x18] sm:$0xff] (!%p4203_p12)  ;;  %v3635_v12 = vld [vmem:[#allocation2 + $0x20] sm:$0xff] (!%p4203_p12) }
 0x42b   : > { %v3481_v13 = vadd.f32 %v3342_v11, %v529_v6  ;;  %v3344_v15 = vpop.f32.mrb[55].mxu1  ;;  %3607 = vst [vmem:[#allocation2 + $0x360] sm:$0xff] %v3479_v10  ;;  %v3762_v3 = vshrl.u32 (!%p4203_p12), %v3761_v1, 7  ;;  %v3633_v6 = vld [vmem:[#allocation2 + $0x10] sm:$0xff] (!%p4203_p12) }
 0x42c   : > { %v3482_v17 = vadd.f32 %v3344_v15, %v530_v9  ;;  %3608 = vst [vmem:[#allocation2 + $0x368] sm:$0xff] %v3480_v14  ;;  %v2320_v20 = vpop.f32.mrb[56].mxu0  ;;  %v3637_v14 = vld [vmem:[#allocation2 + $0x30] sm:$0xff] (!%p4203_p12)  ;;  %v3638_v15 = vld [vmem:[#allocation2 + $0x38] sm:$0xff] (!%p4203_p12) }
 0x42d   : > { %3609 = vst [vmem:[#allocation2 + $0x370] sm:$0xff] %v3481_v13  ;;  %v3483_v22 = vadd.f32 %v2320_v20, %v531_v16  ;;  %v2322_v24 = vpop.f32.mrb[57].mxu0  ;;  %v3763_v8 = vsub.s32 (!%p4203_p12), 0, %v3762_v3  ;;  %v3767_v9 = vsub.s32 (!%p4203_p12), 1, %v3762_v3  ;;  %v3771_v10 = vsub.s32 (!%p4203_p12), 2, %v3762_v3  ;;  %v3636_v13 = vld [vmem:[#allocation2 + $0x28] sm:$0xff] (!%p4203_p12) }
 0x42e   : > { %3610 = vst [vmem:[#allocation2 + $0x378] sm:$0xff] %v3482_v17  ;;  %v3348_v23 = vpop.f32.mrb[56].mxu1  ;;  %v3484_v26 = vadd.f32 %v2322_v24, %v532_v19  ;;  %v3775_v11 = vsub.s32 (!%p4203_p12), 3, %v3762_v3  ;;  %v3639_v16 = vld [vmem:[#allocation2 + $0x40] sm:$0xff] (!%p4203_p12)  ;;  %v3640_v17 = vld [vmem:[#allocation2 + $0x48] sm:$0xff] (!%p4203_p12)  ;;  %v3642_v19 = vld [vmem:[#allocation2 + $0x58] sm:$0xff] (!%p4203_p12) }
 0x42f   : > { %v3485_v25 = vadd.f32 %v3348_v23, %v533_v18  ;;  %v3350_v27 = vpop.f32.mrb[57].mxu1  ;;  %3611 = vst [vmem:[#allocation2 + $0x380] sm:$0xff] %v3483_v22  ;;  %v3641_v18 = vld [vmem:[#allocation2 + $0x50] sm:$0xff] (!%p4203_p12)  ;;  %v6723_v20 = vrot.slane (!%p4203_p12), %v3759_v2, %v3763_v8  ;;  %v6727_v22 = vrot.slane (!%p4203_p12), %v3759_v2, %v3771_v10  ;;  %v3643_v24 = vld [vmem:[#allocation2 + $0x60] sm:$0xff] (!%p4203_p12)  ;;  %v3666_v3 = vld [vmem:[#allocation2 + $0x118] sm:$0xff] (!%p4203_p12) }
 0x430   : > { %v3486_v29 = vadd.f32 %v3350_v27, %v534_v21  ;;  %3612 = vst [vmem:[#allocation2 + $0x388] sm:$0xff] %v3484_v26  ;;  %v2326_v32 = vpop.f32.mrb[58].mxu0  ;;  %v6725_v21 = vrot.slane (!%p4203_p12), %v3759_v2, %v3767_v9  ;;  %v6729_v23 = vrot.slane (!%p4203_p12), %v3759_v2, %v3775_v11  ;;  %v3645_v26 = vld [vmem:[#allocation2 + $0x70] sm:$0xff] (!%p4203_p12)  ;;  %v3646_v27 = vld [vmem:[#allocation2 + $0x78] sm:$0xff] (!%p4203_p12)  ;;  %v3668_v9 = vld [vmem:[#allocation2 + $0x128] sm:$0xff] (!%p4203_p12) }
 0x431   : > { %3613 = vst [vmem:[#allocation2 + $0x390] sm:$0xff] %v3485_v25  ;;  %v3487_v34 = vadd.f32 %v2326_v32, %v535_v28  ;;  %v2328_v36 = vpop.f32.mrb[59].mxu0  ;;  %v3644_v25 = vld [vmem:[#allocation2 + $0x68] sm:$0xff] (!%p4203_p12)  ;;  %v3647_v28 = vld [vmem:[#allocation2 + $0x80] sm:$0xff] (!%p4203_p12)  ;;  %v3781_v32 = vadd.f32 (!%p4203_p12), %v6723_v20, %v3631_v4  ;;  %v3665_v2 = vld [vmem:[#allocation2 + $0x110] sm:$0xff] (!%p4203_p12) }
 0x432   : > { %3614 = vst [vmem:[#allocation2 + $0x398] sm:$0xff] %v3486_v29  ;;  %v3354_v35 = vpop.f32.mrb[58].mxu1  ;;  %v3488_v38 = vadd.f32 %v2328_v36, %v536_v31  ;;  %v3648_v29 = vld [vmem:[#allocation2 + $0x88] sm:$0xff] (!%p4203_p12)  ;;  %v3650_v31 = vld [vmem:[#allocation2 + $0x98] sm:$0xff] (!%p4203_p12)  ;;  %v3651_v36 = vld [vmem:[#allocation2 + $0xa0] sm:$0xff] (!%p4203_p12) }
 0x433   : > { %v3489_v37 = vadd.f32 %v3354_v35, %v537_v30  ;;  %v3356_v39 = vpop.f32.mrb[59].mxu1  ;;  %3615 = vst [vmem:[#allocation2 + $0x3a0] sm:$0xff] %v3487_v34  ;;  %v3649_v30 = vld [vmem:[#allocation2 + $0x90] sm:$0xff] (!%p4203_p12)  ;;  %v3783_v34 = vadd.f32 (!%p4203_p12), %v6727_v22, %v3633_v6  ;;  %v3784_v35 = vadd.f32 (!%p4203_p12), %v6729_v23, %v3634_v7  ;;  %3909 = vst [vmem:[%s5823_s9] sm:$0xff] (!%p4203_p12), %v3781_v32  ;;  %v3667_v4 = vld [vmem:[#allocation2 + $0x120] sm:$0xff] (!%p4203_p12) }
 0x434   : > { %v3490_v41 = vadd.f32 %v3356_v39, %v538_v33  ;;  %3616 = vst [vmem:[#allocation2 + $0x3a8] sm:$0xff] %v3488_v38  ;;  %v2332_v44 = vpop.f32.mrb[60].mxu0  ;;  %v3782_v33 = vadd.f32 (!%p4203_p12), %v6725_v21, %v3632_v5  ;;  %v3653_v38 = vld [vmem:[#allocation2 + $0xb0] sm:$0xff] (!%p4203_p12)  ;;  %v3654_v39 = vld [vmem:[#allocation2 + $0xb8] sm:$0xff] (!%p4203_p12)  ;;  %v3800_v1 = vadd.f32 (!%p4203_p12), %v6729_v23, %v3650_v31  ;;  %v3801_v5 = vadd.f32 (!%p4203_p12), %v6723_v20, %v3651_v36  ;;  %v3679_v36 = vld [vmem:[#allocation2 + $0x180] sm:$0xff] (!%p4203_p12) }
 0x435   : > { %3617 = vst [vmem:[#allocation2 + $0x3b0] sm:$0xff] %v3489_v37  ;;  %v3491_v46 = vadd.f32 %v2332_v44, %v539_v40  ;;  %v2334_v48 = vpop.f32.mrb[61].mxu0  ;;  %v3652_v37 = vld [vmem:[#allocation2 + $0xa8] sm:$0xff] (!%p4203_p12)  ;;  %v3785_v40 = vadd.f32 (!%p4203_p12), %v6723_v20, %v3635_v12  ;;  %v3655_v44 = vld [vmem:[#allocation2 + $0xc0] sm:$0xff] (!%p4203_p12)  ;;  %3911 = vst [vmem:[%s5823_s9 + $0x10] sm:$0xff] (!%p4203_p12), %v3783_v34  ;;  %v3803_v7 = vadd.f32 (!%p4203_p12), %v6727_v22, %v3653_v38 }
 0x436   : > { %3618 = vst [vmem:[#allocation2 + $0x3b8] sm:$0xff] %v3490_v41  ;;  %v3360_v47 = vpop.f32.mrb[60].mxu1  ;;  %v3492_v50 = vadd.f32 %v2334_v48, %v540_v43  ;;  %v3786_v41 = vadd.f32 (!%p4203_p12), %v6725_v21, %v3636_v13  ;;  %v3788_v43 = vadd.f32 (!%p4203_p12), %v6729_v23, %v3638_v15  ;;  %3910 = vst [vmem:[%s5823_s9 + $0x8] sm:$0xff] (!%p4203_p12), %v3782_v33  ;;  %v3669_v10 = vld [vmem:[#allocation2 + $0x130] sm:$0xff] (!%p4203_p12)  ;;  %v3670_v11 = vld [vmem:[#allocation2 + $0x138] sm:$0xff] (!%p4203_p12) }
 0x437   : > { %v3493_v49 = vadd.f32 %v3360_v47, %v541_v42  ;;  %v3362_v51 = vpop.f32.mrb[61].mxu1  ;;  %3619 = vst [vmem:[#allocation2 + $0x3c0] sm:$0xff] %v3491_v46  ;;  %v3787_v42 = vadd.f32 (!%p4203_p12), %v6727_v22, %v3637_v14  ;;  %v3657_v46 = vld [vmem:[#allocation2 + $0xd0] sm:$0xff] (!%p4203_p12)  ;;  %v3658_v47 = vld [vmem:[#allocation2 + $0xd8] sm:$0xff] (!%p4203_p12)  ;;  %3912 = vst [vmem:[%s5823_s9 + $0x18] sm:$0xff] (!%p4203_p12), %v3784_v35  ;;  %v3789_v48 = vadd.f32 (!%p4203_p12), %v6723_v20, %v3639_v16 }
 0x438   : > { %v3494_v53 = vadd.f32 %v3362_v51, %v542_v45  ;;  %3620 = vst [vmem:[#allocation2 + $0x3c8] sm:$0xff] %v3492_v50  ;;  %v2338_v56 = vpop.f32.mrb[62].mxu0  ;;  %3630 = sbr.rel (%p4203_p12) target bundleno = 1146 (0x47a), region = 52  ;;  %v3656_v45 = vld [vmem:[#allocation2 + $0xc8] sm:$0xff] (!%p4203_p12)  ;;  %v3791_v50 = vadd.f32 (!%p4203_p12), %v6727_v22, %v3641_v18  ;;  %v3792_v51 = vadd.f32 (!%p4203_p12), %v6729_v23, %v3642_v19  ;;  %3913 = vst [vmem:[%s5823_s9 + $0x20] sm:$0xff] (!%p4203_p12), %v3785_v40  ;;  %v3671_v16 = vld [vmem:[#allocation2 + $0x140] sm:$0xff] (!%p4203_p12) }
 0x439   : > { %3621 = vst [vmem:[#allocation2 + $0x3d0] sm:$0xff] %v3493_v49  ;;  %v3495_v58 = vadd.f32 %v2338_v56, %v543_v52  ;;  %v2340_v60 = vpop.f32.mrb[63].mxu0  ;;  %v3790_v49 = vadd.f32 (!%p4203_p12), %v6725_v21, %v3640_v17  ;;  %v3659_v52 = vld [vmem:[#allocation2 + $0xe0] sm:$0xff] (!%p4203_p12)  ;;  %3914 = vst [vmem:[%s5823_s9 + $0x28] sm:$0xff] (!%p4203_p12), %v3786_v41  ;;  %v3794_v56 = vadd.f32 (!%p4203_p12), %v6725_v21, %v3644_v25  ;;  %v3672_v17 = vld [vmem:[#allocation2 + $0x148] sm:$0xff] (!%p4203_p12) }
 0x43a   : > { %3622 = vst [vmem:[#allocation2 + $0x3d8] sm:$0xff] %v3494_v53  ;;  %v3366_v59 = vpop.f32.mrb[62].mxu1  ;;  %v3496_v62 = vadd.f32 %v2340_v60, %v544_v55  ;;  %v3660_v53 = vld [vmem:[#allocation2 + $0xe8] sm:$0xff] (!%p4203_p12)  ;;  %3915 = vst [vmem:[%s5823_s9 + $0x30] sm:$0xff] (!%p4203_p12), %v3787_v42  ;;  %v3793_v55 = vadd.f32 (!%p4203_p12), %v6723_v20, %v3643_v24  ;;  %v3663_v60 = vld [vmem:[#allocation2 + $0x100] sm:$0xff] (!%p4203_p12)  ;;  %v3802_v6 = vadd.f32 (!%p4203_p12), %v6725_v21, %v3652_v37 }
 0x43b   : > { %v3497_v61 = vadd.f32 %v3366_v59, %v545_v54  ;;  %v3368_v63 = vpop.f32.mrb[63].mxu1  ;;  %3623 = vst [vmem:[#allocation2 + $0x3e0] sm:$0xff] %v3495_v58  ;;  %v3661_v54 = vld [vmem:[#allocation2 + $0xf0] sm:$0xff] (!%p4203_p12)  ;;  %3916 = vst [vmem:[%s5823_s9 + $0x38] sm:$0xff] (!%p4203_p12), %v3788_v43  ;;  %v3796_v58 = vadd.f32 (!%p4203_p12), %v6729_v23, %v3646_v27  ;;  %v3662_v59 = vld [vmem:[#allocation2 + $0xf8] sm:$0xff] (!%p4203_p12)  ;;  %v3804_v8 = vadd.f32 (!%p4203_p12), %v6729_v23, %v3654_v39 }
 0x43c   : > { %v3498_v0 = vadd.f32 %v3368_v63, %v546_v57  ;;  %3624 = vst [vmem:[#allocation2 + $0x3e8] sm:$0xff] %v3496_v62  ;;  %v3795_v57 = vadd.f32 (!%p4203_p12), %v6727_v22, %v3645_v26  ;;  %3917 = vst [vmem:[%s5823_s9 + $0x40] sm:$0xff] (!%p4203_p12), %v3789_v48  ;;  %v3797_v62 = vadd.f32 (!%p4203_p12), %v6723_v20, %v3647_v28  ;;  %v3673_v18 = vld [vmem:[#allocation2 + $0x150] sm:$0xff] (!%p4203_p12)  ;;  %v3674_v27 = vld [vmem:[#allocation2 + $0x158] sm:$0xff] (!%p4203_p12) }
 0x43d   : > { %3625 = vst [vmem:[#allocation2 + $0x3f0] sm:$0xff] %v3497_v61  ;;  %v3664_v61 = vld [vmem:[#allocation2 + $0x108] sm:$0xff] (!%p4203_p12)  ;;  %3918 = vst [vmem:[%s5823_s9 + $0x48] sm:$0xff] (!%p4203_p12), %v3790_v49  ;;  %v3798_v63 = vadd.f32 (!%p4203_p12), %v6725_v21, %v3648_v29  ;;  %v3805_v12 = vadd.f32 (!%p4203_p12), %v6723_v20, %v3655_v44  ;;  %v3806_v13 = vadd.f32 (!%p4203_p12), %v6725_v21, %v3656_v45  ;;  %v3675_v28 = vld [vmem:[#allocation2 + $0x160] sm:$0xff] (!%p4203_p12) }
 0x43e   : > { %3626 = vst [vmem:[#allocation2 + $0x3f8] sm:$0xff] %v3498_v0  ;;  %3919 = vst [vmem:[%s5823_s9 + $0x50] sm:$0xff] (!%p4203_p12), %v3791_v50  ;;  %v3799_v0 = vadd.f32 (!%p4203_p12), %v6727_v22, %v3649_v30  ;;  %v3807_v14 = vadd.f32 (!%p4203_p12), %v6727_v22, %v3657_v46  ;;  %v3808_v15 = vadd.f32 (!%p4203_p12), %v6729_v23, %v3658_v47  ;;  %v3676_v29 = vld [vmem:[#allocation2 + $0x168] sm:$0xff] (!%p4203_p12)  ;;  %v3677_v34 = vld [vmem:[#allocation2 + $0x170] sm:$0xff] (!%p4203_p12) }
 0x43f   : > { %3920 = vst [vmem:[%s5823_s9 + $0x58] sm:$0xff] %v3792_v51  ;;  %3921 = vst [vmem:[%s5823_s9 + $0x60] sm:$0xff] %v3793_v55  ;;  %v3809_v19 = vadd.f32 %v6723_v20, %v3659_v52  ;;  %v3810_v24 = vadd.f32 %v6725_v21, %v3660_v53  ;;  %v3811_v25 = vadd.f32 %v6727_v22, %v3661_v54  ;;  %v3678_v35 = vld [vmem:[#allocation2 + $0x178] sm:$0xff]  ;;  %v3680_v41 = vld [vmem:[#allocation2 + $0x188] sm:$0xff] }
 0x440   : > { %3922 = vst [vmem:[%s5823_s9 + $0x68] sm:$0xff] %v3794_v56  ;;  %3923 = vst [vmem:[%s5823_s9 + $0x70] sm:$0xff] %v3795_v57  ;;  %v3812_v26 = vadd.f32 %v6729_v23, %v3662_v59  ;;  %v3813_v30 = vadd.f32 %v6723_v20, %v3663_v60  ;;  %v3814_v31 = vadd.f32 %v6725_v21, %v3664_v61  ;;  %v3681_v42 = vld [vmem:[#allocation2 + $0x190] sm:$0xff]  ;;  %v3682_v43 = vld [vmem:[#allocation2 + $0x198] sm:$0xff] }
 0x441   : > { %3924 = vst [vmem:[%s5823_s9 + $0x78] sm:$0xff] %v3796_v58  ;;  %3925 = vst [vmem:[%s5823_s9 + $0x80] sm:$0xff] %v3797_v62  ;;  %v3815_v32 = vadd.f32 %v6727_v22, %v3665_v2  ;;  %v3816_v33 = vadd.f32 %v6729_v23, %v3666_v3  ;;  %v3817_v37 = vadd.f32 %v6723_v20, %v3667_v4  ;;  %v3683_v48 = vld [vmem:[#allocation2 + $0x1a0] sm:$0xff]  ;;  %v3684_v49 = vld [vmem:[#allocation2 + $0x1a8] sm:$0xff] }
 0x442   : > { %3926 = vst [vmem:[%s5823_s9 + $0x88] sm:$0xff] %v3798_v63  ;;  %3927 = vst [vmem:[%s5823_s9 + $0x90] sm:$0xff] %v3799_v0  ;;  %v3818_v38 = vadd.f32 %v6725_v21, %v3668_v9  ;;  %v3819_v39 = vadd.f32 %v6727_v22, %v3669_v10  ;;  %v3820_v40 = vadd.f32 %v6729_v23, %v3670_v11  ;;  %v3685_v50 = vld [vmem:[#allocation2 + $0x1b0] sm:$0xff]  ;;  %v3686_v55 = vld [vmem:[#allocation2 + $0x1b8] sm:$0xff] }
 0x443   : > { %3928 = vst [vmem:[%s5823_s9 + $0x98] sm:$0xff] %v3800_v1  ;;  %3929 = vst [vmem:[%s5823_s9 + $0xa0] sm:$0xff] %v3801_v5  ;;  %v3821_v44 = vadd.f32 %v6723_v20, %v3671_v16  ;;  %v3822_v45 = vadd.f32 %v6725_v21, %v3672_v17  ;;  %v3823_v46 = vadd.f32 %v6727_v22, %v3673_v18  ;;  %v3687_v56 = vld [vmem:[#allocation2 + $0x1c0] sm:$0xff]  ;;  %v3688_v57 = vld [vmem:[#allocation2 + $0x1c8] sm:$0xff] }
 0x444   : > { %3930 = vst [vmem:[%s5823_s9 + $0xa8] sm:$0xff] %v3802_v6  ;;  %3931 = vst [vmem:[%s5823_s9 + $0xb0] sm:$0xff] %v3803_v7  ;;  %v3824_v47 = vadd.f32 %v6729_v23, %v3674_v27  ;;  %v3825_v51 = vadd.f32 %v6723_v20, %v3675_v28  ;;  %v3826_v52 = vadd.f32 %v6725_v21, %v3676_v29  ;;  %v3689_v62 = vld [vmem:[#allocation2 + $0x1d0] sm:$0xff]  ;;  %v3690_v63 = vld [vmem:[#allocation2 + $0x1d8] sm:$0xff] }
 0x445   : > { %3932 = vst [vmem:[%s5823_s9 + $0xb8] sm:$0xff] %v3804_v8  ;;  %3933 = vst [vmem:[%s5823_s9 + $0xc0] sm:$0xff] %v3805_v12  ;;  %v3827_v53 = vadd.f32 %v6727_v22, %v3677_v34  ;;  %v3828_v54 = vadd.f32 %v6729_v23, %v3678_v35  ;;  %v3829_v58 = vadd.f32 %v6723_v20, %v3679_v36  ;;  %v3691_v0 = vld [vmem:[#allocation2 + $0x1e0] sm:$0xff]  ;;  %v3692_v5 = vld [vmem:[#allocation2 + $0x1e8] sm:$0xff] }
 0x446   : > { %3934 = vst [vmem:[%s5823_s9 + $0xc8] sm:$0xff] %v3806_v13  ;;  %3935 = vst [vmem:[%s5823_s9 + $0xd0] sm:$0xff] %v3807_v14  ;;  %v3830_v59 = vadd.f32 %v6725_v21, %v3680_v41  ;;  %v3831_v60 = vadd.f32 %v6727_v22, %v3681_v42  ;;  %v3832_v61 = vadd.f32 %v6729_v23, %v3682_v43  ;;  %v3693_v6 = vld [vmem:[#allocation2 + $0x1f0] sm:$0xff]  ;;  %v3694_v7 = vld [vmem:[#allocation2 + $0x1f8] sm:$0xff] }
 0x447   : > { %3936 = vst [vmem:[%s5823_s9 + $0xd8] sm:$0xff] %v3808_v15  ;;  %3937 = vst [vmem:[%s5823_s9 + $0xe0] sm:$0xff] %v3809_v19  ;;  %v3833_v1 = vadd.f32 %v6723_v20, %v3683_v48  ;;  %v3834_v2 = vadd.f32 %v6725_v21, %v3684_v49  ;;  %v3835_v3 = vadd.f32 %v6727_v22, %v3685_v50  ;;  %v3695_v12 = vld [vmem:[#allocation2 + $0x200] sm:$0xff]  ;;  %v3696_v13 = vld [vmem:[#allocation2 + $0x208] sm:$0xff] }
 0x448   : > { %3938 = vst [vmem:[%s5823_s9 + $0xe8] sm:$0xff] %v3810_v24  ;;  %3939 = vst [vmem:[%s5823_s9 + $0xf0] sm:$0xff] %v3811_v25  ;;  %v3836_v4 = vadd.f32 %v6729_v23, %v3686_v55  ;;  %v3837_v8 = vadd.f32 %v6723_v20, %v3687_v56  ;;  %v3838_v9 = vadd.f32 %v6725_v21, %v3688_v57  ;;  %v3697_v14 = vld [vmem:[#allocation2 + $0x210] sm:$0xff]  ;;  %v3698_v19 = vld [vmem:[#allocation2 + $0x218] sm:$0xff] }
 0x449   : > { %3940 = vst [vmem:[%s5823_s9 + $0xf8] sm:$0xff] %v3812_v26  ;;  %3941 = vst [vmem:[%s5823_s9 + $0x100] sm:$0xff] %v3813_v30  ;;  %v3839_v10 = vadd.f32 %v6727_v22, %v3689_v62  ;;  %v3840_v11 = vadd.f32 %v6729_v23, %v3690_v63  ;;  %v3841_v15 = vadd.f32 %v6723_v20, %v3691_v0  ;;  %v3699_v24 = vld [vmem:[#allocation2 + $0x220] sm:$0xff]  ;;  %v3700_v25 = vld [vmem:[#allocation2 + $0x228] sm:$0xff] }
 0x44a   : > { %3942 = vst [vmem:[%s5823_s9 + $0x108] sm:$0xff] %v3814_v31  ;;  %3943 = vst [vmem:[%s5823_s9 + $0x110] sm:$0xff] %v3815_v32  ;;  %v3842_v16 = vadd.f32 %v6725_v21, %v3692_v5  ;;  %v3843_v17 = vadd.f32 %v6727_v22, %v3693_v6  ;;  %v3844_v18 = vadd.f32 %v6729_v23, %v3694_v7  ;;  %v3701_v30 = vld [vmem:[#allocation2 + $0x230] sm:$0xff]  ;;  %v3702_v31 = vld [vmem:[#allocation2 + $0x238] sm:$0xff] }
 0x44b   : > { %3944 = vst [vmem:[%s5823_s9 + $0x118] sm:$0xff] %v3816_v33  ;;  %3945 = vst [vmem:[%s5823_s9 + $0x120] sm:$0xff] %v3817_v37  ;;  %v3845_v26 = vadd.f32 %v6723_v20, %v3695_v12  ;;  %v3846_v27 = vadd.f32 %v6725_v21, %v3696_v13  ;;  %v3847_v28 = vadd.f32 %v6727_v22, %v3697_v14  ;;  %v3703_v32 = vld [vmem:[#allocation2 + $0x240] sm:$0xff]  ;;  %v3704_v37 = vld [vmem:[#allocation2 + $0x248] sm:$0xff] }
 0x44c   : > { %3946 = vst [vmem:[%s5823_s9 + $0x128] sm:$0xff] %v3818_v38  ;;  %3947 = vst [vmem:[%s5823_s9 + $0x130] sm:$0xff] %v3819_v39  ;;  %v3848_v29 = vadd.f32 %v6729_v23, %v3698_v19  ;;  %v3849_v33 = vadd.f32 %v6723_v20, %v3699_v24  ;;  %v3850_v34 = vadd.f32 %v6725_v21, %v3700_v25  ;;  %v3705_v38 = vld [vmem:[#allocation2 + $0x250] sm:$0xff]  ;;  %v3706_v39 = vld [vmem:[#allocation2 + $0x258] sm:$0xff] }
 0x44d   : > { %3948 = vst [vmem:[%s5823_s9 + $0x138] sm:$0xff] %v3820_v40  ;;  %3949 = vst [vmem:[%s5823_s9 + $0x140] sm:$0xff] %v3821_v44  ;;  %v3851_v35 = vadd.f32 %v6727_v22, %v3701_v30  ;;  %v3852_v36 = vadd.f32 %v6729_v23, %v3702_v31  ;;  %v3853_v40 = vadd.f32 %v6723_v20, %v3703_v32  ;;  %v3707_v44 = vld [vmem:[#allocation2 + $0x260] sm:$0xff]  ;;  %v3710_v50 = vld [vmem:[#allocation2 + $0x278] sm:$0xff] }
 0x44e   : > { %3950 = vst [vmem:[%s5823_s9 + $0x148] sm:$0xff] %v3822_v45  ;;  %3951 = vst [vmem:[%s5823_s9 + $0x150] sm:$0xff] %v3823_v46  ;;  %v3854_v41 = vadd.f32 %v6725_v21, %v3704_v37  ;;  %v3855_v42 = vadd.f32 %v6727_v22, %v3705_v38  ;;  %v3856_v43 = vadd.f32 %v6729_v23, %v3706_v39  ;;  %v3708_v45 = vld [vmem:[#allocation2 + $0x268] sm:$0xff]  ;;  %v3709_v46 = vld [vmem:[#allocation2 + $0x270] sm:$0xff] }
 0x44f   : > { %3952 = vst [vmem:[%s5823_s9 + $0x158] sm:$0xff] %v3824_v47  ;;  %3953 = vst [vmem:[%s5823_s9 + $0x160] sm:$0xff] %v3825_v51  ;;  %v3857_v47 = vadd.f32 %v6723_v20, %v3707_v44  ;;  %v3858_v48 = vadd.f32 %v6725_v21, %v3708_v45  ;;  %v3859_v49 = vadd.f32 %v6727_v22, %v3709_v46  ;;  %v3711_v51 = vld [vmem:[#allocation2 + $0x280] sm:$0xff]  ;;  %v3713_v56 = vld [vmem:[#allocation2 + $0x290] sm:$0xff] }
 0x450   : > { %3954 = vst [vmem:[%s5823_s9 + $0x168] sm:$0xff] %v3826_v52  ;;  %3955 = vst [vmem:[%s5823_s9 + $0x170] sm:$0xff] %v3827_v53  ;;  %v3712_v52 = vld [vmem:[#allocation2 + $0x288] sm:$0xff]  ;;  %v3860_v53 = vadd.f32 %v6729_v23, %v3710_v50  ;;  %v3714_v57 = vld [vmem:[#allocation2 + $0x298] sm:$0xff] }
 0x451   : > { %3956 = vst [vmem:[%s5823_s9 + $0x178] sm:$0xff] %v3828_v54  ;;  %3957 = vst [vmem:[%s5823_s9 + $0x180] sm:$0xff] %v3829_v58  ;;  %v3861_v54 = vadd.f32 %v6723_v20, %v3711_v51  ;;  %v3862_v55 = vadd.f32 %v6725_v21, %v3712_v52  ;;  %v3715_v58 = vld [vmem:[#allocation2 + $0x2a0] sm:$0xff]  ;;  %v3716_v62 = vld [vmem:[#allocation2 + $0x2a8] sm:$0xff] }
 0x452   : > { %3958 = vst [vmem:[%s5823_s9 + $0x188] sm:$0xff] %v3830_v59  ;;  %3959 = vst [vmem:[%s5823_s9 + $0x190] sm:$0xff] %v3831_v60  ;;  %v3863_v59 = vadd.f32 %v6727_v22, %v3713_v56  ;;  %v3864_v60 = vadd.f32 %v6729_v23, %v3714_v57  ;;  %v3717_v63 = vld [vmem:[#allocation2 + $0x2b0] sm:$0xff]  ;;  %v3718_v0 = vld [vmem:[#allocation2 + $0x2b8] sm:$0xff] }
 0x453   : > { %3960 = vst [vmem:[%s5823_s9 + $0x198] sm:$0xff] %v3832_v61  ;;  %3961 = vst [vmem:[%s5823_s9 + $0x1a0] sm:$0xff] %v3833_v1  ;;  %v3865_v61 = vadd.f32 %v6723_v20, %v3715_v58  ;;  %v3866_v1 = vadd.f32 %v6725_v21, %v3716_v62  ;;  %v3720_v5 = vld [vmem:[#allocation2 + $0x2c8] sm:$0xff]  ;;  %v3721_v6 = vld [vmem:[#allocation2 + $0x2d0] sm:$0xff] }
 0x454   : > { %3962 = vst [vmem:[%s5823_s9 + $0x1a8] sm:$0xff] %v3834_v2  ;;  %3963 = vst [vmem:[%s5823_s9 + $0x1b0] sm:$0xff] %v3835_v3  ;;  %v3867_v2 = vadd.f32 %v6727_v22, %v3717_v63  ;;  %v3868_v3 = vadd.f32 %v6729_v23, %v3718_v0  ;;  %v3724_v12 = vld [vmem:[#allocation2 + $0x2e8] sm:$0xff]  ;;  %v3731_v32 = vld [vmem:[#allocation2 + $0x320] sm:$0xff] }
 0x455   : > { %3964 = vst [vmem:[%s5823_s9 + $0x1b8] sm:$0xff] %v3836_v4  ;;  %3965 = vst [vmem:[%s5823_s9 + $0x1c0] sm:$0xff] %v3837_v8  ;;  %v3719_v4 = vld [vmem:[#allocation2 + $0x2c0] sm:$0xff]  ;;  %v3870_v8 = vadd.f32 %v6725_v21, %v3720_v5  ;;  %v3734_v38 = vld [vmem:[#allocation2 + $0x338] sm:$0xff] }
 0x456   : > { %3966 = vst [vmem:[%s5823_s9 + $0x1c8] sm:$0xff] %v3838_v9  ;;  %3967 = vst [vmem:[%s5823_s9 + $0x1d0] sm:$0xff] %v3839_v10  ;;  %v3869_v7 = vadd.f32 %v6723_v20, %v3719_v4  ;;  %v3871_v9 = vadd.f32 %v6727_v22, %v3721_v6  ;;  %v3722_v10 = vld [vmem:[#allocation2 + $0x2d8] sm:$0xff]  ;;  %v3735_v39 = vld [vmem:[#allocation2 + $0x340] sm:$0xff] }
 0x457   : > { %3968 = vst [vmem:[%s5823_s9 + $0x1d8] sm:$0xff] %v3840_v11  ;;  %3969 = vst [vmem:[%s5823_s9 + $0x1e0] sm:$0xff] %v3841_v15  ;;  %v3723_v11 = vld [vmem:[#allocation2 + $0x2e0] sm:$0xff]  ;;  %v3872_v13 = vadd.f32 %v6729_v23, %v3722_v10  ;;  %v3874_v15 = vadd.f32 %v6725_v21, %v3724_v12  ;;  %v3737_v44 = vld [vmem:[#allocation2 + $0x350] sm:$0xff] }
 0x458   : > { %3970 = vst [vmem:[%s5823_s9 + $0x1e8] sm:$0xff] %v3842_v16  ;;  %3971 = vst [vmem:[%s5823_s9 + $0x1f0] sm:$0xff] %v3843_v17  ;;  %v3873_v14 = vadd.f32 %v6723_v20, %v3723_v11  ;;  %v3725_v16 = vld [vmem:[#allocation2 + $0x2f0] sm:$0xff]  ;;  %v3726_v17 = vld [vmem:[#allocation2 + $0x2f8] sm:$0xff] }
 0x459   : > { %3972 = vst [vmem:[%s5823_s9 + $0x1f8] sm:$0xff] %v3844_v18  ;;  %3973 = vst [vmem:[%s5823_s9 + $0x200] sm:$0xff] %v3845_v26  ;;  %v3727_v18 = vld [vmem:[#allocation2 + $0x300] sm:$0xff]  ;;  %v3875_v19 = vadd.f32 %v6727_v22, %v3725_v16  ;;  %v3876_v24 = vadd.f32 %v6729_v23, %v3726_v17  ;;  %v3728_v26 = vld [vmem:[#allocation2 + $0x308] sm:$0xff] }
 0x45a   : > { %3974 = vst [vmem:[%s5823_s9 + $0x208] sm:$0xff] %v3846_v27  ;;  %3975 = vst [vmem:[%s5823_s9 + $0x210] sm:$0xff] %v3847_v28  ;;  %v3877_v25 = vadd.f32 %v6723_v20, %v3727_v18  ;;  %v3729_v27 = vld [vmem:[#allocation2 + $0x310] sm:$0xff]  ;;  %v3730_v28 = vld [vmem:[#allocation2 + $0x318] sm:$0xff] }
 0x45b   : > { %3976 = vst [vmem:[%s5823_s9 + $0x218] sm:$0xff] %v3848_v29  ;;  %3977 = vst [vmem:[%s5823_s9 + $0x220] sm:$0xff] %v3849_v33  ;;  %v3878_v29 = vadd.f32 %v6725_v21, %v3728_v26  ;;  %v3879_v30 = vadd.f32 %v6727_v22, %v3729_v27  ;;  %v3880_v31 = vadd.f32 %v6729_v23, %v3730_v28  ;;  %v3732_v33 = vld [vmem:[#allocation2 + $0x328] sm:$0xff]  ;;  %v3738_v45 = vld [vmem:[#allocation2 + $0x358] sm:$0xff] }
 0x45c   : > { %3978 = vst [vmem:[%s5823_s9 + $0x228] sm:$0xff] %v3850_v34  ;;  %3979 = vst [vmem:[%s5823_s9 + $0x230] sm:$0xff] %v3851_v35  ;;  %v3733_v34 = vld [vmem:[#allocation2 + $0x330] sm:$0xff]  ;;  %v3881_v35 = vadd.f32 %v6723_v20, %v3731_v32  ;;  %v3739_v46 = vld [vmem:[#allocation2 + $0x360] sm:$0xff] }
 0x45d   : > { %3980 = vst [vmem:[%s5823_s9 + $0x238] sm:$0xff] %v3852_v36  ;;  %3981 = vst [vmem:[%s5823_s9 + $0x240] sm:$0xff] %v3853_v40  ;;  %v3882_v36 = vadd.f32 %v6725_v21, %v3732_v33  ;;  %v3883_v37 = vadd.f32 %v6727_v22, %v3733_v34  ;;  %v3736_v40 = vld [vmem:[#allocation2 + $0x348] sm:$0xff]  ;;  %v3741_v51 = vld [vmem:[#allocation2 + $0x370] sm:$0xff] }
 0x45e   : > { %3982 = vst [vmem:[%s5823_s9 + $0x248] sm:$0xff] %v3854_v41  ;;  %3983 = vst [vmem:[%s5823_s9 + $0x250] sm:$0xff] %v3855_v42  ;;  %v3884_v41 = vadd.f32 %v6729_v23, %v3734_v38  ;;  %v3885_v42 = vadd.f32 %v6723_v20, %v3735_v39  ;;  %v3740_v50 = vld [vmem:[#allocation2 + $0x368] sm:$0xff]  ;;  %v3742_v52 = vld [vmem:[#allocation2 + $0x378] sm:$0xff] }
 0x45f   : > { %3984 = vst [vmem:[%s5823_s9 + $0x258] sm:$0xff] %v3856_v43  ;;  %3985 = vst [vmem:[%s5823_s9 + $0x260] sm:$0xff] %v3857_v47  ;;  %v3886_v43 = vadd.f32 %v6725_v21, %v3736_v40  ;;  %v3887_v47 = vadd.f32 %v6727_v22, %v3737_v44  ;;  %v3743_v56 = vld [vmem:[#allocation2 + $0x380] sm:$0xff]  ;;  %v3744_v57 = vld [vmem:[#allocation2 + $0x388] sm:$0xff] }
 0x460   : > { %3986 = vst [vmem:[%s5823_s9 + $0x268] sm:$0xff] %v3858_v48  ;;  %3987 = vst [vmem:[%s5823_s9 + $0x270] sm:$0xff] %v3859_v49  ;;  %v3888_v48 = vadd.f32 %v6729_v23, %v3738_v45  ;;  %v3889_v49 = vadd.f32 %v6723_v20, %v3739_v46  ;;  %v3745_v58 = vld [vmem:[#allocation2 + $0x390] sm:$0xff]  ;;  %v3746_v62 = vld [vmem:[#allocation2 + $0x398] sm:$0xff] }
 0x461   : > { %3988 = vst [vmem:[%s5823_s9 + $0x278] sm:$0xff] %v3860_v53  ;;  %3989 = vst [vmem:[%s5823_s9 + $0x280] sm:$0xff] %v3861_v54  ;;  %v3890_v53 = vadd.f32 %v6725_v21, %v3740_v50  ;;  %v3891_v54 = vadd.f32 %v6727_v22, %v3741_v51  ;;  %v3747_v63 = vld [vmem:[#allocation2 + $0x3a0] sm:$0xff]  ;;  %v3748_v0 = vld [vmem:[#allocation2 + $0x3a8] sm:$0xff] }
 0x462   : > { %3990 = vst [vmem:[%s5823_s9 + $0x288] sm:$0xff] %v3862_v55  ;;  %3991 = vst [vmem:[%s5823_s9 + $0x290] sm:$0xff] %v3863_v59  ;;  %v3892_v55 = vadd.f32 %v6729_v23, %v3742_v52  ;;  %v3893_v59 = vadd.f32 %v6723_v20, %v3743_v56  ;;  %v3749_v4 = vld [vmem:[#allocation2 + $0x3b0] sm:$0xff]  ;;  %v3750_v5 = vld [vmem:[#allocation2 + $0x3b8] sm:$0xff] }
 0x463   : > { %3992 = vst [vmem:[%s5823_s9 + $0x298] sm:$0xff] %v3864_v60  ;;  %3993 = vst [vmem:[%s5823_s9 + $0x2a0] sm:$0xff] %v3865_v61  ;;  %v3894_v60 = vadd.f32 %v6725_v21, %v3744_v57  ;;  %v3895_v61 = vadd.f32 %v6727_v22, %v3745_v58  ;;  %v3751_v6 = vld [vmem:[#allocation2 + $0x3c0] sm:$0xff]  ;;  %v3752_v10 = vld [vmem:[#allocation2 + $0x3c8] sm:$0xff] }
 0x464   : > { %3994 = vst [vmem:[%s5823_s9 + $0x2a8] sm:$0xff] %v3866_v1  ;;  %3995 = vst [vmem:[%s5823_s9 + $0x2b0] sm:$0xff] %v3867_v2  ;;  %v3896_v1 = vadd.f32 %v6729_v23, %v3746_v62  ;;  %v3897_v2 = vadd.f32 %v6723_v20, %v3747_v63  ;;  %v3753_v11 = vld [vmem:[#allocation2 + $0x3d0] sm:$0xff]  ;;  %v3754_v12 = vld [vmem:[#allocation2 + $0x3d8] sm:$0xff] }
 0x465   : > { %3996 = vst [vmem:[%s5823_s9 + $0x2b8] sm:$0xff] %v3868_v3  ;;  %3997 = vst [vmem:[%s5823_s9 + $0x2c0] sm:$0xff] %v3869_v7  ;;  %v3898_v3 = vadd.f32 %v6725_v21, %v3748_v0  ;;  %v3899_v7 = vadd.f32 %v6727_v22, %v3749_v4  ;;  %v3755_v16 = vld [vmem:[#allocation2 + $0x3e0] sm:$0xff]  ;;  %v3756_v17 = vld [vmem:[#allocation2 + $0x3e8] sm:$0xff] }
 0x466   : > { %3998 = vst [vmem:[%s5823_s9 + $0x2c8] sm:$0xff] %v3870_v8  ;;  %3999 = vst [vmem:[%s5823_s9 + $0x2d0] sm:$0xff] %v3871_v9  ;;  %v3900_v8 = vadd.f32 %v6729_v23, %v3750_v5  ;;  %v3901_v9 = vadd.f32 %v6723_v20, %v3751_v6  ;;  %v3757_v18 = vld [vmem:[#allocation2 + $0x3f0] sm:$0xff]  ;;  %v3758_v26 = vld [vmem:[#allocation2 + $0x3f8] sm:$0xff] }
 0x467   : > { %4000 = vst [vmem:[%s5823_s9 + $0x2d8] sm:$0xff] %v3872_v13  ;;  %4001 = vst [vmem:[%s5823_s9 + $0x2e0] sm:$0xff] %v3873_v14  ;;  %v3902_v13 = vadd.f32 %v6725_v21, %v3752_v10  ;;  %v3903_v14 = vadd.f32 %v6727_v22, %v3753_v11  ;;  %v3908_v27 = vadd.f32 %v6729_v23, %v3758_v26 }
 0x468   : > { %4002 = vst [vmem:[%s5823_s9 + $0x2e8] sm:$0xff] %v3874_v15  ;;  %4003 = vst [vmem:[%s5823_s9 + $0x2f0] sm:$0xff] %v3875_v19  ;;  %v3904_v15 = vadd.f32 %v6729_v23, %v3754_v12  ;;  %v3905_v19 = vadd.f32 %v6723_v20, %v3755_v16 }
 0x469   : > { %4004 = vst [vmem:[%s5823_s9 + $0x2f8] sm:$0xff] %v3876_v24  ;;  %4005 = vst [vmem:[%s5823_s9 + $0x300] sm:$0xff] %v3877_v25  ;;  %v3906_v24 = vadd.f32 %v6725_v21, %v3756_v17  ;;  %v3907_v25 = vadd.f32 %v6727_v22, %v3757_v18 }
 0x46a   : > { %4006 = vst [vmem:[%s5823_s9 + $0x308] sm:$0xff] %v3878_v29  ;;  %4007 = vst [vmem:[%s5823_s9 + $0x310] sm:$0xff] %v3879_v30 }
 0x46b   : > { %4008 = vst [vmem:[%s5823_s9 + $0x318] sm:$0xff] %v3880_v31  ;;  %4009 = vst [vmem:[%s5823_s9 + $0x320] sm:$0xff] %v3881_v35 }
 0x46c   : > { %4010 = vst [vmem:[%s5823_s9 + $0x328] sm:$0xff] %v3882_v36  ;;  %4011 = vst [vmem:[%s5823_s9 + $0x330] sm:$0xff] %v3883_v37 }
 0x46d   : > { %4012 = vst [vmem:[%s5823_s9 + $0x338] sm:$0xff] %v3884_v41  ;;  %4013 = vst [vmem:[%s5823_s9 + $0x340] sm:$0xff] %v3885_v42 }
 0x46e   : > { %4014 = vst [vmem:[%s5823_s9 + $0x348] sm:$0xff] %v3886_v43  ;;  %4015 = vst [vmem:[%s5823_s9 + $0x350] sm:$0xff] %v3887_v47 }
 0x46f   : > { %4016 = vst [vmem:[%s5823_s9 + $0x358] sm:$0xff] %v3888_v48  ;;  %4017 = vst [vmem:[%s5823_s9 + $0x360] sm:$0xff] %v3889_v49 }
 0x470   : > { %4018 = vst [vmem:[%s5823_s9 + $0x368] sm:$0xff] %v3890_v53  ;;  %4019 = vst [vmem:[%s5823_s9 + $0x370] sm:$0xff] %v3891_v54 }
 0x471   : > { %4020 = vst [vmem:[%s5823_s9 + $0x378] sm:$0xff] %v3892_v55  ;;  %4021 = vst [vmem:[%s5823_s9 + $0x380] sm:$0xff] %v3893_v59 }
 0x472   : > { %4022 = vst [vmem:[%s5823_s9 + $0x388] sm:$0xff] %v3894_v60  ;;  %4023 = vst [vmem:[%s5823_s9 + $0x390] sm:$0xff] %v3895_v61 }
 0x473   : > { %4024 = vst [vmem:[%s5823_s9 + $0x398] sm:$0xff] %v3896_v1  ;;  %4025 = vst [vmem:[%s5823_s9 + $0x3a0] sm:$0xff] %v3897_v2 }
 0x474   : > { %4026 = vst [vmem:[%s5823_s9 + $0x3a8] sm:$0xff] %v3898_v3  ;;  %4027 = vst [vmem:[%s5823_s9 + $0x3b0] sm:$0xff] %v3899_v7 }
 0x475   : > { %4028 = vst [vmem:[%s5823_s9 + $0x3b8] sm:$0xff] %v3900_v8  ;;  %4029 = vst [vmem:[%s5823_s9 + $0x3c0] sm:$0xff] %v3901_v9 }
 0x476   : > { %4030 = vst [vmem:[%s5823_s9 + $0x3c8] sm:$0xff] %v3902_v13  ;;  %4031 = vst [vmem:[%s5823_s9 + $0x3d0] sm:$0xff] %v3903_v14 }
 0x477   : > { %4032 = vst [vmem:[%s5823_s9 + $0x3d8] sm:$0xff] %v3904_v15  ;;  %4033 = vst [vmem:[%s5823_s9 + $0x3e0] sm:$0xff] %v3905_v19 }
 0x478   : > { %4034 = vst [vmem:[%s5823_s9 + $0x3e8] sm:$0xff] %v3906_v24  ;;  %4035 = vst [vmem:[%s5823_s9 + $0x3f0] sm:$0xff] %v3907_v25 }
 0x479   : > { %4036 = vst [vmem:[%s5823_s9 + $0x3f8] sm:$0xff] %v3908_v27 }
 0x47a PF: > { %s7142_s12 = sld [smem:[#allocation18_spill]]  ;;  %s7144_s16 = sld [smem:[#allocation22_spill]] }
 0x47b   : > { %s7145_s8 = sld [smem:[#allocation26_spill]]  ;;  %s4054_s5 = sshll.u32 %s5823_s9, 4  ;;  %s6994_s5 = int_to_ptr.vmem [resolvable:$true] %s4054_s5 }
 0x47c   : > { %s6998_s22 = scalar_lea.sflag [#allocation5], %s277_s6  ;;  %s5346_s10 = scalar_lea.vmem %s6994_s5, 16384 }
 0x47d   : > { %p5347_p0 = scmp.ne.s32.totalorder %s6994_s5, %s5346_s10  ;;  %s5509_s13 = smov [#allocation9]  }
 0x47e   : > { %s5350_s30 = sshll.u32 %s5509_s13, 4  ;;  %s5351_s30 = int_to_ptr.vmem [resolvable:$false] %s5350_s30 }
 0x47f   : > { %s5352_s27 = scalar_lea.vmem %s5351_s30, 32768  ;;  %p5353_p8 = scmp.lt.s32.totalorder %s6994_s5, %s5351_s30 }
 0x480   : > { %s4213_s29 = sshll.u32 %s7142_s12, 14  ;;  %p7146_p4 = scmp.ne.s32.totalorder %s7144_s16, 0 }
 0x481   : > { %s6991_s18 = scalar_lea.hbm %s7145_s8, %s4213_s29  ;;  %p5354_p6 = scmp.lt.s32.totalorder %s5352_s27, %s5346_s10 }
 0x482   : > { %p5348_p10 = pnand %p5347_p0, %p7146_p4 }
 0x483   : > { %p5355_p2 = por %p5354_p6, %p5353_p8 }
 0x484   : > { %p5349_p13 = pneg %p5348_p10 }
 0x486   : > { %p5356_p1 = pnand %p5355_p2, %p5349_p13 }
 0x488   : > { %5359 = shalt.err (!%p5356_p1)
}
 0x489   : > { %s5360_s6 = scalar_lea.hbm %s6991_s18, 16384  ;;  %s5364_s4 = scalar_lea.hbm %s7145_s8, 32768 }
 0x48a   : > { %p5361_p9 = scmp.ne.s32.totalorder %s6991_s18, %s5360_s6  ;;  %p5365_p7 = scmp.lt.u32.totalorder %s6991_s18, %s7145_s8 }
 0x48b   : > { %p5366_p11 = scmp.lt.u32.totalorder %s5364_s4, %s5360_s6  ;;  %p5368_p0 = scmp.lt.u32.totalorder %s5360_s6, %s6991_s18 }
 0x48c   : > { %p5362_p3 = pnand %p5361_p9, %p7146_p4 }
 0x48d   : > { %p5367_p12 = por %p5366_p11, %p5365_p7 }
 0x48e   : > { %p5363_p5 = pneg %p5362_p3 }
 0x48f   : > { %p5369_p10 = por %p5368_p0, %p5367_p12 }
 0x491   : > { %p5370_p13 = pnand %p5369_p10, %p5363_p5 }
 0x493   : > { %5373 = shalt.err (!%p5370_p13)
}
 0x494   : > { %s5510_s29 = smov 512   ;;  %s5511_s28 = smov 32  }
 0x495   : > { %5118 = dma.vmem_to_hbm [thread:$0]  (%p7146_p4), %s6994_s5, 16384, %s6991_s18, %s6998_s22, %s5510_s29, %s5510_s29, %s5511_s28  }
 0x496 PF: > { %s7147_s26 = sld [smem:[#allocation14_spill]]  ;;  %s7148_s10 = sld [smem:[#allocation23_spill]] }
 0x497   : > { %p5138_p8 = scmp.ge.s32.totalorder %s5500_s25, 2 }
 0x49c   : > { %s4069_s13 = sand.u32 1, %s7147_s26   ;;  %p7149_p6 = scmp.ne.s32.totalorder %s7148_s10, 0 }
 0x49d   : > { %s4070_s30 = scalar_lea.sflag [#allocation5], %s4069_s13 }
 0x49e   : > { %p5132_p2 = pnand %p5138_p8, %p7149_p6 }
 0x4a0   : > { %5443 = dma.done.wait (!%p5132_p2), %s4070_s30, 16384  }
 0x4a1   : > { %5445 = vsyncadd (!%p5132_p2), %s4070_s30, 4294950912  ;;  %s22_s25 = sadd.s32 1, %s5500_s25   ;;  %s7151_s12 = sld [smem:[#allocation15_spill]] }
 0x4a2   : > { %p7027_p1 = scmp.ge.s32.totalorder %s22_s25, 6   ;;  %s7152_s15 = sld [smem:[#allocation16_spill]] }
 0x4a3   : > { %s7153_s5 = sld [smem:[#allocation24_spill]]  ;;  %s7154_s13 = smov %s5456_s14 }
 0x4a4   : > { %s7155_s14 = smov %s5711_s7  ;;  %s7156_s16 = smov %s5468_s17 }
 0x4a5   : > { %s7157_s17 = smov %s5704_s2  ;;  %s7158_s18 = smov %s5476_s19 }
 0x4a6   : > { %s7159_s19 = smov %s5480_s20  ;;  %s7160_s20 = smov %s5716_s11 }
 0x4a7   : > { %s7161_s21 = smov %s5492_s23  ;;  %s7162_s22 = smov %s5496_s24 }
 0x4a8   : > { %s7164_s24 = smov %s7170_s3  ;;  %21 = sbr.rel (!%p7027_p1) target bundleno = 15 (0xf), region = 103 }
 0x4a9   : > { %s7163_s23 = smov %s7153_s5 }
 0x4af   :  { %4075 = vsyncpa [#allocation4], 1 }
 0x4b0   :  { %4077 = vsyncpa [#allocation4 + $0x1], 1 }
 0x4b1   :  { %4078 = vsyncpa [#allocation7], 1 }
 0x4b2   :  { %4080 = vsyncpa [#allocation7 + $0x1], 1 }
 0x4b3   :  { %4081 = vsyncpa [#allocation5], 1 }
 0x4b4   :  { %4083 = vsyncpa [#allocation5 + $0x1], 1 }

</bundles_post_ra>
